<compile_context>
chip_gen: v5e
topology: v5e:2x2
jax: 0.10.0
libtpu: 0.0.40
codegen_flags: <defaults>
</compile_context>

<pallas_src>
import jax
import jax.numpy as jnp
from jax import lax
from jax.experimental import pallas as pl
from jax.experimental.pallas import tpu as pltpu

# ----------------------------- config (small synthetic shapes) ----------------------------
B = 2            # batch
T = 8            # time-series length
RNN_IN = 16      # rnn_input_size
RNN_H = 32       # rnn_hidden_size
RNN_LAYERS = 2   # rnn_layers
FNN_IN = 16      # fnn_input_size
FNN_H = 32       # fnn_hidden_size
FINAL_H = 32     # final_hidden_size
SEQ = 8          # codebert token length
BERT_H = 32      # synthetic codebert hidden size (real checkpoint = 768)
BERT_FF = 64     # synthetic codebert FFN width
VOCAB = 100
NEG = -1e9
OUT_PAD = 128    # lane-dense padded width for the 1-wide logits output

F32 = jnp.float32
VMEM_SPEC = pl.BlockSpec(memory_space=pltpu.MemorySpace.VMEM)
N_KERNEL_INPUTS = 36


# ----------------------------------- fused Pallas kernel ----------------------------------
def hybrid_kernel(ts_ref, csv_ref, emb_ref, abias_ref,
                  wih0_ref, whh0_ref, b0_ref,
                  wih1_ref, whh1_ref, b1_ref,
                  fw1_ref, fb1_ref, fw2_ref, fb2_ref,
                  ln0g_ref, ln0b_ref, wqkv_ref, bqkv_ref,
                  wo_ref, bo_ref, ln1g_ref, ln1b_ref,
                  wf1_ref, bf1_ref, wf2_ref, bf2_ref,
                  ln2g_ref, ln2b_ref,
                  cbw_ref, cbb_ref,
                  w1r_ref, w1c_ref, w1k_ref, hb1_ref,
                  w2p_ref, b2p_ref,
                  out_ref):
    """Entire HybridModel forward; all intermediates stay in VMEM."""

    H = RNN_H

    # ---------------- LSTM branch (2 layers, fully unrolled, gate-merged) -----------------
    def lstm_layer(x_seq, wih_ref, whh_ref, b_ref):
        # x_seq: (T*B, Din) time-major.  Returns (list of T (B,H) hiddens, final h).
        # Hoisted input projection for all 4 gates at once (gate order i|f|g|o along the
        # 4H axis — matches torch.nn.LSTM): one (T*B, Din) @ (Din, 4H) dot, OUTSIDE the
        # recurrence.
        xw = jnp.dot(x_seq, wih_ref[...], preferred_element_type=F32) + b_ref[...]
        whh = whh_ref[...]                                   # (H, 4H) merged recurrent weight
        h = jnp.zeros((B, H), F32)
        c = jnp.zeros((B, H), F32)
        hs = []
        for t in range(T):                       # static trip count -> fully unrolled
            lo = t * B
            # single 128-lane MXU matmul on the serial critical path
            z = xw[lo:lo + B] + jnp.dot(h, whh, preferred_element_type=F32)   # (B, 4H)
            i = jax.nn.sigmoid(z[:, 0:H])
            f = jax.nn.sigmoid(z[:, H:2 * H])
            g = jnp.tanh(      z[:, 2 * H:3 * H])
            o = jax.nn.sigmoid(z[:, 3 * H:4 * H])
            c = f * c + i * g
            h = o * jnp.tanh(c)
            hs.append(h)
        return hs, h

    hs0, _ = lstm_layer(ts_ref[...], wih0_ref, whh0_ref, b0_ref)
    x1 = jnp.concatenate(hs0, axis=0)                       # layer-0 sequence, stays in VMEM
    _, rnn_feature = lstm_layer(x1, wih1_ref, whh1_ref, b1_ref)   # == hn[-1], (B, RNN_H)

    # ---------------- FNN branch (Linear -> ReLU -> [Dropout=id] -> Linear -> ReLU) --------
    hf = jnp.dot(csv_ref[...], fw1_ref[...], preferred_element_type=F32) + fb1_ref[...]
    hf = jnp.maximum(hf, 0.0)
    hf = jnp.dot(hf, fw2_ref[...], preferred_element_type=F32) + fb2_ref[...]
    csv_feature = jnp.maximum(hf, 0.0)                      # (B, FNN_H)

    # ---------------- synthetic CodeBERT encoder (all flattened 2-D dots) ------------------
    def layernorm(x, g_ref, b_ref):
        mu = jnp.mean(x, axis=-1, keepdims=True)
        var = jnp.mean((x - mu) ** 2, axis=-1, keepdims=True)
        return (x - mu) * lax.rsqrt(var + 1e-5) * g_ref[...] + b_ref[...]

    hb = layernorm(emb_ref[...], ln0g_ref, ln0b_ref)        # (B*S, D)
    qkv = jnp.dot(hb, wqkv_ref[...], preferred_element_type=F32) + bqkv_ref[...]   # fused QKV
    q = qkv[:, 0:BERT_H]
    k = qkv[:, BERT_H:2 * BERT_H]
    v = qkv[:, 2 * BERT_H:3 * BERT_H]
    scores = lax.dot_general(q, k, (((1,), (1,)), ((), ())),
                             preferred_element_type=F32)    # (B*S, B*S)
    scores = scores * (1.0 / (BERT_H ** 0.5)) + abias_ref[...]   # block-diag batch + pad mask
    attn = jax.nn.softmax(scores, axis=-1)
    ctx = jnp.dot(attn, v, preferred_element_type=F32)
    attn_out = jnp.dot(ctx, wo_ref[...], preferred_element_type=F32) + bo_ref[...]
    hb = layernorm(hb + attn_out, ln1g_ref, ln1b_ref)
    ff = jnp.dot(hb, wf1_ref[...], preferred_element_type=F32) + bf1_ref[...]
    # TODO(synk): HF Roberta uses exact (erf) GELU; tanh approximation kept here for the
    # synthetic encoder (well-supported EUP path, numerics irrelevant vs. real checkpoint).
    ff = jax.nn.gelu(ff)
    ff = jnp.dot(ff, wf2_ref[...], preferred_element_type=F32) + bf2_ref[...]
    hb = layernorm(hb + ff, ln2g_ref, ln2b_ref)             # (B*S, D)
    # CLS token = row b*SEQ of the flattened sequence (offsets are multiples of 8).
    cls = jnp.concatenate([hb[bb * SEQ:bb * SEQ + 1, :] for bb in range(B)], axis=0)  # (B, D)

    # ---------------- fusion head (concat-free, lane-dense padded output) ------------------
    contract = jnp.dot(cls, cbw_ref[...], preferred_element_type=F32) + cbb_ref[...]
    hh = (jnp.dot(rnn_feature, w1r_ref[...], preferred_element_type=F32)
          + jnp.dot(csv_feature, w1c_ref[...], preferred_element_type=F32)
          + jnp.dot(contract, w1k_ref[...], preferred_element_type=F32)
          + hb1_ref[...])
    hh = jnp.maximum(hh, 0.0)
    # final_w2 is padded to (FINAL_H, OUT_PAD); the real logit lives in lane 0.
    out_ref[...] = jnp.dot(hh, w2p_ref[...], preferred_element_type=F32) + b2p_ref[...]


# ------------------------------------- wrapper ---------------------------------------------
@jax.jit
def hybrid_forward(params, time_series, csv_data, input_ids, attention_mask):
    # LSTM input: time-major, flattened to (T*B, Din) for the hoisted gate projections.
    ts = jnp.transpose(time_series, (1, 0, 2)).reshape(T * B, RNN_IN)

    # TODO(synk): real CodeBERT is a pretrained 12-layer/768-hidden RobertaModel (position-id
    # offset, embedding LayerNorm/dropout handled by HF); this synthetic 1-layer/32-hidden
    # encoder uses deterministic weights and simple 0-based positions.
    emb = (params['tok_emb'][input_ids] + params['pos_emb'][None, :, :]).reshape(B * SEQ, BERT_H)

    # (B*S, B*S) additive attention bias: block-diagonal over batch + key padding mask,
    # so attention inside the kernel is a single flattened 2-D matmul.
    key_mask = attention_mask.astype(F32)                              # (B, S)
    allowed = jnp.broadcast_to(
        jnp.eye(B, dtype=F32)[:, None, :, None] * key_mask[None, None, :, :],
        (B, SEQ, B, SEQ)).reshape(B * SEQ, B * SEQ)
    attn_bias = (1.0 - allowed) * NEG

    out = pl.pallas_call(
        hybrid_kernel,
        out_shape=jax.ShapeDtypeStruct((B, OUT_PAD), F32),
        in_specs=[VMEM_SPEC] * N_KERNEL_INPUTS,
        out_specs=VMEM_SPEC,
    )(ts, csv_data, emb, attn_bias,
      params['lstm0_wih'], params['lstm0_whh'], params['lstm0_b'],
      params['lstm1_wih'], params['lstm1_whh'], params['lstm1_b'],
      params['fnn_w1'], params['fnn_b1'], params['fnn_w2'], params['fnn_b2'],
      params['ln0_g'], params['ln0_b'], params['wqkv'], params['bqkv'],
      params['wo'], params['bo'], params['ln1_g'], params['ln1_b'],
      params['wf1'], params['bf1'], params['wf2'], params['bf2'],
      params['ln2_g'], params['ln2_b'],
      params['cb_fc_w'], params['cb_fc_b'],
      params['w1_rnn'], params['w1_csv'], params['w1_cls'], params['final_b1'],
      params['final_w2p'], params['final_b2p'])
    return out[:, :1]                                                  # (B, 1) logits


# --------------------------------- deterministic init --------------------------------------
def init_params(key):
    keys = iter(jax.random.split(key, 64))

    def nrm(shape, scale=0.05):
        return (scale * jax.random.normal(next(keys), shape)).astype(F32)

    p = {}
    # LSTM — gate-merged layout (i|f|g|o along the 4H axis), stored transposed for x @ W.
    din = RNN_IN
    for l in range(RNN_LAYERS):
        p[f'lstm{l}_wih'] = nrm((din, 4 * RNN_H))
        p[f'lstm{l}_whh'] = nrm((RNN_H, 4 * RNN_H))
        p[f'lstm{l}_b'] = nrm((1, 4 * RNN_H), 0.01)    # bias_ih + bias_hh combined
        din = RNN_H
    # FNN
    p['fnn_w1'] = nrm((FNN_IN, FNN_H)); p['fnn_b1'] = nrm((1, FNN_H), 0.01)
    p['fnn_w2'] = nrm((FNN_H, FNN_H));  p['fnn_b2'] = nrm((1, FNN_H), 0.01)
    # synthetic CodeBERT
    p['tok_emb'] = nrm((VOCAB, BERT_H))
    p['pos_emb'] = nrm((SEQ, BERT_H))
    p['ln0_g'] = jnp.ones((1, BERT_H), F32); p['ln0_b'] = jnp.zeros((1, BERT_H), F32)
    p['wqkv'] = nrm((BERT_H, 3 * BERT_H))              # fused Q/K/V projection
    p['bqkv'] = jnp.zeros((1, 3 * BERT_H), F32)
    p['wo'] = nrm((BERT_H, BERT_H)); p['bo'] = jnp.zeros((1, BERT_H), F32)
    p['ln1_g'] = jnp.ones((1, BERT_H), F32); p['ln1_b'] = jnp.zeros((1, BERT_H), F32)
    p['wf1'] = nrm((BERT_H, BERT_FF)); p['bf1'] = jnp.zeros((1, BERT_FF), F32)
    p['wf2'] = nrm((BERT_FF, BERT_H)); p['bf2'] = jnp.zeros((1, BERT_H), F32)
    p['ln2_g'] = jnp.ones((1, BERT_H), F32); p['ln2_b'] = jnp.zeros((1, BERT_H), F32)
    # codebert_fc
    p['cb_fc_w'] = nrm((BERT_H, FNN_H)); p['cb_fc_b'] = nrm((1, FNN_H), 0.01)
    # final_fc: w1 split per input block (concat-free head), w2 zero-padded lane-dense
    p['w1_rnn'] = nrm((RNN_H, FINAL_H))
    p['w1_csv'] = nrm((FNN_H, FINAL_H))
    p['w1_cls'] = nrm((FNN_H, FINAL_H))
    p['final_b1'] = nrm((1, FINAL_H), 0.01)
    w2 = nrm((FINAL_H, 1))
    b2 = nrm((1, 1), 0.01)
    p['final_w2p'] = jnp.pad(w2, ((0, 0), (0, OUT_PAD - 1)))
    p['final_b2p'] = jnp.pad(b2, ((0, 0), (0, OUT_PAD - 1)))
    return p


# --------------------------------------- main -----------------------------------------------
if __name__ == "__main__":
    key = jax.random.PRNGKey(0)
    k_par, k_ts, k_csv, k_ids = jax.random.split(key, 4)

    params = init_params(k_par)
    time_series = jax.random.normal(k_ts, (B, T, RNN_IN), F32)
    csv_data = jax.random.normal(k_csv, (B, FNN_IN), F32)
    input_ids = jax.random.randint(k_ids, (B, SEQ), 0, VOCAB, jnp.int32)
    attention_mask = jnp.concatenate(
        [jnp.ones((B, SEQ - 2), jnp.int32), jnp.zeros((B, 2), jnp.int32)], axis=1)

    logits = hybrid_forward(params, time_series, csv_data, input_ids, attention_mask)
    logits = jax.block_until_ready(logits)
    assert logits.shape == (B, 1) and logits.dtype == F32
    assert bool(jnp.all(jnp.isfinite(logits)))
    print("KERNEL_OK")
</pallas_src>

<mosaic_0001>
module attributes {stable_mosaic.version = 11 : i64} {
  func.func @hybrid_kernel(%arg0: memref<16x16xf32, #tpu.memory_space<vmem>>, %arg1: memref<2x16xf32, #tpu.memory_space<vmem>>, %arg2: memref<16x32xf32, #tpu.memory_space<vmem>>, %arg3: memref<16x16xf32, #tpu.memory_space<vmem>>, %arg4: memref<16x128xf32, #tpu.memory_space<vmem>>, %arg5: memref<32x128xf32, #tpu.memory_space<vmem>>, %arg6: memref<1x128xf32, #tpu.memory_space<vmem>>, %arg7: memref<32x128xf32, #tpu.memory_space<vmem>>, %arg8: memref<32x128xf32, #tpu.memory_space<vmem>>, %arg9: memref<1x128xf32, #tpu.memory_space<vmem>>, %arg10: memref<16x32xf32, #tpu.memory_space<vmem>>, %arg11: memref<1x32xf32, #tpu.memory_space<vmem>>, %arg12: memref<32x32xf32, #tpu.memory_space<vmem>>, %arg13: memref<1x32xf32, #tpu.memory_space<vmem>>, %arg14: memref<1x32xf32, #tpu.memory_space<vmem>>, %arg15: memref<1x32xf32, #tpu.memory_space<vmem>>, %arg16: memref<32x96xf32, #tpu.memory_space<vmem>>, %arg17: memref<1x96xf32, #tpu.memory_space<vmem>>, %arg18: memref<32x32xf32, #tpu.memory_space<vmem>>, %arg19: memref<1x32xf32, #tpu.memory_space<vmem>>, %arg20: memref<1x32xf32, #tpu.memory_space<vmem>>, %arg21: memref<1x32xf32, #tpu.memory_space<vmem>>, %arg22: memref<32x64xf32, #tpu.memory_space<vmem>>, %arg23: memref<1x64xf32, #tpu.memory_space<vmem>>, %arg24: memref<64x32xf32, #tpu.memory_space<vmem>>, %arg25: memref<1x32xf32, #tpu.memory_space<vmem>>, %arg26: memref<1x32xf32, #tpu.memory_space<vmem>>, %arg27: memref<1x32xf32, #tpu.memory_space<vmem>>, %arg28: memref<32x32xf32, #tpu.memory_space<vmem>>, %arg29: memref<1x32xf32, #tpu.memory_space<vmem>>, %arg30: memref<32x32xf32, #tpu.memory_space<vmem>>, %arg31: memref<32x32xf32, #tpu.memory_space<vmem>>, %arg32: memref<32x32xf32, #tpu.memory_space<vmem>>, %arg33: memref<1x32xf32, #tpu.memory_space<vmem>>, %arg34: memref<32x128xf32, #tpu.memory_space<vmem>>, %arg35: memref<1x128xf32, #tpu.memory_space<vmem>>, %arg36: memref<2x128xf32, #tpu.memory_space<vmem>>) attributes {dimension_semantics = [], scalar_prefetch = 0 : i64, scratch_operands = 0 : i64, tpu.core_type = #tpu.core_type<tc>} {
    %c0 = arith.constant 0 : index
    %c0_0 = arith.constant 0 : index
    %0 = vector.load %arg0[%c0, %c0_0] : memref<16x16xf32, #tpu.memory_space<vmem>>, vector<16x16xf32>
    %c0_1 = arith.constant 0 : index
    %c0_2 = arith.constant 0 : index
    %1 = vector.load %arg4[%c0_1, %c0_2] : memref<16x128xf32, #tpu.memory_space<vmem>>, vector<16x128xf32>
    %cst = arith.constant dense<0.000000e+00> : vector<16x128xf32>
    %2 = tpu.matmul %0, %1, %cst {dimension_numbers = #tpu.dot_dimension_numbers<[1], [0], [0], [1], [0, 0, 1, 1], [], []>} : vector<16x16xf32>, vector<16x128xf32>, vector<16x128xf32> -> vector<16x128xf32>
    %c0_3 = arith.constant 0 : index
    %c0_4 = arith.constant 0 : index
    %3 = vector.load %arg6[%c0_3, %c0_4] : memref<1x128xf32, #tpu.memory_space<vmem>>, vector<1x128xf32>
    %4 = vector.broadcast %3 : vector<1x128xf32> to vector<16x128xf32>
    %5 = arith.addf %2, %4 : vector<16x128xf32>
    %c0_5 = arith.constant 0 : index
    %c0_6 = arith.constant 0 : index
    %6 = vector.load %arg5[%c0_5, %c0_6] : memref<32x128xf32, #tpu.memory_space<vmem>>, vector<32x128xf32>
    %cst_7 = arith.constant 0.000000e+00 : f32
    %7 = vector.broadcast %cst_7 : f32 to vector<2x32xf32>
    %cst_8 = arith.constant 0.000000e+00 : f32
    %8 = vector.broadcast %cst_8 : f32 to vector<2x32xf32>
    %9 = vector.extract_strided_slice %5 {offsets = [0, 0], sizes = [2, 128], strides = [1, 1]} : vector<16x128xf32> to vector<2x128xf32>
    %cst_9 = arith.constant dense<0.000000e+00> : vector<2x128xf32>
    %10 = tpu.matmul %7, %6, %cst_9 {dimension_numbers = #tpu.dot_dimension_numbers<[1], [0], [0], [1], [0, 0, 1, 1], [], []>} : vector<2x32xf32>, vector<32x128xf32>, vector<2x128xf32> -> vector<2x128xf32>
    %11 = arith.addf %9, %10 : vector<2x128xf32>
    %12 = vector.extract_strided_slice %11 {offsets = [0, 0], sizes = [2, 32], strides = [1, 1]} : vector<2x128xf32> to vector<2x32xf32>
    %13 = arith.negf %12 : vector<2x32xf32>
    %14 = math.exp %13 : vector<2x32xf32>
    %cst_10 = arith.constant 1.000000e+00 : f32
    %15 = vector.broadcast %cst_10 : f32 to vector<2x32xf32>
    %16 = arith.addf %15, %14 : vector<2x32xf32>
    %17 = arith.divf %15, %16 : vector<2x32xf32>
    %18 = vector.extract_strided_slice %11 {offsets = [0, 32], sizes = [2, 32], strides = [1, 1]} : vector<2x128xf32> to vector<2x32xf32>
    %19 = arith.negf %18 : vector<2x32xf32>
    %20 = math.exp %19 : vector<2x32xf32>
    %cst_11 = arith.constant 1.000000e+00 : f32
    %21 = vector.broadcast %cst_11 : f32 to vector<2x32xf32>
    %22 = arith.addf %21, %20 : vector<2x32xf32>
    %23 = arith.divf %21, %22 : vector<2x32xf32>
    %24 = vector.extract_strided_slice %11 {offsets = [0, 64], sizes = [2, 32], strides = [1, 1]} : vector<2x128xf32> to vector<2x32xf32>
    %25 = math.tanh %24 : vector<2x32xf32>
    %26 = vector.extract_strided_slice %11 {offsets = [0, 96], sizes = [2, 32], strides = [1, 1]} : vector<2x128xf32> to vector<2x32xf32>
    %27 = arith.negf %26 : vector<2x32xf32>
    %28 = math.exp %27 : vector<2x32xf32>
    %cst_12 = arith.constant 1.000000e+00 : f32
    %29 = vector.broadcast %cst_12 : f32 to vector<2x32xf32>
    %30 = arith.addf %29, %28 : vector<2x32xf32>
    %31 = arith.divf %29, %30 : vector<2x32xf32>
    %32 = arith.mulf %23, %8 : vector<2x32xf32>
    %33 = arith.mulf %17, %25 : vector<2x32xf32>
    %34 = arith.addf %32, %33 : vector<2x32xf32>
    %35 = math.tanh %34 : vector<2x32xf32>
    %36 = arith.mulf %31, %35 : vector<2x32xf32>
    %37 = vector.extract_strided_slice %5 {offsets = [2, 0], sizes = [2, 128], strides = [1, 1]} : vector<16x128xf32> to vector<2x128xf32>
    %cst_13 = arith.constant dense<0.000000e+00> : vector<2x128xf32>
    %38 = tpu.matmul %36, %6, %cst_13 {dimension_numbers = #tpu.dot_dimension_numbers<[1], [0], [0], [1], [0, 0, 1, 1], [], []>} : vector<2x32xf32>, vector<32x128xf32>, vector<2x128xf32> -> vector<2x128xf32>
    %39 = arith.addf %37, %38 : vector<2x128xf32>
    %40 = vector.extract_strided_slice %39 {offsets = [0, 0], sizes = [2, 32], strides = [1, 1]} : vector<2x128xf32> to vector<2x32xf32>
    %41 = arith.negf %40 : vector<2x32xf32>
    %42 = math.exp %41 : vector<2x32xf32>
    %cst_14 = arith.constant 1.000000e+00 : f32
    %43 = vector.broadcast %cst_14 : f32 to vector<2x32xf32>
    %44 = arith.addf %43, %42 : vector<2x32xf32>
    %45 = arith.divf %43, %44 : vector<2x32xf32>
    %46 = vector.extract_strided_slice %39 {offsets = [0, 32], sizes = [2, 32], strides = [1, 1]} : vector<2x128xf32> to vector<2x32xf32>
    %47 = arith.negf %46 : vector<2x32xf32>
    %48 = math.exp %47 : vector<2x32xf32>
    %cst_15 = arith.constant 1.000000e+00 : f32
    %49 = vector.broadcast %cst_15 : f32 to vector<2x32xf32>
    %50 = arith.addf %49, %48 : vector<2x32xf32>
    %51 = arith.divf %49, %50 : vector<2x32xf32>
    %52 = vector.extract_strided_slice %39 {offsets = [0, 64], sizes = [2, 32], strides = [1, 1]} : vector<2x128xf32> to vector<2x32xf32>
    %53 = math.tanh %52 : vector<2x32xf32>
    %54 = vector.extract_strided_slice %39 {offsets = [0, 96], sizes = [2, 32], strides = [1, 1]} : vector<2x128xf32> to vector<2x32xf32>
    %55 = arith.negf %54 : vector<2x32xf32>
    %56 = math.exp %55 : vector<2x32xf32>
    %cst_16 = arith.constant 1.000000e+00 : f32
    %57 = vector.broadcast %cst_16 : f32 to vector<2x32xf32>
    %58 = arith.addf %57, %56 : vector<2x32xf32>
    %59 = arith.divf %57, %58 : vector<2x32xf32>
    %60 = arith.mulf %51, %34 : vector<2x32xf32>
    %61 = arith.mulf %45, %53 : vector<2x32xf32>
    %62 = arith.addf %60, %61 : vector<2x32xf32>
    %63 = math.tanh %62 : vector<2x32xf32>
    %64 = arith.mulf %59, %63 : vector<2x32xf32>
    %65 = vector.extract_strided_slice %5 {offsets = [4, 0], sizes = [2, 128], strides = [1, 1]} : vector<16x128xf32> to vector<2x128xf32>
    %cst_17 = arith.constant dense<0.000000e+00> : vector<2x128xf32>
    %66 = tpu.matmul %64, %6, %cst_17 {dimension_numbers = #tpu.dot_dimension_numbers<[1], [0], [0], [1], [0, 0, 1, 1], [], []>} : vector<2x32xf32>, vector<32x128xf32>, vector<2x128xf32> -> vector<2x128xf32>
    %67 = arith.addf %65, %66 : vector<2x128xf32>
    %68 = vector.extract_strided_slice %67 {offsets = [0, 0], sizes = [2, 32], strides = [1, 1]} : vector<2x128xf32> to vector<2x32xf32>
    %69 = arith.negf %68 : vector<2x32xf32>
    %70 = math.exp %69 : vector<2x32xf32>
    %cst_18 = arith.constant 1.000000e+00 : f32
    %71 = vector.broadcast %cst_18 : f32 to vector<2x32xf32>
    %72 = arith.addf %71, %70 : vector<2x32xf32>
    %73 = arith.divf %71, %72 : vector<2x32xf32>
    %74 = vector.extract_strided_slice %67 {offsets = [0, 32], sizes = [2, 32], strides = [1, 1]} : vector<2x128xf32> to vector<2x32xf32>
    %75 = arith.negf %74 : vector<2x32xf32>
    %76 = math.exp %75 : vector<2x32xf32>
    %cst_19 = arith.constant 1.000000e+00 : f32
    %77 = vector.broadcast %cst_19 : f32 to vector<2x32xf32>
    %78 = arith.addf %77, %76 : vector<2x32xf32>
    %79 = arith.divf %77, %78 : vector<2x32xf32>
    %80 = vector.extract_strided_slice %67 {offsets = [0, 64], sizes = [2, 32], strides = [1, 1]} : vector<2x128xf32> to vector<2x32xf32>
    %81 = math.tanh %80 : vector<2x32xf32>
    %82 = vector.extract_strided_slice %67 {offsets = [0, 96], sizes = [2, 32], strides = [1, 1]} : vector<2x128xf32> to vector<2x32xf32>
    %83 = arith.negf %82 : vector<2x32xf32>
    %84 = math.exp %83 : vector<2x32xf32>
    %cst_20 = arith.constant 1.000000e+00 : f32
    %85 = vector.broadcast %cst_20 : f32 to vector<2x32xf32>
    %86 = arith.addf %85, %84 : vector<2x32xf32>
    %87 = arith.divf %85, %86 : vector<2x32xf32>
    %88 = arith.mulf %79, %62 : vector<2x32xf32>
    %89 = arith.mulf %73, %81 : vector<2x32xf32>
    %90 = arith.addf %88, %89 : vector<2x32xf32>
    %91 = math.tanh %90 : vector<2x32xf32>
    %92 = arith.mulf %87, %91 : vector<2x32xf32>
    %93 = vector.extract_strided_slice %5 {offsets = [6, 0], sizes = [2, 128], strides = [1, 1]} : vector<16x128xf32> to vector<2x128xf32>
    %cst_21 = arith.constant dense<0.000000e+00> : vector<2x128xf32>
    %94 = tpu.matmul %92, %6, %cst_21 {dimension_numbers = #tpu.dot_dimension_numbers<[1], [0], [0], [1], [0, 0, 1, 1], [], []>} : vector<2x32xf32>, vector<32x128xf32>, vector<2x128xf32> -> vector<2x128xf32>
    %95 = arith.addf %93, %94 : vector<2x128xf32>
    %96 = vector.extract_strided_slice %95 {offsets = [0, 0], sizes = [2, 32], strides = [1, 1]} : vector<2x128xf32> to vector<2x32xf32>
    %97 = arith.negf %96 : vector<2x32xf32>
    %98 = math.exp %97 : vector<2x32xf32>
    %cst_22 = arith.constant 1.000000e+00 : f32
    %99 = vector.broadcast %cst_22 : f32 to vector<2x32xf32>
    %100 = arith.addf %99, %98 : vector<2x32xf32>
    %101 = arith.divf %99, %100 : vector<2x32xf32>
    %102 = vector.extract_strided_slice %95 {offsets = [0, 32], sizes = [2, 32], strides = [1, 1]} : vector<2x128xf32> to vector<2x32xf32>
    %103 = arith.negf %102 : vector<2x32xf32>
    %104 = math.exp %103 : vector<2x32xf32>
    %cst_23 = arith.constant 1.000000e+00 : f32
    %105 = vector.broadcast %cst_23 : f32 to vector<2x32xf32>
    %106 = arith.addf %105, %104 : vector<2x32xf32>
    %107 = arith.divf %105, %106 : vector<2x32xf32>
    %108 = vector.extract_strided_slice %95 {offsets = [0, 64], sizes = [2, 32], strides = [1, 1]} : vector<2x128xf32> to vector<2x32xf32>
    %109 = math.tanh %108 : vector<2x32xf32>
    %110 = vector.extract_strided_slice %95 {offsets = [0, 96], sizes = [2, 32], strides = [1, 1]} : vector<2x128xf32> to vector<2x32xf32>
    %111 = arith.negf %110 : vector<2x32xf32>
    %112 = math.exp %111 : vector<2x32xf32>
    %cst_24 = arith.constant 1.000000e+00 : f32
    %113 = vector.broadcast %cst_24 : f32 to vector<2x32xf32>
    %114 = arith.addf %113, %112 : vector<2x32xf32>
    %115 = arith.divf %113, %114 : vector<2x32xf32>
    %116 = arith.mulf %107, %90 : vector<2x32xf32>
    %117 = arith.mulf %101, %109 : vector<2x32xf32>
    %118 = arith.addf %116, %117 : vector<2x32xf32>
    %119 = math.tanh %118 : vector<2x32xf32>
    %120 = arith.mulf %115, %119 : vector<2x32xf32>
    %121 = vector.extract_strided_slice %5 {offsets = [8, 0], sizes = [2, 128], strides = [1, 1]} : vector<16x128xf32> to vector<2x128xf32>
    %cst_25 = arith.constant dense<0.000000e+00> : vector<2x128xf32>
    %122 = tpu.matmul %120, %6, %cst_25 {dimension_numbers = #tpu.dot_dimension_numbers<[1], [0], [0], [1], [0, 0, 1, 1], [], []>} : vector<2x32xf32>, vector<32x128xf32>, vector<2x128xf32> -> vector<2x128xf32>
    %123 = arith.addf %121, %122 : vector<2x128xf32>
    %124 = vector.extract_strided_slice %123 {offsets = [0, 0], sizes = [2, 32], strides = [1, 1]} : vector<2x128xf32> to vector<2x32xf32>
    %125 = arith.negf %124 : vector<2x32xf32>
    %126 = math.exp %125 : vector<2x32xf32>
    %cst_26 = arith.constant 1.000000e+00 : f32
    %127 = vector.broadcast %cst_26 : f32 to vector<2x32xf32>
    %128 = arith.addf %127, %126 : vector<2x32xf32>
    %129 = arith.divf %127, %128 : vector<2x32xf32>
    %130 = vector.extract_strided_slice %123 {offsets = [0, 32], sizes = [2, 32], strides = [1, 1]} : vector<2x128xf32> to vector<2x32xf32>
    %131 = arith.negf %130 : vector<2x32xf32>
    %132 = math.exp %131 : vector<2x32xf32>
    %cst_27 = arith.constant 1.000000e+00 : f32
    %133 = vector.broadcast %cst_27 : f32 to vector<2x32xf32>
    %134 = arith.addf %133, %132 : vector<2x32xf32>
    %135 = arith.divf %133, %134 : vector<2x32xf32>
    %136 = vector.extract_strided_slice %123 {offsets = [0, 64], sizes = [2, 32], strides = [1, 1]} : vector<2x128xf32> to vector<2x32xf32>
    %137 = math.tanh %136 : vector<2x32xf32>
    %138 = vector.extract_strided_slice %123 {offsets = [0, 96], sizes = [2, 32], strides = [1, 1]} : vector<2x128xf32> to vector<2x32xf32>
    %139 = arith.negf %138 : vector<2x32xf32>
    %140 = math.exp %139 : vector<2x32xf32>
    %cst_28 = arith.constant 1.000000e+00 : f32
    %141 = vector.broadcast %cst_28 : f32 to vector<2x32xf32>
    %142 = arith.addf %141, %140 : vector<2x32xf32>
    %143 = arith.divf %141, %142 : vector<2x32xf32>
    %144 = arith.mulf %135, %118 : vector<2x32xf32>
    %145 = arith.mulf %129, %137 : vector<2x32xf32>
    %146 = arith.addf %144, %145 : vector<2x32xf32>
    %147 = math.tanh %146 : vector<2x32xf32>
    %148 = arith.mulf %143, %147 : vector<2x32xf32>
    %149 = vector.extract_strided_slice %5 {offsets = [10, 0], sizes = [2, 128], strides = [1, 1]} : vector<16x128xf32> to vector<2x128xf32>
    %cst_29 = arith.constant dense<0.000000e+00> : vector<2x128xf32>
    %150 = tpu.matmul %148, %6, %cst_29 {dimension_numbers = #tpu.dot_dimension_numbers<[1], [0], [0], [1], [0, 0, 1, 1], [], []>} : vector<2x32xf32>, vector<32x128xf32>, vector<2x128xf32> -> vector<2x128xf32>
    %151 = arith.addf %149, %150 : vector<2x128xf32>
    %152 = vector.extract_strided_slice %151 {offsets = [0, 0], sizes = [2, 32], strides = [1, 1]} : vector<2x128xf32> to vector<2x32xf32>
    %153 = arith.negf %152 : vector<2x32xf32>
    %154 = math.exp %153 : vector<2x32xf32>
    %cst_30 = arith.constant 1.000000e+00 : f32
    %155 = vector.broadcast %cst_30 : f32 to vector<2x32xf32>
    %156 = arith.addf %155, %154 : vector<2x32xf32>
    %157 = arith.divf %155, %156 : vector<2x32xf32>
    %158 = vector.extract_strided_slice %151 {offsets = [0, 32], sizes = [2, 32], strides = [1, 1]} : vector<2x128xf32> to vector<2x32xf32>
    %159 = arith.negf %158 : vector<2x32xf32>
    %160 = math.exp %159 : vector<2x32xf32>
    %cst_31 = arith.constant 1.000000e+00 : f32
    %161 = vector.broadcast %cst_31 : f32 to vector<2x32xf32>
    %162 = arith.addf %161, %160 : vector<2x32xf32>
    %163 = arith.divf %161, %162 : vector<2x32xf32>
    %164 = vector.extract_strided_slice %151 {offsets = [0, 64], sizes = [2, 32], strides = [1, 1]} : vector<2x128xf32> to vector<2x32xf32>
    %165 = math.tanh %164 : vector<2x32xf32>
    %166 = vector.extract_strided_slice %151 {offsets = [0, 96], sizes = [2, 32], strides = [1, 1]} : vector<2x128xf32> to vector<2x32xf32>
    %167 = arith.negf %166 : vector<2x32xf32>
    %168 = math.exp %167 : vector<2x32xf32>
    %cst_32 = arith.constant 1.000000e+00 : f32
    %169 = vector.broadcast %cst_32 : f32 to vector<2x32xf32>
    %170 = arith.addf %169, %168 : vector<2x32xf32>
    %171 = arith.divf %169, %170 : vector<2x32xf32>
    %172 = arith.mulf %163, %146 : vector<2x32xf32>
    %173 = arith.mulf %157, %165 : vector<2x32xf32>
    %174 = arith.addf %172, %173 : vector<2x32xf32>
    %175 = math.tanh %174 : vector<2x32xf32>
    %176 = arith.mulf %171, %175 : vector<2x32xf32>
    %177 = vector.extract_strided_slice %5 {offsets = [12, 0], sizes = [2, 128], strides = [1, 1]} : vector<16x128xf32> to vector<2x128xf32>
    %cst_33 = arith.constant dense<0.000000e+00> : vector<2x128xf32>
    %178 = tpu.matmul %176, %6, %cst_33 {dimension_numbers = #tpu.dot_dimension_numbers<[1], [0], [0], [1], [0, 0, 1, 1], [], []>} : vector<2x32xf32>, vector<32x128xf32>, vector<2x128xf32> -> vector<2x128xf32>
    %179 = arith.addf %177, %178 : vector<2x128xf32>
    %180 = vector.extract_strided_slice %179 {offsets = [0, 0], sizes = [2, 32], strides = [1, 1]} : vector<2x128xf32> to vector<2x32xf32>
    %181 = arith.negf %180 : vector<2x32xf32>
    %182 = math.exp %181 : vector<2x32xf32>
    %cst_34 = arith.constant 1.000000e+00 : f32
    %183 = vector.broadcast %cst_34 : f32 to vector<2x32xf32>
    %184 = arith.addf %183, %182 : vector<2x32xf32>
    %185 = arith.divf %183, %184 : vector<2x32xf32>
    %186 = vector.extract_strided_slice %179 {offsets = [0, 32], sizes = [2, 32], strides = [1, 1]} : vector<2x128xf32> to vector<2x32xf32>
    %187 = arith.negf %186 : vector<2x32xf32>
    %188 = math.exp %187 : vector<2x32xf32>
    %cst_35 = arith.constant 1.000000e+00 : f32
    %189 = vector.broadcast %cst_35 : f32 to vector<2x32xf32>
    %190 = arith.addf %189, %188 : vector<2x32xf32>
    %191 = arith.divf %189, %190 : vector<2x32xf32>
    %192 = vector.extract_strided_slice %179 {offsets = [0, 64], sizes = [2, 32], strides = [1, 1]} : vector<2x128xf32> to vector<2x32xf32>
    %193 = math.tanh %192 : vector<2x32xf32>
    %194 = vector.extract_strided_slice %179 {offsets = [0, 96], sizes = [2, 32], strides = [1, 1]} : vector<2x128xf32> to vector<2x32xf32>
    %195 = arith.negf %194 : vector<2x32xf32>
    %196 = math.exp %195 : vector<2x32xf32>
    %cst_36 = arith.constant 1.000000e+00 : f32
    %197 = vector.broadcast %cst_36 : f32 to vector<2x32xf32>
    %198 = arith.addf %197, %196 : vector<2x32xf32>
    %199 = arith.divf %197, %198 : vector<2x32xf32>
    %200 = arith.mulf %191, %174 : vector<2x32xf32>
    %201 = arith.mulf %185, %193 : vector<2x32xf32>
    %202 = arith.addf %200, %201 : vector<2x32xf32>
    %203 = math.tanh %202 : vector<2x32xf32>
    %204 = arith.mulf %199, %203 : vector<2x32xf32>
    %205 = vector.extract_strided_slice %5 {offsets = [14, 0], sizes = [2, 128], strides = [1, 1]} : vector<16x128xf32> to vector<2x128xf32>
    %cst_37 = arith.constant dense<0.000000e+00> : vector<2x128xf32>
    %206 = tpu.matmul %204, %6, %cst_37 {dimension_numbers = #tpu.dot_dimension_numbers<[1], [0], [0], [1], [0, 0, 1, 1], [], []>} : vector<2x32xf32>, vector<32x128xf32>, vector<2x128xf32> -> vector<2x128xf32>
    %207 = arith.addf %205, %206 : vector<2x128xf32>
    %208 = vector.extract_strided_slice %207 {offsets = [0, 0], sizes = [2, 32], strides = [1, 1]} : vector<2x128xf32> to vector<2x32xf32>
    %209 = arith.negf %208 : vector<2x32xf32>
    %210 = math.exp %209 : vector<2x32xf32>
    %cst_38 = arith.constant 1.000000e+00 : f32
    %211 = vector.broadcast %cst_38 : f32 to vector<2x32xf32>
    %212 = arith.addf %211, %210 : vector<2x32xf32>
    %213 = arith.divf %211, %212 : vector<2x32xf32>
    %214 = vector.extract_strided_slice %207 {offsets = [0, 32], sizes = [2, 32], strides = [1, 1]} : vector<2x128xf32> to vector<2x32xf32>
    %215 = arith.negf %214 : vector<2x32xf32>
    %216 = math.exp %215 : vector<2x32xf32>
    %cst_39 = arith.constant 1.000000e+00 : f32
    %217 = vector.broadcast %cst_39 : f32 to vector<2x32xf32>
    %218 = arith.addf %217, %216 : vector<2x32xf32>
    %219 = arith.divf %217, %218 : vector<2x32xf32>
    %220 = vector.extract_strided_slice %207 {offsets = [0, 64], sizes = [2, 32], strides = [1, 1]} : vector<2x128xf32> to vector<2x32xf32>
    %221 = math.tanh %220 : vector<2x32xf32>
    %222 = vector.extract_strided_slice %207 {offsets = [0, 96], sizes = [2, 32], strides = [1, 1]} : vector<2x128xf32> to vector<2x32xf32>
    %223 = arith.negf %222 : vector<2x32xf32>
    %224 = math.exp %223 : vector<2x32xf32>
    %cst_40 = arith.constant 1.000000e+00 : f32
    %225 = vector.broadcast %cst_40 : f32 to vector<2x32xf32>
    %226 = arith.addf %225, %224 : vector<2x32xf32>
    %227 = arith.divf %225, %226 : vector<2x32xf32>
    %228 = arith.mulf %219, %202 : vector<2x32xf32>
    %229 = arith.mulf %213, %221 : vector<2x32xf32>
    %230 = arith.addf %228, %229 : vector<2x32xf32>
    %231 = math.tanh %230 : vector<2x32xf32>
    %232 = arith.mulf %227, %231 : vector<2x32xf32>
    %233 = tpu.concatenate %36, %64, %92, %120, %148, %176, %204, %232 in 0 : vector<2x32xf32>, vector<2x32xf32>, vector<2x32xf32>, vector<2x32xf32>, vector<2x32xf32>, vector<2x32xf32>, vector<2x32xf32>, vector<2x32xf32> -> vector<16x32xf32>
    %c0_41 = arith.constant 0 : index
    %c0_42 = arith.constant 0 : index
    %234 = vector.load %arg7[%c0_41, %c0_42] : memref<32x128xf32, #tpu.memory_space<vmem>>, vector<32x128xf32>
    %cst_43 = arith.constant dense<0.000000e+00> : vector<16x128xf32>
    %235 = tpu.matmul %233, %234, %cst_43 {dimension_numbers = #tpu.dot_dimension_numbers<[1], [0], [0], [1], [0, 0, 1, 1], [], []>} : vector<16x32xf32>, vector<32x128xf32>, vector<16x128xf32> -> vector<16x128xf32>
    %c0_44 = arith.constant 0 : index
    %c0_45 = arith.constant 0 : index
    %236 = vector.load %arg9[%c0_44, %c0_45] : memref<1x128xf32, #tpu.memory_space<vmem>>, vector<1x128xf32>
    %237 = vector.broadcast %236 : vector<1x128xf32> to vector<16x128xf32>
    %238 = arith.addf %235, %237 : vector<16x128xf32>
    %c0_46 = arith.constant 0 : index
    %c0_47 = arith.constant 0 : index
    %239 = vector.load %arg8[%c0_46, %c0_47] : memref<32x128xf32, #tpu.memory_space<vmem>>, vector<32x128xf32>
    %cst_48 = arith.constant 0.000000e+00 : f32
    %240 = vector.broadcast %cst_48 : f32 to vector<2x32xf32>
    %cst_49 = arith.constant 0.000000e+00 : f32
    %241 = vector.broadcast %cst_49 : f32 to vector<2x32xf32>
    %242 = vector.extract_strided_slice %238 {offsets = [0, 0], sizes = [2, 128], strides = [1, 1]} : vector<16x128xf32> to vector<2x128xf32>
    %cst_50 = arith.constant dense<0.000000e+00> : vector<2x128xf32>
    %243 = tpu.matmul %240, %239, %cst_50 {dimension_numbers = #tpu.dot_dimension_numbers<[1], [0], [0], [1], [0, 0, 1, 1], [], []>} : vector<2x32xf32>, vector<32x128xf32>, vector<2x128xf32> -> vector<2x128xf32>
    %244 = arith.addf %242, %243 : vector<2x128xf32>
    %245 = vector.extract_strided_slice %244 {offsets = [0, 0], sizes = [2, 32], strides = [1, 1]} : vector<2x128xf32> to vector<2x32xf32>
    %246 = arith.negf %245 : vector<2x32xf32>
    %247 = math.exp %246 : vector<2x32xf32>
    %cst_51 = arith.constant 1.000000e+00 : f32
    %248 = vector.broadcast %cst_51 : f32 to vector<2x32xf32>
    %249 = arith.addf %248, %247 : vector<2x32xf32>
    %250 = arith.divf %248, %249 : vector<2x32xf32>
    %251 = vector.extract_strided_slice %244 {offsets = [0, 32], sizes = [2, 32], strides = [1, 1]} : vector<2x128xf32> to vector<2x32xf32>
    %252 = arith.negf %251 : vector<2x32xf32>
    %253 = math.exp %252 : vector<2x32xf32>
    %cst_52 = arith.constant 1.000000e+00 : f32
    %254 = vector.broadcast %cst_52 : f32 to vector<2x32xf32>
    %255 = arith.addf %254, %253 : vector<2x32xf32>
    %256 = arith.divf %254, %255 : vector<2x32xf32>
    %257 = vector.extract_strided_slice %244 {offsets = [0, 64], sizes = [2, 32], strides = [1, 1]} : vector<2x128xf32> to vector<2x32xf32>
    %258 = math.tanh %257 : vector<2x32xf32>
    %259 = vector.extract_strided_slice %244 {offsets = [0, 96], sizes = [2, 32], strides = [1, 1]} : vector<2x128xf32> to vector<2x32xf32>
    %260 = arith.negf %259 : vector<2x32xf32>
    %261 = math.exp %260 : vector<2x32xf32>
    %cst_53 = arith.constant 1.000000e+00 : f32
    %262 = vector.broadcast %cst_53 : f32 to vector<2x32xf32>
    %263 = arith.addf %262, %261 : vector<2x32xf32>
    %264 = arith.divf %262, %263 : vector<2x32xf32>
    %265 = arith.mulf %256, %241 : vector<2x32xf32>
    %266 = arith.mulf %250, %258 : vector<2x32xf32>
    %267 = arith.addf %265, %266 : vector<2x32xf32>
    %268 = math.tanh %267 : vector<2x32xf32>
    %269 = arith.mulf %264, %268 : vector<2x32xf32>
    %270 = vector.extract_strided_slice %238 {offsets = [2, 0], sizes = [2, 128], strides = [1, 1]} : vector<16x128xf32> to vector<2x128xf32>
    %cst_54 = arith.constant dense<0.000000e+00> : vector<2x128xf32>
    %271 = tpu.matmul %269, %239, %cst_54 {dimension_numbers = #tpu.dot_dimension_numbers<[1], [0], [0], [1], [0, 0, 1, 1], [], []>} : vector<2x32xf32>, vector<32x128xf32>, vector<2x128xf32> -> vector<2x128xf32>
    %272 = arith.addf %270, %271 : vector<2x128xf32>
    %273 = vector.extract_strided_slice %272 {offsets = [0, 0], sizes = [2, 32], strides = [1, 1]} : vector<2x128xf32> to vector<2x32xf32>
    %274 = arith.negf %273 : vector<2x32xf32>
    %275 = math.exp %274 : vector<2x32xf32>
    %cst_55 = arith.constant 1.000000e+00 : f32
    %276 = vector.broadcast %cst_55 : f32 to vector<2x32xf32>
    %277 = arith.addf %276, %275 : vector<2x32xf32>
    %278 = arith.divf %276, %277 : vector<2x32xf32>
    %279 = vector.extract_strided_slice %272 {offsets = [0, 32], sizes = [2, 32], strides = [1, 1]} : vector<2x128xf32> to vector<2x32xf32>
    %280 = arith.negf %279 : vector<2x32xf32>
    %281 = math.exp %280 : vector<2x32xf32>
    %cst_56 = arith.constant 1.000000e+00 : f32
    %282 = vector.broadcast %cst_56 : f32 to vector<2x32xf32>
    %283 = arith.addf %282, %281 : vector<2x32xf32>
    %284 = arith.divf %282, %283 : vector<2x32xf32>
    %285 = vector.extract_strided_slice %272 {offsets = [0, 64], sizes = [2, 32], strides = [1, 1]} : vector<2x128xf32> to vector<2x32xf32>
    %286 = math.tanh %285 : vector<2x32xf32>
    %287 = vector.extract_strided_slice %272 {offsets = [0, 96], sizes = [2, 32], strides = [1, 1]} : vector<2x128xf32> to vector<2x32xf32>
    %288 = arith.negf %287 : vector<2x32xf32>
    %289 = math.exp %288 : vector<2x32xf32>
    %cst_57 = arith.constant 1.000000e+00 : f32
    %290 = vector.broadcast %cst_57 : f32 to vector<2x32xf32>
    %291 = arith.addf %290, %289 : vector<2x32xf32>
    %292 = arith.divf %290, %291 : vector<2x32xf32>
    %293 = arith.mulf %284, %267 : vector<2x32xf32>
    %294 = arith.mulf %278, %286 : vector<2x32xf32>
    %295 = arith.addf %293, %294 : vector<2x32xf32>
    %296 = math.tanh %295 : vector<2x32xf32>
    %297 = arith.mulf %292, %296 : vector<2x32xf32>
    %298 = vector.extract_strided_slice %238 {offsets = [4, 0], sizes = [2, 128], strides = [1, 1]} : vector<16x128xf32> to vector<2x128xf32>
    %cst_58 = arith.constant dense<0.000000e+00> : vector<2x128xf32>
    %299 = tpu.matmul %297, %239, %cst_58 {dimension_numbers = #tpu.dot_dimension_numbers<[1], [0], [0], [1], [0, 0, 1, 1], [], []>} : vector<2x32xf32>, vector<32x128xf32>, vector<2x128xf32> -> vector<2x128xf32>
    %300 = arith.addf %298, %299 : vector<2x128xf32>
    %301 = vector.extract_strided_slice %300 {offsets = [0, 0], sizes = [2, 32], strides = [1, 1]} : vector<2x128xf32> to vector<2x32xf32>
    %302 = arith.negf %301 : vector<2x32xf32>
    %303 = math.exp %302 : vector<2x32xf32>
    %cst_59 = arith.constant 1.000000e+00 : f32
    %304 = vector.broadcast %cst_59 : f32 to vector<2x32xf32>
    %305 = arith.addf %304, %303 : vector<2x32xf32>
    %306 = arith.divf %304, %305 : vector<2x32xf32>
    %307 = vector.extract_strided_slice %300 {offsets = [0, 32], sizes = [2, 32], strides = [1, 1]} : vector<2x128xf32> to vector<2x32xf32>
    %308 = arith.negf %307 : vector<2x32xf32>
    %309 = math.exp %308 : vector<2x32xf32>
    %cst_60 = arith.constant 1.000000e+00 : f32
    %310 = vector.broadcast %cst_60 : f32 to vector<2x32xf32>
    %311 = arith.addf %310, %309 : vector<2x32xf32>
    %312 = arith.divf %310, %311 : vector<2x32xf32>
    %313 = vector.extract_strided_slice %300 {offsets = [0, 64], sizes = [2, 32], strides = [1, 1]} : vector<2x128xf32> to vector<2x32xf32>
    %314 = math.tanh %313 : vector<2x32xf32>
    %315 = vector.extract_strided_slice %300 {offsets = [0, 96], sizes = [2, 32], strides = [1, 1]} : vector<2x128xf32> to vector<2x32xf32>
    %316 = arith.negf %315 : vector<2x32xf32>
    %317 = math.exp %316 : vector<2x32xf32>
    %cst_61 = arith.constant 1.000000e+00 : f32
    %318 = vector.broadcast %cst_61 : f32 to vector<2x32xf32>
    %319 = arith.addf %318, %317 : vector<2x32xf32>
    %320 = arith.divf %318, %319 : vector<2x32xf32>
    %321 = arith.mulf %312, %295 : vector<2x32xf32>
    %322 = arith.mulf %306, %314 : vector<2x32xf32>
    %323 = arith.addf %321, %322 : vector<2x32xf32>
    %324 = math.tanh %323 : vector<2x32xf32>
    %325 = arith.mulf %320, %324 : vector<2x32xf32>
    %326 = vector.extract_strided_slice %238 {offsets = [6, 0], sizes = [2, 128], strides = [1, 1]} : vector<16x128xf32> to vector<2x128xf32>
    %cst_62 = arith.constant dense<0.000000e+00> : vector<2x128xf32>
    %327 = tpu.matmul %325, %239, %cst_62 {dimension_numbers = #tpu.dot_dimension_numbers<[1], [0], [0], [1], [0, 0, 1, 1], [], []>} : vector<2x32xf32>, vector<32x128xf32>, vector<2x128xf32> -> vector<2x128xf32>
    %328 = arith.addf %326, %327 : vector<2x128xf32>
    %329 = vector.extract_strided_slice %328 {offsets = [0, 0], sizes = [2, 32], strides = [1, 1]} : vector<2x128xf32> to vector<2x32xf32>
    %330 = arith.negf %329 : vector<2x32xf32>
    %331 = math.exp %330 : vector<2x32xf32>
    %cst_63 = arith.constant 1.000000e+00 : f32
    %332 = vector.broadcast %cst_63 : f32 to vector<2x32xf32>
    %333 = arith.addf %332, %331 : vector<2x32xf32>
    %334 = arith.divf %332, %333 : vector<2x32xf32>
    %335 = vector.extract_strided_slice %328 {offsets = [0, 32], sizes = [2, 32], strides = [1, 1]} : vector<2x128xf32> to vector<2x32xf32>
    %336 = arith.negf %335 : vector<2x32xf32>
    %337 = math.exp %336 : vector<2x32xf32>
    %cst_64 = arith.constant 1.000000e+00 : f32
    %338 = vector.broadcast %cst_64 : f32 to vector<2x32xf32>
    %339 = arith.addf %338, %337 : vector<2x32xf32>
    %340 = arith.divf %338, %339 : vector<2x32xf32>
    %341 = vector.extract_strided_slice %328 {offsets = [0, 64], sizes = [2, 32], strides = [1, 1]} : vector<2x128xf32> to vector<2x32xf32>
    %342 = math.tanh %341 : vector<2x32xf32>
    %343 = vector.extract_strided_slice %328 {offsets = [0, 96], sizes = [2, 32], strides = [1, 1]} : vector<2x128xf32> to vector<2x32xf32>
    %344 = arith.negf %343 : vector<2x32xf32>
    %345 = math.exp %344 : vector<2x32xf32>
    %cst_65 = arith.constant 1.000000e+00 : f32
    %346 = vector.broadcast %cst_65 : f32 to vector<2x32xf32>
    %347 = arith.addf %346, %345 : vector<2x32xf32>
    %348 = arith.divf %346, %347 : vector<2x32xf32>
    %349 = arith.mulf %340, %323 : vector<2x32xf32>
    %350 = arith.mulf %334, %342 : vector<2x32xf32>
    %351 = arith.addf %349, %350 : vector<2x32xf32>
    %352 = math.tanh %351 : vector<2x32xf32>
    %353 = arith.mulf %348, %352 : vector<2x32xf32>
    %354 = vector.extract_strided_slice %238 {offsets = [8, 0], sizes = [2, 128], strides = [1, 1]} : vector<16x128xf32> to vector<2x128xf32>
    %cst_66 = arith.constant dense<0.000000e+00> : vector<2x128xf32>
    %355 = tpu.matmul %353, %239, %cst_66 {dimension_numbers = #tpu.dot_dimension_numbers<[1], [0], [0], [1], [0, 0, 1, 1], [], []>} : vector<2x32xf32>, vector<32x128xf32>, vector<2x128xf32> -> vector<2x128xf32>
    %356 = arith.addf %354, %355 : vector<2x128xf32>
    %357 = vector.extract_strided_slice %356 {offsets = [0, 0], sizes = [2, 32], strides = [1, 1]} : vector<2x128xf32> to vector<2x32xf32>
    %358 = arith.negf %357 : vector<2x32xf32>
    %359 = math.exp %358 : vector<2x32xf32>
    %cst_67 = arith.constant 1.000000e+00 : f32
    %360 = vector.broadcast %cst_67 : f32 to vector<2x32xf32>
    %361 = arith.addf %360, %359 : vector<2x32xf32>
    %362 = arith.divf %360, %361 : vector<2x32xf32>
    %363 = vector.extract_strided_slice %356 {offsets = [0, 32], sizes = [2, 32], strides = [1, 1]} : vector<2x128xf32> to vector<2x32xf32>
    %364 = arith.negf %363 : vector<2x32xf32>
    %365 = math.exp %364 : vector<2x32xf32>
    %cst_68 = arith.constant 1.000000e+00 : f32
    %366 = vector.broadcast %cst_68 : f32 to vector<2x32xf32>
    %367 = arith.addf %366, %365 : vector<2x32xf32>
    %368 = arith.divf %366, %367 : vector<2x32xf32>
    %369 = vector.extract_strided_slice %356 {offsets = [0, 64], sizes = [2, 32], strides = [1, 1]} : vector<2x128xf32> to vector<2x32xf32>
    %370 = math.tanh %369 : vector<2x32xf32>
    %371 = vector.extract_strided_slice %356 {offsets = [0, 96], sizes = [2, 32], strides = [1, 1]} : vector<2x128xf32> to vector<2x32xf32>
    %372 = arith.negf %371 : vector<2x32xf32>
    %373 = math.exp %372 : vector<2x32xf32>
    %cst_69 = arith.constant 1.000000e+00 : f32
    %374 = vector.broadcast %cst_69 : f32 to vector<2x32xf32>
    %375 = arith.addf %374, %373 : vector<2x32xf32>
    %376 = arith.divf %374, %375 : vector<2x32xf32>
    %377 = arith.mulf %368, %351 : vector<2x32xf32>
    %378 = arith.mulf %362, %370 : vector<2x32xf32>
    %379 = arith.addf %377, %378 : vector<2x32xf32>
    %380 = math.tanh %379 : vector<2x32xf32>
    %381 = arith.mulf %376, %380 : vector<2x32xf32>
    %382 = vector.extract_strided_slice %238 {offsets = [10, 0], sizes = [2, 128], strides = [1, 1]} : vector<16x128xf32> to vector<2x128xf32>
    %cst_70 = arith.constant dense<0.000000e+00> : vector<2x128xf32>
    %383 = tpu.matmul %381, %239, %cst_70 {dimension_numbers = #tpu.dot_dimension_numbers<[1], [0], [0], [1], [0, 0, 1, 1], [], []>} : vector<2x32xf32>, vector<32x128xf32>, vector<2x128xf32> -> vector<2x128xf32>
    %384 = arith.addf %382, %383 : vector<2x128xf32>
    %385 = vector.extract_strided_slice %384 {offsets = [0, 0], sizes = [2, 32], strides = [1, 1]} : vector<2x128xf32> to vector<2x32xf32>
    %386 = arith.negf %385 : vector<2x32xf32>
    %387 = math.exp %386 : vector<2x32xf32>
    %cst_71 = arith.constant 1.000000e+00 : f32
    %388 = vector.broadcast %cst_71 : f32 to vector<2x32xf32>
    %389 = arith.addf %388, %387 : vector<2x32xf32>
    %390 = arith.divf %388, %389 : vector<2x32xf32>
    %391 = vector.extract_strided_slice %384 {offsets = [0, 32], sizes = [2, 32], strides = [1, 1]} : vector<2x128xf32> to vector<2x32xf32>
    %392 = arith.negf %391 : vector<2x32xf32>
    %393 = math.exp %392 : vector<2x32xf32>
    %cst_72 = arith.constant 1.000000e+00 : f32
    %394 = vector.broadcast %cst_72 : f32 to vector<2x32xf32>
    %395 = arith.addf %394, %393 : vector<2x32xf32>
    %396 = arith.divf %394, %395 : vector<2x32xf32>
    %397 = vector.extract_strided_slice %384 {offsets = [0, 64], sizes = [2, 32], strides = [1, 1]} : vector<2x128xf32> to vector<2x32xf32>
    %398 = math.tanh %397 : vector<2x32xf32>
    %399 = vector.extract_strided_slice %384 {offsets = [0, 96], sizes = [2, 32], strides = [1, 1]} : vector<2x128xf32> to vector<2x32xf32>
    %400 = arith.negf %399 : vector<2x32xf32>
    %401 = math.exp %400 : vector<2x32xf32>
    %cst_73 = arith.constant 1.000000e+00 : f32
    %402 = vector.broadcast %cst_73 : f32 to vector<2x32xf32>
    %403 = arith.addf %402, %401 : vector<2x32xf32>
    %404 = arith.divf %402, %403 : vector<2x32xf32>
    %405 = arith.mulf %396, %379 : vector<2x32xf32>
    %406 = arith.mulf %390, %398 : vector<2x32xf32>
    %407 = arith.addf %405, %406 : vector<2x32xf32>
    %408 = math.tanh %407 : vector<2x32xf32>
    %409 = arith.mulf %404, %408 : vector<2x32xf32>
    %410 = vector.extract_strided_slice %238 {offsets = [12, 0], sizes = [2, 128], strides = [1, 1]} : vector<16x128xf32> to vector<2x128xf32>
    %cst_74 = arith.constant dense<0.000000e+00> : vector<2x128xf32>
    %411 = tpu.matmul %409, %239, %cst_74 {dimension_numbers = #tpu.dot_dimension_numbers<[1], [0], [0], [1], [0, 0, 1, 1], [], []>} : vector<2x32xf32>, vector<32x128xf32>, vector<2x128xf32> -> vector<2x128xf32>
    %412 = arith.addf %410, %411 : vector<2x128xf32>
    %413 = vector.extract_strided_slice %412 {offsets = [0, 0], sizes = [2, 32], strides = [1, 1]} : vector<2x128xf32> to vector<2x32xf32>
    %414 = arith.negf %413 : vector<2x32xf32>
    %415 = math.exp %414 : vector<2x32xf32>
    %cst_75 = arith.constant 1.000000e+00 : f32
    %416 = vector.broadcast %cst_75 : f32 to vector<2x32xf32>
    %417 = arith.addf %416, %415 : vector<2x32xf32>
    %418 = arith.divf %416, %417 : vector<2x32xf32>
    %419 = vector.extract_strided_slice %412 {offsets = [0, 32], sizes = [2, 32], strides = [1, 1]} : vector<2x128xf32> to vector<2x32xf32>
    %420 = arith.negf %419 : vector<2x32xf32>
    %421 = math.exp %420 : vector<2x32xf32>
    %cst_76 = arith.constant 1.000000e+00 : f32
    %422 = vector.broadcast %cst_76 : f32 to vector<2x32xf32>
    %423 = arith.addf %422, %421 : vector<2x32xf32>
    %424 = arith.divf %422, %423 : vector<2x32xf32>
    %425 = vector.extract_strided_slice %412 {offsets = [0, 64], sizes = [2, 32], strides = [1, 1]} : vector<2x128xf32> to vector<2x32xf32>
    %426 = math.tanh %425 : vector<2x32xf32>
    %427 = vector.extract_strided_slice %412 {offsets = [0, 96], sizes = [2, 32], strides = [1, 1]} : vector<2x128xf32> to vector<2x32xf32>
    %428 = arith.negf %427 : vector<2x32xf32>
    %429 = math.exp %428 : vector<2x32xf32>
    %cst_77 = arith.constant 1.000000e+00 : f32
    %430 = vector.broadcast %cst_77 : f32 to vector<2x32xf32>
    %431 = arith.addf %430, %429 : vector<2x32xf32>
    %432 = arith.divf %430, %431 : vector<2x32xf32>
    %433 = arith.mulf %424, %407 : vector<2x32xf32>
    %434 = arith.mulf %418, %426 : vector<2x32xf32>
    %435 = arith.addf %433, %434 : vector<2x32xf32>
    %436 = math.tanh %435 : vector<2x32xf32>
    %437 = arith.mulf %432, %436 : vector<2x32xf32>
    %438 = vector.extract_strided_slice %238 {offsets = [14, 0], sizes = [2, 128], strides = [1, 1]} : vector<16x128xf32> to vector<2x128xf32>
    %cst_78 = arith.constant dense<0.000000e+00> : vector<2x128xf32>
    %439 = tpu.matmul %437, %239, %cst_78 {dimension_numbers = #tpu.dot_dimension_numbers<[1], [0], [0], [1], [0, 0, 1, 1], [], []>} : vector<2x32xf32>, vector<32x128xf32>, vector<2x128xf32> -> vector<2x128xf32>
    %440 = arith.addf %438, %439 : vector<2x128xf32>
    %441 = vector.extract_strided_slice %440 {offsets = [0, 0], sizes = [2, 32], strides = [1, 1]} : vector<2x128xf32> to vector<2x32xf32>
    %442 = arith.negf %441 : vector<2x32xf32>
    %443 = math.exp %442 : vector<2x32xf32>
    %cst_79 = arith.constant 1.000000e+00 : f32
    %444 = vector.broadcast %cst_79 : f32 to vector<2x32xf32>
    %445 = arith.addf %444, %443 : vector<2x32xf32>
    %446 = arith.divf %444, %445 : vector<2x32xf32>
    %447 = vector.extract_strided_slice %440 {offsets = [0, 32], sizes = [2, 32], strides = [1, 1]} : vector<2x128xf32> to vector<2x32xf32>
    %448 = arith.negf %447 : vector<2x32xf32>
    %449 = math.exp %448 : vector<2x32xf32>
    %cst_80 = arith.constant 1.000000e+00 : f32
    %450 = vector.broadcast %cst_80 : f32 to vector<2x32xf32>
    %451 = arith.addf %450, %449 : vector<2x32xf32>
    %452 = arith.divf %450, %451 : vector<2x32xf32>
    %453 = vector.extract_strided_slice %440 {offsets = [0, 64], sizes = [2, 32], strides = [1, 1]} : vector<2x128xf32> to vector<2x32xf32>
    %454 = math.tanh %453 : vector<2x32xf32>
    %455 = vector.extract_strided_slice %440 {offsets = [0, 96], sizes = [2, 32], strides = [1, 1]} : vector<2x128xf32> to vector<2x32xf32>
    %456 = arith.negf %455 : vector<2x32xf32>
    %457 = math.exp %456 : vector<2x32xf32>
    %cst_81 = arith.constant 1.000000e+00 : f32
    %458 = vector.broadcast %cst_81 : f32 to vector<2x32xf32>
    %459 = arith.addf %458, %457 : vector<2x32xf32>
    %460 = arith.divf %458, %459 : vector<2x32xf32>
    %461 = arith.mulf %452, %435 : vector<2x32xf32>
    %462 = arith.mulf %446, %454 : vector<2x32xf32>
    %463 = arith.addf %461, %462 : vector<2x32xf32>
    %464 = math.tanh %463 : vector<2x32xf32>
    %465 = arith.mulf %460, %464 : vector<2x32xf32>
    %c0_82 = arith.constant 0 : index
    %c0_83 = arith.constant 0 : index
    %466 = vector.load %arg1[%c0_82, %c0_83] : memref<2x16xf32, #tpu.memory_space<vmem>>, vector<2x16xf32>
    %c0_84 = arith.constant 0 : index
    %c0_85 = arith.constant 0 : index
    %467 = vector.load %arg10[%c0_84, %c0_85] : memref<16x32xf32, #tpu.memory_space<vmem>>, vector<16x32xf32>
    %cst_86 = arith.constant dense<0.000000e+00> : vector<2x32xf32>
    %468 = tpu.matmul %466, %467, %cst_86 {dimension_numbers = #tpu.dot_dimension_numbers<[1], [0], [0], [1], [0, 0, 1, 1], [], []>} : vector<2x16xf32>, vector<16x32xf32>, vector<2x32xf32> -> vector<2x32xf32>
    %c0_87 = arith.constant 0 : index
    %c0_88 = arith.constant 0 : index
    %469 = vector.load %arg11[%c0_87, %c0_88] : memref<1x32xf32, #tpu.memory_space<vmem>>, vector<1x32xf32>
    %470 = vector.broadcast %469 : vector<1x32xf32> to vector<2x32xf32>
    %471 = arith.addf %468, %470 : vector<2x32xf32>
    %cst_89 = arith.constant 0.000000e+00 : f32
    %472 = vector.broadcast %cst_89 : f32 to vector<2x32xf32>
    %473 = arith.maximumf %471, %472 : vector<2x32xf32>
    %c0_90 = arith.constant 0 : index
    %c0_91 = arith.constant 0 : index
    %474 = vector.load %arg12[%c0_90, %c0_91] : memref<32x32xf32, #tpu.memory_space<vmem>>, vector<32x32xf32>
    %cst_92 = arith.constant dense<0.000000e+00> : vector<2x32xf32>
    %475 = tpu.matmul %473, %474, %cst_92 {dimension_numbers = #tpu.dot_dimension_numbers<[1], [0], [0], [1], [0, 0, 1, 1], [], []>} : vector<2x32xf32>, vector<32x32xf32>, vector<2x32xf32> -> vector<2x32xf32>
    %c0_93 = arith.constant 0 : index
    %c0_94 = arith.constant 0 : index
    %476 = vector.load %arg13[%c0_93, %c0_94] : memref<1x32xf32, #tpu.memory_space<vmem>>, vector<1x32xf32>
    %477 = vector.broadcast %476 : vector<1x32xf32> to vector<2x32xf32>
    %478 = arith.addf %475, %477 : vector<2x32xf32>
    %cst_95 = arith.constant 0.000000e+00 : f32
    %479 = vector.broadcast %cst_95 : f32 to vector<2x32xf32>
    %480 = arith.maximumf %478, %479 : vector<2x32xf32>
    %c0_96 = arith.constant 0 : index
    %c0_97 = arith.constant 0 : index
    %481 = vector.load %arg2[%c0_96, %c0_97] : memref<16x32xf32, #tpu.memory_space<vmem>>, vector<16x32xf32>
    %cst_98 = arith.constant dense<0.000000e+00> : vector<16xf32>
    %482 = vector.multi_reduction <add>, %481, %cst_98 [1] : vector<16x32xf32> to vector<16xf32>
    %483 = vector.shape_cast %482 : vector<16xf32> to vector<16x1xf32>
    %cst_99 = arith.constant 3.200000e+01 : f32
    %484 = vector.broadcast %cst_99 : f32 to vector<16x1xf32>
    %485 = arith.divf %483, %484 : vector<16x1xf32>
    %486 = vector.broadcast %485 : vector<16x1xf32> to vector<16x32xf32>
    %487 = arith.subf %481, %486 : vector<16x32xf32>
    %488 = arith.mulf %487, %487 : vector<16x32xf32>
    %cst_100 = arith.constant dense<0.000000e+00> : vector<16xf32>
    %489 = vector.multi_reduction <add>, %488, %cst_100 [1] : vector<16x32xf32> to vector<16xf32>
    %490 = vector.shape_cast %489 : vector<16xf32> to vector<16x1xf32>
    %cst_101 = arith.constant 3.200000e+01 : f32
    %491 = vector.broadcast %cst_101 : f32 to vector<16x1xf32>
    %492 = arith.divf %490, %491 : vector<16x1xf32>
    %493 = vector.broadcast %485 : vector<16x1xf32> to vector<16x32xf32>
    %494 = arith.subf %481, %493 : vector<16x32xf32>
    %cst_102 = arith.constant 9.99999974E-6 : f32
    %495 = vector.broadcast %cst_102 : f32 to vector<16x1xf32>
    %496 = arith.addf %492, %495 : vector<16x1xf32>
    %497 = math.rsqrt %496 : vector<16x1xf32>
    %498 = vector.broadcast %497 : vector<16x1xf32> to vector<16x32xf32>
    %499 = arith.mulf %494, %498 : vector<16x32xf32>
    %c0_103 = arith.constant 0 : index
    %c0_104 = arith.constant 0 : index
    %500 = vector.load %arg14[%c0_103, %c0_104] : memref<1x32xf32, #tpu.memory_space<vmem>>, vector<1x32xf32>
    %501 = vector.broadcast %500 : vector<1x32xf32> to vector<16x32xf32>
    %502 = arith.mulf %499, %501 : vector<16x32xf32>
    %c0_105 = arith.constant 0 : index
    %c0_106 = arith.constant 0 : index
    %503 = vector.load %arg15[%c0_105, %c0_106] : memref<1x32xf32, #tpu.memory_space<vmem>>, vector<1x32xf32>
    %504 = vector.broadcast %503 : vector<1x32xf32> to vector<16x32xf32>
    %505 = arith.addf %502, %504 : vector<16x32xf32>
    %c0_107 = arith.constant 0 : index
    %c0_108 = arith.constant 0 : index
    %506 = vector.load %arg16[%c0_107, %c0_108] : memref<32x96xf32, #tpu.memory_space<vmem>>, vector<32x96xf32>
    %cst_109 = arith.constant dense<0.000000e+00> : vector<16x96xf32>
    %507 = tpu.matmul %505, %506, %cst_109 {dimension_numbers = #tpu.dot_dimension_numbers<[1], [0], [0], [1], [0, 0, 1, 1], [], []>} : vector<16x32xf32>, vector<32x96xf32>, vector<16x96xf32> -> vector<16x96xf32>
    %c0_110 = arith.constant 0 : index
    %c0_111 = arith.constant 0 : index
    %508 = vector.load %arg17[%c0_110, %c0_111] : memref<1x96xf32, #tpu.memory_space<vmem>>, vector<1x96xf32>
    %509 = vector.broadcast %508 : vector<1x96xf32> to vector<16x96xf32>
    %510 = arith.addf %507, %509 : vector<16x96xf32>
    %511 = vector.extract_strided_slice %510 {offsets = [0, 0], sizes = [16, 32], strides = [1, 1]} : vector<16x96xf32> to vector<16x32xf32>
    %512 = vector.extract_strided_slice %510 {offsets = [0, 32], sizes = [16, 32], strides = [1, 1]} : vector<16x96xf32> to vector<16x32xf32>
    %513 = vector.extract_strided_slice %510 {offsets = [0, 64], sizes = [16, 32], strides = [1, 1]} : vector<16x96xf32> to vector<16x32xf32>
    %cst_112 = arith.constant dense<0.000000e+00> : vector<16x16xf32>
    %514 = tpu.matmul %511, %512, %cst_112 {dimension_numbers = #tpu.dot_dimension_numbers<[1], [1], [0], [0], [0, 0, 1, 0], [], []>} : vector<16x32xf32>, vector<16x32xf32>, vector<16x16xf32> -> vector<16x16xf32>
    %cst_113 = arith.constant 0.176776692 : f32
    %515 = vector.broadcast %cst_113 : f32 to vector<16x16xf32>
    %516 = arith.mulf %514, %515 : vector<16x16xf32>
    %c0_114 = arith.constant 0 : index
    %c0_115 = arith.constant 0 : index
    %517 = vector.load %arg3[%c0_114, %c0_115] : memref<16x16xf32, #tpu.memory_space<vmem>>, vector<16x16xf32>
    %518 = arith.addf %516, %517 : vector<16x16xf32>
    %cst_116 = arith.constant dense<0xFF800000> : vector<16xf32>
    %519 = vector.multi_reduction <maximumf>, %518, %cst_116 [1] : vector<16x16xf32> to vector<16xf32>
    %cst_117 = arith.constant 0xFF800000 : f32
    %520 = vector.broadcast %cst_117 : f32 to vector<16xf32>
    %521 = arith.maximumf %520, %519 : vector<16xf32>
    %522 = vector.shape_cast %521 : vector<16xf32> to vector<16x1xf32>
    %523 = vector.broadcast %522 : vector<16x1xf32> to vector<16x16xf32>
    %524 = arith.subf %518, %523 : vector<16x16xf32>
    %525 = math.exp %524 : vector<16x16xf32>
    %cst_118 = arith.constant dense<0.000000e+00> : vector<16xf32>
    %526 = vector.multi_reduction <add>, %525, %cst_118 [1] : vector<16x16xf32> to vector<16xf32>
    %527 = vector.shape_cast %526 : vector<16xf32> to vector<16x1xf32>
    %528 = vector.broadcast %527 : vector<16x1xf32> to vector<16x16xf32>
    %529 = arith.divf %525, %528 : vector<16x16xf32>
    %cst_119 = arith.constant dense<0.000000e+00> : vector<16x32xf32>
    %530 = tpu.matmul %529, %513, %cst_119 {dimension_numbers = #tpu.dot_dimension_numbers<[1], [0], [0], [1], [0, 0, 1, 1], [], []>} : vector<16x16xf32>, vector<16x32xf32>, vector<16x32xf32> -> vector<16x32xf32>
    %c0_120 = arith.constant 0 : index
    %c0_121 = arith.constant 0 : index
    %531 = vector.load %arg18[%c0_120, %c0_121] : memref<32x32xf32, #tpu.memory_space<vmem>>, vector<32x32xf32>
    %cst_122 = arith.constant dense<0.000000e+00> : vector<16x32xf32>
    %532 = tpu.matmul %530, %531, %cst_122 {dimension_numbers = #tpu.dot_dimension_numbers<[1], [0], [0], [1], [0, 0, 1, 1], [], []>} : vector<16x32xf32>, vector<32x32xf32>, vector<16x32xf32> -> vector<16x32xf32>
    %c0_123 = arith.constant 0 : index
    %c0_124 = arith.constant 0 : index
    %533 = vector.load %arg19[%c0_123, %c0_124] : memref<1x32xf32, #tpu.memory_space<vmem>>, vector<1x32xf32>
    %534 = vector.broadcast %533 : vector<1x32xf32> to vector<16x32xf32>
    %535 = arith.addf %532, %534 : vector<16x32xf32>
    %536 = arith.addf %505, %535 : vector<16x32xf32>
    %cst_125 = arith.constant dense<0.000000e+00> : vector<16xf32>
    %537 = vector.multi_reduction <add>, %536, %cst_125 [1] : vector<16x32xf32> to vector<16xf32>
    %538 = vector.shape_cast %537 : vector<16xf32> to vector<16x1xf32>
    %cst_126 = arith.constant 3.200000e+01 : f32
    %539 = vector.broadcast %cst_126 : f32 to vector<16x1xf32>
    %540 = arith.divf %538, %539 : vector<16x1xf32>
    %541 = vector.broadcast %540 : vector<16x1xf32> to vector<16x32xf32>
    %542 = arith.subf %536, %541 : vector<16x32xf32>
    %543 = arith.mulf %542, %542 : vector<16x32xf32>
    %cst_127 = arith.constant dense<0.000000e+00> : vector<16xf32>
    %544 = vector.multi_reduction <add>, %543, %cst_127 [1] : vector<16x32xf32> to vector<16xf32>
    %545 = vector.shape_cast %544 : vector<16xf32> to vector<16x1xf32>
    %cst_128 = arith.constant 3.200000e+01 : f32
    %546 = vector.broadcast %cst_128 : f32 to vector<16x1xf32>
    %547 = arith.divf %545, %546 : vector<16x1xf32>
    %548 = vector.broadcast %540 : vector<16x1xf32> to vector<16x32xf32>
    %549 = arith.subf %536, %548 : vector<16x32xf32>
    %cst_129 = arith.constant 9.99999974E-6 : f32
    %550 = vector.broadcast %cst_129 : f32 to vector<16x1xf32>
    %551 = arith.addf %547, %550 : vector<16x1xf32>
    %552 = math.rsqrt %551 : vector<16x1xf32>
    %553 = vector.broadcast %552 : vector<16x1xf32> to vector<16x32xf32>
    %554 = arith.mulf %549, %553 : vector<16x32xf32>
    %c0_130 = arith.constant 0 : index
    %c0_131 = arith.constant 0 : index
    %555 = vector.load %arg20[%c0_130, %c0_131] : memref<1x32xf32, #tpu.memory_space<vmem>>, vector<1x32xf32>
    %556 = vector.broadcast %555 : vector<1x32xf32> to vector<16x32xf32>
    %557 = arith.mulf %554, %556 : vector<16x32xf32>
    %c0_132 = arith.constant 0 : index
    %c0_133 = arith.constant 0 : index
    %558 = vector.load %arg21[%c0_132, %c0_133] : memref<1x32xf32, #tpu.memory_space<vmem>>, vector<1x32xf32>
    %559 = vector.broadcast %558 : vector<1x32xf32> to vector<16x32xf32>
    %560 = arith.addf %557, %559 : vector<16x32xf32>
    %c0_134 = arith.constant 0 : index
    %c0_135 = arith.constant 0 : index
    %561 = vector.load %arg22[%c0_134, %c0_135] : memref<32x64xf32, #tpu.memory_space<vmem>>, vector<32x64xf32>
    %cst_136 = arith.constant dense<0.000000e+00> : vector<16x64xf32>
    %562 = tpu.matmul %560, %561, %cst_136 {dimension_numbers = #tpu.dot_dimension_numbers<[1], [0], [0], [1], [0, 0, 1, 1], [], []>} : vector<16x32xf32>, vector<32x64xf32>, vector<16x64xf32> -> vector<16x64xf32>
    %c0_137 = arith.constant 0 : index
    %c0_138 = arith.constant 0 : index
    %563 = vector.load %arg23[%c0_137, %c0_138] : memref<1x64xf32, #tpu.memory_space<vmem>>, vector<1x64xf32>
    %564 = vector.broadcast %563 : vector<1x64xf32> to vector<16x64xf32>
    %565 = arith.addf %562, %564 : vector<16x64xf32>
    %566 = arith.mulf %565, %565 : vector<16x64xf32>
    %567 = arith.mulf %565, %566 : vector<16x64xf32>
    %cst_139 = arith.constant 4.471500e-02 : f32
    %568 = vector.broadcast %cst_139 : f32 to vector<16x64xf32>
    %569 = arith.mulf %568, %567 : vector<16x64xf32>
    %570 = arith.addf %565, %569 : vector<16x64xf32>
    %cst_140 = arith.constant 0.797884583 : f32
    %571 = vector.broadcast %cst_140 : f32 to vector<16x64xf32>
    %572 = arith.mulf %571, %570 : vector<16x64xf32>
    %573 = math.tanh %572 : vector<16x64xf32>
    %cst_141 = arith.constant 1.000000e+00 : f32
    %574 = vector.broadcast %cst_141 : f32 to vector<16x64xf32>
    %575 = arith.addf %574, %573 : vector<16x64xf32>
    %cst_142 = arith.constant 5.000000e-01 : f32
    %576 = vector.broadcast %cst_142 : f32 to vector<16x64xf32>
    %577 = arith.mulf %576, %575 : vector<16x64xf32>
    %578 = arith.mulf %565, %577 : vector<16x64xf32>
    %c0_143 = arith.constant 0 : index
    %c0_144 = arith.constant 0 : index
    %579 = vector.load %arg24[%c0_143, %c0_144] : memref<64x32xf32, #tpu.memory_space<vmem>>, vector<64x32xf32>
    %cst_145 = arith.constant dense<0.000000e+00> : vector<16x32xf32>
    %580 = tpu.matmul %578, %579, %cst_145 {dimension_numbers = #tpu.dot_dimension_numbers<[1], [0], [0], [1], [0, 0, 1, 1], [], []>} : vector<16x64xf32>, vector<64x32xf32>, vector<16x32xf32> -> vector<16x32xf32>
    %c0_146 = arith.constant 0 : index
    %c0_147 = arith.constant 0 : index
    %581 = vector.load %arg25[%c0_146, %c0_147] : memref<1x32xf32, #tpu.memory_space<vmem>>, vector<1x32xf32>
    %582 = vector.broadcast %581 : vector<1x32xf32> to vector<16x32xf32>
    %583 = arith.addf %580, %582 : vector<16x32xf32>
    %584 = arith.addf %560, %583 : vector<16x32xf32>
    %cst_148 = arith.constant dense<0.000000e+00> : vector<16xf32>
    %585 = vector.multi_reduction <add>, %584, %cst_148 [1] : vector<16x32xf32> to vector<16xf32>
    %586 = vector.shape_cast %585 : vector<16xf32> to vector<16x1xf32>
    %cst_149 = arith.constant 3.200000e+01 : f32
    %587 = vector.broadcast %cst_149 : f32 to vector<16x1xf32>
    %588 = arith.divf %586, %587 : vector<16x1xf32>
    %589 = vector.broadcast %588 : vector<16x1xf32> to vector<16x32xf32>
    %590 = arith.subf %584, %589 : vector<16x32xf32>
    %591 = arith.mulf %590, %590 : vector<16x32xf32>
    %cst_150 = arith.constant dense<0.000000e+00> : vector<16xf32>
    %592 = vector.multi_reduction <add>, %591, %cst_150 [1] : vector<16x32xf32> to vector<16xf32>
    %593 = vector.shape_cast %592 : vector<16xf32> to vector<16x1xf32>
    %cst_151 = arith.constant 3.200000e+01 : f32
    %594 = vector.broadcast %cst_151 : f32 to vector<16x1xf32>
    %595 = arith.divf %593, %594 : vector<16x1xf32>
    %596 = vector.broadcast %588 : vector<16x1xf32> to vector<16x32xf32>
    %597 = arith.subf %584, %596 : vector<16x32xf32>
    %cst_152 = arith.constant 9.99999974E-6 : f32
    %598 = vector.broadcast %cst_152 : f32 to vector<16x1xf32>
    %599 = arith.addf %595, %598 : vector<16x1xf32>
    %600 = math.rsqrt %599 : vector<16x1xf32>
    %601 = vector.broadcast %600 : vector<16x1xf32> to vector<16x32xf32>
    %602 = arith.mulf %597, %601 : vector<16x32xf32>
    %c0_153 = arith.constant 0 : index
    %c0_154 = arith.constant 0 : index
    %603 = vector.load %arg26[%c0_153, %c0_154] : memref<1x32xf32, #tpu.memory_space<vmem>>, vector<1x32xf32>
    %604 = vector.broadcast %603 : vector<1x32xf32> to vector<16x32xf32>
    %605 = arith.mulf %602, %604 : vector<16x32xf32>
    %c0_155 = arith.constant 0 : index
    %c0_156 = arith.constant 0 : index
    %606 = vector.load %arg27[%c0_155, %c0_156] : memref<1x32xf32, #tpu.memory_space<vmem>>, vector<1x32xf32>
    %607 = vector.broadcast %606 : vector<1x32xf32> to vector<16x32xf32>
    %608 = arith.addf %605, %607 : vector<16x32xf32>
    %609 = vector.extract_strided_slice %608 {offsets = [0, 0], sizes = [1, 32], strides = [1, 1]} : vector<16x32xf32> to vector<1x32xf32>
    %610 = vector.extract_strided_slice %608 {offsets = [8, 0], sizes = [1, 32], strides = [1, 1]} : vector<16x32xf32> to vector<1x32xf32>
    %611 = tpu.concatenate %609, %610 in 0 : vector<1x32xf32>, vector<1x32xf32> -> vector<2x32xf32>
    %c0_157 = arith.constant 0 : index
    %c0_158 = arith.constant 0 : index
    %612 = vector.load %arg28[%c0_157, %c0_158] : memref<32x32xf32, #tpu.memory_space<vmem>>, vector<32x32xf32>
    %cst_159 = arith.constant dense<0.000000e+00> : vector<2x32xf32>
    %613 = tpu.matmul %611, %612, %cst_159 {dimension_numbers = #tpu.dot_dimension_numbers<[1], [0], [0], [1], [0, 0, 1, 1], [], []>} : vector<2x32xf32>, vector<32x32xf32>, vector<2x32xf32> -> vector<2x32xf32>
    %c0_160 = arith.constant 0 : index
    %c0_161 = arith.constant 0 : index
    %614 = vector.load %arg29[%c0_160, %c0_161] : memref<1x32xf32, #tpu.memory_space<vmem>>, vector<1x32xf32>
    %615 = vector.broadcast %614 : vector<1x32xf32> to vector<2x32xf32>
    %616 = arith.addf %613, %615 : vector<2x32xf32>
    %c0_162 = arith.constant 0 : index
    %c0_163 = arith.constant 0 : index
    %617 = vector.load %arg30[%c0_162, %c0_163] : memref<32x32xf32, #tpu.memory_space<vmem>>, vector<32x32xf32>
    %cst_164 = arith.constant dense<0.000000e+00> : vector<2x32xf32>
    %618 = tpu.matmul %465, %617, %cst_164 {dimension_numbers = #tpu.dot_dimension_numbers<[1], [0], [0], [1], [0, 0, 1, 1], [], []>} : vector<2x32xf32>, vector<32x32xf32>, vector<2x32xf32> -> vector<2x32xf32>
    %c0_165 = arith.constant 0 : index
    %c0_166 = arith.constant 0 : index
    %619 = vector.load %arg31[%c0_165, %c0_166] : memref<32x32xf32, #tpu.memory_space<vmem>>, vector<32x32xf32>
    %cst_167 = arith.constant dense<0.000000e+00> : vector<2x32xf32>
    %620 = tpu.matmul %480, %619, %cst_167 {dimension_numbers = #tpu.dot_dimension_numbers<[1], [0], [0], [1], [0, 0, 1, 1], [], []>} : vector<2x32xf32>, vector<32x32xf32>, vector<2x32xf32> -> vector<2x32xf32>
    %621 = arith.addf %618, %620 : vector<2x32xf32>
    %c0_168 = arith.constant 0 : index
    %c0_169 = arith.constant 0 : index
    %622 = vector.load %arg32[%c0_168, %c0_169] : memref<32x32xf32, #tpu.memory_space<vmem>>, vector<32x32xf32>
    %cst_170 = arith.constant dense<0.000000e+00> : vector<2x32xf32>
    %623 = tpu.matmul %616, %622, %cst_170 {dimension_numbers = #tpu.dot_dimension_numbers<[1], [0], [0], [1], [0, 0, 1, 1], [], []>} : vector<2x32xf32>, vector<32x32xf32>, vector<2x32xf32> -> vector<2x32xf32>
    %624 = arith.addf %621, %623 : vector<2x32xf32>
    %c0_171 = arith.constant 0 : index
    %c0_172 = arith.constant 0 : index
    %625 = vector.load %arg33[%c0_171, %c0_172] : memref<1x32xf32, #tpu.memory_space<vmem>>, vector<1x32xf32>
    %626 = vector.broadcast %625 : vector<1x32xf32> to vector<2x32xf32>
    %627 = arith.addf %624, %626 : vector<2x32xf32>
    %cst_173 = arith.constant 0.000000e+00 : f32
    %628 = vector.broadcast %cst_173 : f32 to vector<2x32xf32>
    %629 = arith.maximumf %627, %628 : vector<2x32xf32>
    %c0_174 = arith.constant 0 : index
    %c0_175 = arith.constant 0 : index
    %630 = vector.load %arg34[%c0_174, %c0_175] : memref<32x128xf32, #tpu.memory_space<vmem>>, vector<32x128xf32>
    %cst_176 = arith.constant dense<0.000000e+00> : vector<2x128xf32>
    %631 = tpu.matmul %629, %630, %cst_176 {dimension_numbers = #tpu.dot_dimension_numbers<[1], [0], [0], [1], [0, 0, 1, 1], [], []>} : vector<2x32xf32>, vector<32x128xf32>, vector<2x128xf32> -> vector<2x128xf32>
    %c0_177 = arith.constant 0 : index
    %c0_178 = arith.constant 0 : index
    %632 = vector.load %arg35[%c0_177, %c0_178] : memref<1x128xf32, #tpu.memory_space<vmem>>, vector<1x128xf32>
    %633 = vector.broadcast %632 : vector<1x128xf32> to vector<2x128xf32>
    %634 = arith.addf %631, %633 : vector<2x128xf32>
    %c0_179 = arith.constant 0 : index
    %c0_180 = arith.constant 0 : index
    %635 = vector.load %arg36[%c0_179, %c0_180] : memref<2x128xf32, #tpu.memory_space<vmem>>, vector<2x128xf32>
    tpu.vector_store %arg36[%c0_179, %c0_180], %634 {strides = array<i32>} : memref<2x128xf32, #tpu.memory_space<vmem>>, vector<2x128xf32>,
    return
  }
}

</mosaic_0001>

<bundles_post_ra>
// kernel: hybrid_forward.1
= control target key start
LH: loop header
LB: loop body
LE: loop exit
PB: predicated region body
PF: predicated region fallthrough
CT: control target
= control target key end

     0   :  { %s2347_s3 = smov 5   ;;  %s2348_s7 = smov 4   ;;  %vm158_vm0 = vcmask 130048   ;;  %v2350_v7 = vmov 0.0   ;;  %vm192_vm5 = vcmask 261120   ;;  %vm739_vm14 = vcmask 1041408   ;;  %s2843_s0 = inlined_call_operand.smem [shape: u32[37], index: -1, kind: input, shape index: {}] }
   0x1   :  { %s2044_s6 = sld [smem:[%s2843_s0 + %s2347_s3]]   ;;  %s2349_s14 = smov 6   ;;  %vm741_vm15 = vcmask 1043456  }
   0x2   :  { %s2043_s10 = sld [smem:[%s2843_s0 + %s2348_s7]]   ;;  %s2351_s18 = smov 64  }
   0x3   :  { %s2401_s13 = sld [smem:[%s2843_s0]]   ;;  %s2352_s19 = smov 32  }
   0x4   :  { %s2406_s17 = sld [smem:[%s2843_s0 + %s2349_s14]]   ;;  %s2353_s20 = smov 7  }
   0x5   :  { %s2046_s23 = sld [smem:[%s2843_s0 + %s2353_s20]]   ;;  %s2354_s24 = smov 9  }
   0x6   :  { %s2463_s27 = sld [smem:[%s2843_s0 + %s2354_s24]]   ;;  %s2355_s28 = smov 8  }
   0x7   :  { %v191_v0 = vld [vmem:[%s2044_s6 + $0x18] sm:$0xff]  ;;  %v190_v1 = vld [vmem:[%s2044_s6 + $0x10] sm:$0xff]  ;;  %v189_v4 = vld [vmem:[%s2044_s6 + $0x8] sm:$0xff]  ;;  %s2047_s1 = sld [smem:[%s2843_s0 + %s2355_s28]]   ;;  %s2356_s2 = smov 2  }
   0x8   :  { %208 = vmatpush.msra.mxu1 %v191_v0  ;;  %v153_v2 = vld [vmem:[%s2043_s10 + $0x8] sm:$0xff]  ;;  %v152_v3 = vld [vmem:[%s2043_s10] sm:$0xff]  ;;  %271 = vmatpush.msra.mxu2 %v191_v0  ;;  %s2041_s5 = sld [smem:[%s2843_s0 + %s2356_s2]]   ;;  %s2359_s10 = smov 15  }
   0x9   :  { %179 = vmatpush.msra.mxu0 %v153_v2  ;;  %v150_v5 = vld [vmem:[%s2401_s13] sm:$0xff]  ;;  %341 = vmatpush.msra.mxu3 %v191_v0  ;;  %s2360_s14 = smov 16   ;;  %s2361_s20 = smov 17  }
   0xa   :  { %209 = vmatpush.msra.mxu1 %v190_v1  ;;  %272 = vmatpush.msra.mxu2 %v190_v1  ;;  %v188_v6 = vld [vmem:[%s2044_s6] sm:$0xff]  ;;  %s2358_s6 = smov 14   ;;  %s2362_s24 = smov 96  }
   0xb   :  { %180 = vmatpush.msra.mxu0 %v152_v3  ;;  %342 = vmatpush.msra.mxu3 %v190_v1  ;;  %v2412_v8 = vld [vmem:[%s2406_s17] ss:$0 sm:$0xff]  ;;  %s2631_s9 = sld [smem:[%s2843_s0 + %s2358_s6]]   ;;  %s2363_s25 = smov 3  }
   0xc   :  { %210 = vmatpush.msra.mxu1 %v189_v4  ;;  %2076 = vmatmul.msk.f32.vlgmr.msra.gmra.mxu0 %vm158_vm0, %v150_v5  ;;  %s2055_s17 = sld [smem:[%s2843_s0 + %s2360_s14]]   ;;  %s2364_s29 = smov 10  }
   0xd   :  { %273 = vmatpush.msra.mxu2 %v189_v4  ;;  %343 = vmatpush.msra.mxu3 %v189_v4  ;;  %s2042_s28 = sld [smem:[%s2843_s0 + %s2363_s25]]   ;;  %s2365_s3 = smov 11  }
   0xe   :  { %211 = vmatpush.msra.mxu1 %v188_v6  ;;  %617 = vmatpush.msrb.mxu0 %v191_v0  ;;  %s2049_s2 = sld [smem:[%s2843_s0 + %s2364_s29]]   ;;  %s2366_s7 = smov 1  }
   0xf   :  { %212 = vmatmul.f32.vlgmr.msra.gmra.mxu1 %v2350_v7  ;;  %274 = vmatpush.msra.mxu2 %v188_v6  ;;  %s2690_s6 = sld [smem:[%s2843_s0 + %s2365_s3]]   ;;  %s2367_s11 = smov 12  }
  0x10   :  { %344 = vmatpush.msra.mxu3 %v188_v6  ;;  %411 = vmatpush.msrb.mxu1 %v191_v0  ;;  %s2699_s14 = sld [smem:[%s2843_s0 + %s2367_s11]]   ;;  %s2368_s15 = smov 13  }
  0x11   :  { %481 = vmatpush.msrb.mxu2 %v191_v0  ;;  %618 = vmatpush.msrb.mxu0 %v190_v1  ;;  %s2369_s21 = smov 18   ;;  %s2370_s25 = smov 19  }
  0x12   :  { %547 = vmatpush.msrb.mxu3 %v191_v0  ;;  %412 = vmatpush.msrb.mxu1 %v190_v1  ;;  %s2371_s29 = smov 31   ;;  %s2372_s3 = smov 20  }
  0x13   :  { %482 = vmatpush.msrb.mxu2 %v190_v1  ;;  %619 = vmatpush.msrb.mxu0 %v189_v4  ;;  %s2374_s11 = smov 23   ;;  %s2384_s26 = smov 35  }
  0x14   :  { %548 = vmatpush.msrb.mxu3 %v190_v1  ;;  %413 = vmatpush.msrb.mxu1 %v189_v4  ;;  %s2385_s30 = smov 34   ;;  %s2386_s4 = smov 36  }
  0x15   :  { %483 = vmatpush.msrb.mxu2 %v189_v4  ;;  %620 = vmatpush.msrb.mxu0 %v188_v6 }
  0x16   :  { %549 = vmatpush.msrb.mxu3 %v189_v4  ;;  %414 = vmatpush.msrb.mxu1 %v188_v6 }
  0x17   :  { %484 = vmatpush.msrb.mxu2 %v188_v6 }
  0x18   :  { %550 = vmatpush.msrb.mxu3 %v188_v6  ;;  %687 = vmatpush.msra.mxu1 %v191_v0 }
  0x1a   :  { %688 = vmatpush.msra.mxu1 %v190_v1 }
  0x1c   :  { %689 = vmatpush.msra.mxu1 %v189_v4 }
  0x1e   :  { %690 = vmatpush.msra.mxu1 %v188_v6 }
  0x89   :  { %v182_v9 = vpop.f32.mrf.mxu0 }
  0x8a   :  { %v2415_v10 = vadd.f32 %v2412_v8, %v182_v9 }
  0x8c   :  { %v213_v11 = vpop.f32.mrf.mxu1 }
  0x8d   :  { %v216_v12 = vadd.f32 %v213_v11, %v2415_v10 }
  0x8f   :  { %2193 = vtanh.f32 %v216_v12  ;;  %v2078_v14 = vmul.f32 -1.442695, %v216_v12 }
  0x91   :  { %2195 = vpow2.f32 %v2078_v14 }
  0x95   :  { %v2194_v13 = vpop.eup %2193 }
  0x96   :  { %239 = vrot.lane.b32.xlu0 %v2194_v13, %s2351_s18 }
  0x97   :  { %v2196_v15 = vpop.eup %2195 }
  0x98   :  { %v220_v16 = vadd.f32 1.0, %v2196_v15 }
  0x9a   :  { %2197 = vrcp.f32 %v220_v16  ;;  %v232_v22 = vand.u32 2147483648, %v220_v16  ;;  %vm226_vm2 = vweird.f32 %v220_v16  ;;  %v230_v23 = vand.u32 2147483647, %v220_v16 }
  0x9c   :  { %v233_v25 = vor.u32 1.1754944e-38, %v232_v22  ;;  %vm231_vm4 = vcmp.eq.f32.partialorder %v230_v23, 8.507059e+37 }
  0xa0   :  { %v2198_v17 = vpop.eup %2197 }
  0xa1   :  { %v222_v18 = vmul.f32 %v2198_v17, %v220_v16  ;;  %vm227_vm1 = vweird.f32 %v2198_v17 }
  0xa2   :  { %vm228_vm3 = vmor %vm226_vm2, %vm227_vm1 }
  0xa3   :  { %v223_v19 = vsub.f32 1.0, %v222_v18 }
  0xa5   :  { %v224_v20 = vmul.f32 %v2198_v17, %v223_v19 }
  0xa7   :  { %v225_v21 = vadd.f32 %v2198_v17, %v224_v20 }
  0xa9   :  { %v229_v24 = vsel %vm228_vm3, %v2198_v17, %v225_v21 }
  0xaa   :  { %v234_v27 = vsel %vm231_vm4, %v233_v25, %v229_v24 }
  0xab   :  { %v237_v29 = vmul.f32 0.0, %v234_v27 }
 0x108   :  { %v240_v26 = vpop.permute.xlu0 %239 }
 0x109   :  { %v242_v28 = vmul.f32 %v240_v26, %v234_v27 }
 0x10b   :  { %244 = vrot.lane.b32.xlu0 %v242_v28, %s2352_s19 }
 0x17d   :  { %v245_v30 = vpop.permute.xlu0 %244 }
 0x17e   :  { %v247_v31 = vadd.f32 %v245_v30, %v237_v29 }
 0x180   :  { %2199 = vtanh.f32 %v247_v31  ;;  %v304_v55 = vrot.slane %v247_v31, 6 }
 0x186   :  { %v2200_v32 = vpop.eup %2199 }
 0x187   :  { %250 = vrot.lane.b32.xlu1 %v2200_v32, %s2351_s18 }
 0x1f9   :  { %v251_v33 = vpop.permute.xlu1 %250 }
 0x1fa   :  { %v2421_v34 = vmul.f32 %v251_v33, %v234_v27 }
 0x1fc   :  { %255 = vrot.lane.b32.xlu1 %v2421_v34, %s2352_s19 }
 0x26e   :  { %v256_v35 = vpop.permute.xlu1 %255 }
 0x26f   :  { %2079 = vmatmul.msk.f32.vlgmr.msra.gmra.mxu2 %vm192_vm5, %v256_v35 }
 0x2f2   :  { %v276_v36 = vpop.f32.mrf.mxu2 }
 0x2f3   :  { %v280_v37 = vrot.slane %v276_v36, 6 }
 0x2f5   :  { %v282_v38 = vadd.f32 %v280_v37, %v2415_v10 }
 0x2f7   :  { %2201 = vtanh.f32 %v282_v38  ;;  %v2080_v40 = vmul.f32 -1.442695, %v282_v38 }
 0x2f9   :  { %2203 = vpow2.f32 %v2080_v40 }
 0x2fd   :  { %v2202_v39 = vpop.eup %2201 }
 0x2fe   :  { %308 = vrot.lane.b32.xlu2 %v2202_v39, %s2351_s18 }
 0x2ff   :  { %v2204_v41 = vpop.eup %2203 }
 0x300   :  { %v286_v42 = vadd.f32 1.0, %v2204_v41 }
 0x302   :  { %2205 = vrcp.f32 %v286_v42  ;;  %v298_v48 = vand.u32 2147483648, %v286_v42  ;;  %vm292_vm7 = vweird.f32 %v286_v42  ;;  %v296_v49 = vand.u32 2147483647, %v286_v42 }
 0x304   :  { %v299_v51 = vor.u32 1.1754944e-38, %v298_v48  ;;  %vm297_vm9 = vcmp.eq.f32.partialorder %v296_v49, 8.507059e+37 }
 0x308   :  { %v2206_v43 = vpop.eup %2205 }
 0x309   :  { %v288_v44 = vmul.f32 %v2206_v43, %v286_v42  ;;  %vm293_vm6 = vweird.f32 %v2206_v43 }
 0x30a   :  { %vm294_vm8 = vmor %vm292_vm7, %vm293_vm6  ;;  %vm743_vm6 = vcmask 1045504  }
 0x30b   :  { %v289_v45 = vsub.f32 1.0, %v288_v44 }
 0x30d   :  { %v290_v46 = vmul.f32 %v2206_v43, %v289_v45 }
 0x30f   :  { %v291_v47 = vadd.f32 %v2206_v43, %v290_v46 }
 0x311   :  { %v295_v50 = vsel %vm294_vm8, %v2206_v43, %v291_v47 }
 0x312   :  { %v300_v53 = vsel %vm297_vm9, %v299_v51, %v295_v50 }
 0x313   :  { %v306_v56 = vmul.f32 %v304_v55, %v300_v53 }
 0x358   :  { %v309_v52 = vpop.permute.xlu2 %308 }
 0x359   :  { %v311_v54 = vmul.f32 %v309_v52, %v300_v53 }
 0x35b   :  { %313 = vrot.lane.b32.xlu2 %v311_v54, %s2352_s19 }
 0x3b5   :  { %v314_v57 = vpop.permute.xlu2 %313 }
 0x3b6   :  { %v316_v58 = vadd.f32 %v314_v57, %v306_v56 }
 0x3b8   :  { %2207 = vtanh.f32 %v316_v58  ;;  %v374_v22 = vrot.slane %v316_v58, 6 }
 0x3be   :  { %v2208_v59 = vpop.eup %2207 }
 0x3bf   :  { %319 = vrot.lane.b32.xlu0 %v2208_v59, %s2351_s18 }
 0x431   :  { %v320_v60 = vpop.permute.xlu0 %319 }
 0x432   :  { %v322_v61 = vmul.f32 %v320_v60, %v300_v53  ;;  %v151_v60 = vld [vmem:[%s2401_s13 + $0x8] sm:$0xff]  ;;  %s2636_s13 = sld [smem:[%s2843_s0 + %s2359_s10]]  }
 0x433   :  { %2077 = vmatmul.msk.f32.gmra.mxu0 %vm158_vm0, %v151_v60  ;;  %s2040_s10 = sld [smem:[%s2843_s0 + %s2366_s7]]   ;;  %s2373_s7 = smov 21  }
 0x434   :  { %v324_v62 = vrot.slane %v322_v61, 2  ;;  %v740_v29 = vsel %vm739_vm14, %v2421_v34, %v322_v61 }
 0x436   :  { %325 = vrot.lane.b32.xlu1 %v324_v62, %s2352_s19 }
 0x4a8   :  { %v326_v63 = vpop.permute.xlu1 %325 }
 0x4a9   :  { %2081 = vmatmul.msk.f32.vlgmr.msra.gmra.mxu3 %vm192_vm5, %v326_v63 }
 0x4b0   :  { %v185_v62 = vpop.f32.mrf.mxu0 }
 0x4b1   :  { %v2451_v63 = vadd.f32 %v2412_v8, %v185_v62 }
 0x52c   :  { %v346_v0 = vpop.f32.mrf.mxu3 }
 0x52d   :  { %v350_v1 = vrot.slane %v346_v0, 4 }
 0x52f   :  { %v352_v2 = vadd.f32 %v350_v1, %v2415_v10 }
 0x531   :  { %2209 = vtanh.f32 %v352_v2  ;;  %v2082_v4 = vmul.f32 -1.442695, %v352_v2 }
 0x533   :  { %2211 = vpow2.f32 %v2082_v4 }
 0x537   :  { %v2210_v3 = vpop.eup %2209 }
 0x538   :  { %378 = vrot.lane.b32.xlu2 %v2210_v3, %s2351_s18 }
 0x539   :  { %v2212_v5 = vpop.eup %2211 }
 0x53a   :  { %v356_v6 = vadd.f32 1.0, %v2212_v5 }
 0x53c   :  { %2213 = vrcp.f32 %v356_v6  ;;  %v368_v15 = vand.u32 2147483648, %v356_v6  ;;  %vm362_vm11 = vweird.f32 %v356_v6  ;;  %v366_v16 = vand.u32 2147483647, %v356_v6 }
 0x53e   :  { %v369_v18 = vor.u32 1.1754944e-38, %v368_v15  ;;  %vm367_vm13 = vcmp.eq.f32.partialorder %v366_v16, 8.507059e+37 }
 0x542   :  { %v2214_v9 = vpop.eup %2213 }
 0x543   :  { %v358_v11 = vmul.f32 %v2214_v9, %v356_v6  ;;  %vm363_vm10 = vweird.f32 %v2214_v9 }
 0x544   :  { %vm364_vm12 = vmor %vm362_vm11, %vm363_vm10 }
 0x545   :  { %v359_v12 = vsub.f32 1.0, %v358_v11 }
 0x547   :  { %v360_v13 = vmul.f32 %v2214_v9, %v359_v12 }
 0x549   :  { %v361_v14 = vadd.f32 %v2214_v9, %v360_v13 }
 0x54b   :  { %v365_v17 = vsel %vm364_vm12, %v2214_v9, %v361_v14 }
 0x54c   :  { %v370_v20 = vsel %vm367_vm13, %v369_v18, %v365_v17 }
 0x54d   :  { %v376_v23 = vmul.f32 %v374_v22, %v370_v20  ;;  %v749_v22 = vld [vmem:[%s2046_s23 + $0x8] sm:$0xff] }
 0x592   :  { %v379_v19 = vpop.permute.xlu2 %378 }
 0x593   :  { %v381_v21 = vmul.f32 %v379_v19, %v370_v20 }
 0x595   :  { %383 = vrot.lane.b32.xlu0 %v381_v21, %s2352_s19  ;;  %v750_v21 = vld [vmem:[%s2046_s23 + $0x10] sm:$0xff] }
 0x607   :  { %v384_v24 = vpop.permute.xlu0 %383 }
 0x608   :  { %v386_v25 = vadd.f32 %v384_v24, %v376_v23  ;;  %v748_v23 = vld [vmem:[%s2046_s23] sm:$0xff] }
 0x60a   :  { %2215 = vtanh.f32 %v386_v25  ;;  %v444_v51 = vrot.slane %v386_v25, 6 }
 0x610   :  { %v2216_v26 = vpop.eup %2215 }
 0x611   :  { %389 = vrot.lane.b32.xlu1 %v2216_v26, %s2351_s18 }
 0x683   :  { %v390_v27 = vpop.permute.xlu1 %389 }
 0x684   :  { %v392_v28 = vmul.f32 %v390_v27, %v370_v20  ;;  %v751_v20 = vld [vmem:[%s2046_s23 + $0x18] sm:$0xff]  ;;  %s2646_s23 = sld [smem:[%s2843_s0 + %s2361_s20]]  }
 0x685   :  { %778 = vmatpush.msra.mxu2 %v751_v20  ;;  %s2707_s20 = sld [smem:[%s2843_s0 + %s2368_s15]]   ;;  %s2375_s15 = smov 22  }
 0x686   :  { %v394_v30 = vrot.slane %v392_v28, 4  ;;  %v742_v31 = vsel %vm741_vm15, %v740_v29, %v392_v28 }
 0x687   :  { %779 = vmatpush.msra.mxu2 %v750_v21 }
 0x688   :  { %395 = vrot.lane.b32.xlu2 %v394_v30, %s2352_s19 }
 0x689   :  { %780 = vmatpush.msra.mxu2 %v749_v22 }
 0x68b   :  { %781 = vmatpush.msra.mxu2 %v748_v23 }
 0x6e2   :  { %v396_v32 = vpop.permute.xlu2 %395 }
 0x6e3   :  { %2083 = vmatmul.msk.f32.vlgmr.msrb.gmra.mxu1 %vm192_vm5, %v396_v32  ;;  %v2477_v32 = vld [vmem:[%s2047_s1 + $0x18] sm:$0xff] }
 0x6e4   :  { %805 = vmatpush.msra.mxu3 %v2477_v32  ;;  %868 = vmatpush.msra.mxu0 %v2477_v32 }
 0x6e5   :  { %938 = vmatpush.msrb.mxu1 %v2477_v32 }
 0x760   :  { %v416_v33 = vpop.f32.mrf.mxu1 }
 0x761   :  { %v420_v35 = vrot.slane %v416_v33, 2  ;;  %v2479_v33 = vld [vmem:[%s2047_s1 + $0x10] sm:$0xff] }
 0x762   :  { %806 = vmatpush.msra.mxu3 %v2479_v33  ;;  %869 = vmatpush.msra.mxu0 %v2479_v33 }
 0x763   :  { %v422_v36 = vadd.f32 %v420_v35, %v2415_v10  ;;  %v2483_v35 = vld [vmem:[%s2047_s1 + $0x8] sm:$0xff]  ;;  %939 = vmatpush.msrb.mxu1 %v2479_v33 }
 0x764   :  { %807 = vmatpush.msra.mxu3 %v2483_v35  ;;  %870 = vmatpush.msra.mxu0 %v2483_v35 }
 0x765   :  { %2217 = vtanh.f32 %v422_v36  ;;  %v2084_v38 = vmul.f32 -1.442695, %v422_v36  ;;  %v2489_v36 = vld [vmem:[%s2047_s1] sm:$0xff]  ;;  %940 = vmatpush.msrb.mxu1 %v2483_v35 }
 0x766   :  { %808 = vmatpush.msra.mxu3 %v2489_v36  ;;  %871 = vmatpush.msra.mxu0 %v2489_v36 }
 0x767   :  { %2219 = vpow2.f32 %v2084_v38  ;;  %941 = vmatpush.msrb.mxu1 %v2489_v36 }
 0x76b   :  { %v2218_v37 = vpop.eup %2217 }
 0x76c   :  { %448 = vrot.lane.b32.xlu0 %v2218_v37, %s2351_s18 }
 0x76d   :  { %v2220_v39 = vpop.eup %2219 }
 0x76e   :  { %v426_v34 = vadd.f32 1.0, %v2220_v39 }
 0x770   :  { %2221 = vrcp.f32 %v426_v34  ;;  %v438_v45 = vand.u32 2147483648, %v426_v34  ;;  %vm432_vm2 = vweird.f32 %v426_v34  ;;  %v436_v46 = vand.u32 2147483647, %v426_v34 }
 0x772   :  { %v439_v47 = vor.u32 1.1754944e-38, %v438_v45  ;;  %vm437_vm4 = vcmp.eq.f32.partialorder %v436_v46, 8.507059e+37 }
 0x776   :  { %v2222_v40 = vpop.eup %2221 }
 0x777   :  { %v428_v41 = vmul.f32 %v2222_v40, %v426_v34  ;;  %vm433_vm1 = vweird.f32 %v2222_v40  ;;  %v2512_v34 = vld [vmem:[%s2463_s27] ss:$0 sm:$0xff] }
 0x778   :  { %vm434_vm3 = vmor %vm432_vm2, %vm433_vm1 }
 0x779   :  { %v429_v42 = vsub.f32 1.0, %v428_v41 }
 0x77b   :  { %v430_v43 = vmul.f32 %v2222_v40, %v429_v42 }
 0x77d   :  { %v431_v44 = vadd.f32 %v2222_v40, %v430_v43 }
 0x77f   :  { %v435_v10 = vsel %vm434_vm3, %v2222_v40, %v431_v44 }
 0x780   :  { %v440_v49 = vsel %vm437_vm4, %v439_v47, %v435_v10 }
 0x781   :  { %v446_v52 = vmul.f32 %v444_v51, %v440_v49 }
 0x7de   :  { %v449_v48 = vpop.permute.xlu0 %448 }
 0x7df   :  { %v451_v50 = vmul.f32 %v449_v48, %v440_v49 }
 0x7e1   :  { %453 = vrot.lane.b32.xlu1 %v451_v50, %s2352_s19 }
 0x853   :  { %v454_v53 = vpop.permute.xlu1 %453 }
 0x854   :  { %v456_v54 = vadd.f32 %v454_v53, %v446_v52 }
 0x856   :  { %2223 = vtanh.f32 %v456_v54  ;;  %v511_v24 = vrot.slane %v456_v54, 6 }
 0x85c   :  { %v2224_v55 = vpop.eup %2223 }
 0x85d   :  { %459 = vrot.lane.b32.xlu2 %v2224_v55, %s2351_s18 }
 0x8b7   :  { %v460_v56 = vpop.permute.xlu2 %459 }
 0x8b8   :  { %v462_v57 = vmul.f32 %v460_v56, %v440_v49 }
 0x8ba   :  { %v464_v58 = vrot.slane %v462_v57, 6  ;;  %v744_v59 = vsel %vm743_vm6, %v742_v31, %v462_v57 }
 0x8bc   :  { %465 = vrot.lane.b32.xlu0 %v464_v58, %s2352_s19 }
 0x92e   :  { %v466_v61 = vpop.permute.xlu0 %465 }
 0x92f   :  { %2085 = vmatmul.msk.f32.vlgmr.msrb.gmra.mxu2 %vm192_vm5, %v466_v61 }
 0x930   :  { %1214 = vmatpush.msrb.mxu2 %v2477_v32 }
 0x932   :  { %1215 = vmatpush.msrb.mxu2 %v2479_v33 }
 0x934   :  { %1216 = vmatpush.msrb.mxu2 %v2483_v35 }
 0x936   :  { %1217 = vmatpush.msrb.mxu2 %v2489_v36 }
 0x9b2   :  { %v486_v0 = vpop.f32.mrf.mxu2 }
 0x9b3   :  { %v489_v1 = vadd.f32 %v486_v0, %v2451_v63 }
 0x9b5   :  { %2225 = vtanh.f32 %v489_v1  ;;  %v2086_v3 = vmul.f32 -1.442695, %v489_v1 }
 0x9b7   :  { %2227 = vpow2.f32 %v2086_v3 }
 0x9bb   :  { %v2226_v2 = vpop.eup %2225 }
 0x9bc   :  { %515 = vrot.lane.b32.xlu1 %v2226_v2, %s2351_s18 }
 0x9bd   :  { %v2228_v4 = vpop.eup %2227 }
 0x9be   :  { %v493_v5 = vadd.f32 1.0, %v2228_v4 }
 0x9c0   :  { %2229 = vrcp.f32 %v493_v5  ;;  %v505_v8 = vand.u32 2147483648, %v493_v5  ;;  %vm499_vm8 = vweird.f32 %v493_v5  ;;  %v503_v14 = vand.u32 2147483647, %v493_v5 }
 0x9c2   :  { %v506_v16 = vor.u32 1.1754944e-38, %v505_v8  ;;  %vm504_vm10 = vcmp.eq.f32.partialorder %v503_v14, 8.507059e+37 }
 0x9c6   :  { %v2230_v6 = vpop.eup %2229 }
 0x9c7   :  { %v495_v9 = vmul.f32 %v2230_v6, %v493_v5  ;;  %vm500_vm7 = vweird.f32 %v2230_v6 }
 0x9c8   :  { %vm501_vm9 = vmor %vm499_vm8, %vm500_vm7 }
 0x9c9   :  { %v496_v11 = vsub.f32 1.0, %v495_v9 }
 0x9cb   :  { %v497_v12 = vmul.f32 %v2230_v6, %v496_v11 }
 0x9cd   :  { %v498_v13 = vadd.f32 %v2230_v6, %v497_v12 }
 0x9cf   :  { %v502_v15 = vsel %vm501_vm9, %v2230_v6, %v498_v13 }
 0x9d0   :  { %v507_v18 = vsel %vm504_vm10, %v506_v16, %v502_v15 }
 0x9d1   :  { %v513_v25 = vmul.f32 %v511_v24, %v507_v18 }
 0xa2e   :  { %v516_v17 = vpop.permute.xlu1 %515 }
 0xa2f   :  { %v518_v19 = vmul.f32 %v516_v17, %v507_v18 }
 0xa31   :  { %520 = vrot.lane.b32.xlu2 %v518_v19, %s2352_s19 }
 0xa39   :  { %758 = vrot.lane.b32.xlu2 %v744_v59, %s2352_s19 }
 0xa8b   :  { %v521_v26 = vpop.permute.xlu2 %520 }
 0xa8c   :  { %v2465_v27 = vadd.f32 %v521_v26, %v513_v25 }
 0xa8e   :  { %2231 = vtanh.f32 %v2465_v27  ;;  %v580_v14 = vrot.slane %v2465_v27, 6 }
 0xa93   :  { %v759_v28 = vpop.permute.xlu2 %758 }
 0xa94   :  { %v2232_v29 = vpop.eup %2231  ;;  %2093 = vmatmul.msk.f32.vlgmr.msra.gmra.mxu2 %vm192_vm5, %v759_v28 }
 0xa95   :  { %526 = vrot.lane.b32.xlu0 %v2232_v29, %s2351_s18 }
 0xb07   :  { %v527_v30 = vpop.permute.xlu0 %526 }
 0xb08   :  { %v2470_v31 = vmul.f32 %v527_v30, %v507_v18 }
 0xb0a   :  { %531 = vrot.lane.b32.xlu1 %v2470_v31, %s2352_s19 }
 0xb17   :  { %v783_v41 = vpop.f32.mrf.mxu2 }
 0xb18   :  { %v2516_v42 = vadd.f32 %v2512_v34, %v783_v41 }
 0xb7c   :  { %v532_v37 = vpop.permute.xlu1 %531 }
 0xb7d   :  { %2087 = vmatmul.msk.f32.vlgmr.msrb.gmra.mxu3 %vm192_vm5, %v532_v37 }
 0xb7e   :  { %1008 = vmatpush.msrb.mxu3 %v2477_v32 }
 0xb80   :  { %1009 = vmatpush.msrb.mxu3 %v2479_v33 }
 0xb82   :  { %1010 = vmatpush.msrb.mxu3 %v2483_v35 }
 0xb84   :  { %1011 = vmatpush.msrb.mxu3 %v2489_v36 }
 0xb85   :  { %809 = vmatmul.f32.vlgmr.msra.gmra.mxu3 %v2350_v7 }
 0xb86   :  { %1284 = vmatpush.msra.mxu3 %v2477_v32 }
 0xb88   :  { %1285 = vmatpush.msra.mxu3 %v2479_v33 }
 0xb8a   :  { %1286 = vmatpush.msra.mxu3 %v2483_v35 }
 0xb8c   :  { %1287 = vmatpush.msra.mxu3 %v2489_v36 }
 0xc00   :  { %v552_v38 = vpop.f32.mrf.mxu3 }
 0xc01   :  { %v556_v39 = vrot.slane %v552_v38, 6 }
 0xc03   :  { %v558_v40 = vadd.f32 %v556_v39, %v2451_v63 }
 0xc05   :  { %2233 = vtanh.f32 %v558_v40  ;;  %v2088_v46 = vmul.f32 -1.442695, %v558_v40 }
 0xc08   :  { %v810_v7 = vpop.f32.mrf.mxu3 }
 0xc09   :  { %v813_v43 = vadd.f32 %v810_v7, %v2516_v42 }
 0xc0b   :  { %v2234_v44 = vpop.eup %2233  ;;  %2235 = vtanh.f32 %v813_v43  ;;  %v2095_v10 = vmul.f32 -1.442695, %v813_v43 }
 0xc0c   :  { %584 = vrot.lane.b32.xlu0 %v2234_v44, %s2351_s18  ;;  %2237 = vpow2.f32 %v2088_v46 }
 0xc0d   :  { %2239 = vpow2.f32 %v2095_v10 }
 0xc11   :  { %v2236_v45 = vpop.eup %2235 }
 0xc12   :  { %836 = vrot.lane.b32.xlu1 %v2236_v45, %s2351_s18  ;;  %v2238_v47 = vpop.eup %2237 }
 0xc13   :  { %v562_v48 = vadd.f32 1.0, %v2238_v47  ;;  %v2240_v49 = vpop.eup %2239 }
 0xc14   :  { %v817_v50 = vadd.f32 1.0, %v2240_v49 }
 0xc15   :  { %2241 = vrcp.f32 %v562_v48  ;;  %v574_v59 = vand.u32 2147483648, %v562_v48  ;;  %vm568_vm12 = vweird.f32 %v562_v48  ;;  %v572_v60 = vand.u32 2147483647, %v562_v48 }
 0xc16   :  { %2243 = vrcp.f32 %v817_v50  ;;  %v829_v4 = vand.u32 2147483648, %v817_v50  ;;  %vm823_vm3 = vweird.f32 %v817_v50  ;;  %v827_v6 = vand.u32 2147483647, %v817_v50 }
 0xc17   :  { %v575_v0 = vor.u32 1.1754944e-38, %v574_v59  ;;  %vm573_vm1 = vcmp.eq.f32.partialorder %v572_v60, 8.507059e+37 }
 0xc18   :  { %v830_v11 = vor.u32 1.1754944e-38, %v829_v4  ;;  %vm828_vm7 = vcmp.eq.f32.partialorder %v827_v6, 8.507059e+37 }
 0xc1b   :  { %v2242_v51 = vpop.eup %2241 }
 0xc1c   :  { %v564_v52 = vmul.f32 %v2242_v51, %v562_v48  ;;  %v2244_v53 = vpop.eup %2243  ;;  %vm569_vm11 = vweird.f32 %v2242_v51 }
 0xc1d   :  { %v819_v55 = vmul.f32 %v2244_v53, %v817_v50  ;;  %vm570_vm13 = vmor %vm568_vm12, %vm569_vm11  ;;  %vm824_vm2 = vweird.f32 %v2244_v53 }
 0xc1e   :  { %v565_v54 = vsub.f32 1.0, %v564_v52  ;;  %vm825_vm4 = vmor %vm823_vm3, %vm824_vm2 }
 0xc1f   :  { %v820_v57 = vsub.f32 1.0, %v819_v55 }
 0xc20   :  { %v566_v56 = vmul.f32 %v2242_v51, %v565_v54 }
 0xc21   :  { %v821_v61 = vmul.f32 %v2244_v53, %v820_v57 }
 0xc22   :  { %v567_v58 = vadd.f32 %v2242_v51, %v566_v56 }
 0xc23   :  { %v822_v1 = vadd.f32 %v2244_v53, %v821_v61 }
 0xc24   :  { %v571_v62 = vsel %vm570_vm13, %v2242_v51, %v567_v58 }
 0xc25   :  { %v576_v3 = vsel %vm573_vm1, %v575_v0, %v571_v62  ;;  %v826_v9 = vsel %vm825_vm4, %v2244_v53, %v822_v1 }
 0xc26   :  { %v831_v13 = vsel %vm828_vm7, %v830_v11, %v826_v9  ;;  %v582_v15 = vmul.f32 %v580_v14, %v576_v3 }
 0xc27   :  { %v834_v19 = vmul.f32 0.0, %v831_v13 }
 0xc7e   :  { %v585_v2 = vpop.permute.xlu0 %584 }
 0xc7f   :  { %v587_v5 = vmul.f32 %v585_v2, %v576_v3 }
 0xc81   :  { %589 = vrot.lane.b32.xlu2 %v587_v5, %s2352_s19 }
 0xc84   :  { %v837_v12 = vpop.permute.xlu1 %836 }
 0xc85   :  { %v839_v8 = vmul.f32 %v837_v12, %v831_v13 }
 0xc87   :  { %841 = vrot.lane.b32.xlu0 %v839_v8, %s2352_s19 }
 0xcdb   :  { %v590_v16 = vpop.permute.xlu2 %589 }
 0xcdc   :  { %v2524_v17 = vadd.f32 %v590_v16, %v582_v15 }
 0xcde   :  { %2245 = vtanh.f32 %v2524_v17 }
 0xce4   :  { %v2246_v18 = vpop.eup %2245 }
 0xce5   :  { %595 = vrot.lane.b32.xlu1 %v2246_v18, %s2351_s18 }
 0xcf9   :  { %v842_v20 = vpop.permute.xlu0 %841 }
 0xcfa   :  { %v2528_v21 = vadd.f32 %v842_v20, %v834_v19 }
 0xcfc   :  { %2247 = vtanh.f32 %v2528_v21  ;;  %v901_v16 = vrot.slane %v2528_v21, 6 }
 0xd02   :  { %v2248_v22 = vpop.eup %2247 }
 0xd03   :  { %847 = vrot.lane.b32.xlu2 %v2248_v22, %s2351_s18 }
 0xd57   :  { %v596_v23 = vpop.permute.xlu1 %595 }
 0xd58   :  { %v2532_v24 = vmul.f32 %v596_v23, %v576_v3 }
 0xd5a   :  { %v600_v25 = vrot.slane %v2532_v24, 2 }
 0xd5c   :  { %601 = vrot.lane.b32.xlu0 %v600_v25, %s2352_s19 }
 0xd5d   :  { %v848_v26 = vpop.permute.xlu2 %847 }
 0xd5e   :  { %v850_v27 = vmul.f32 %v848_v26, %v831_v13  ;;  %v650_v13 = vrot.slane %v2524_v17, 6  ;;  %v745_v26 = vsel %vm739_vm14, %v2470_v31, %v2532_v24 }
 0xd60   :  { %852 = vrot.lane.b32.xlu1 %v850_v27, %s2352_s19 }
 0xdce   :  { %v602_v28 = vpop.permute.xlu0 %601 }
 0xdcf   :  { %2089 = vmatmul.msk.f32.vlgmr.msrb.gmra.mxu0 %vm192_vm5, %v602_v28 }
 0xdd0   :  { %1078 = vmatpush.msrb.mxu0 %v2477_v32 }
 0xdd2   :  { %1079 = vmatpush.msrb.mxu0 %v2479_v33  ;;  %v853_v29 = vpop.permute.xlu1 %852 }
 0xdd4   :  { %1080 = vmatpush.msrb.mxu0 %v2483_v35 }
 0xdd6   :  { %1081 = vmatpush.msrb.mxu0 %v2489_v36 }
 0xdd7   :  { %2096 = vmatmul.msk.f32.vlgmr.msra.gmra.mxu0 %vm192_vm5, %v853_v29 }
 0xe4c   :  { %v622_v30 = vpop.f32.mrf.mxu0 }
 0xe4d   :  { %v626_v37 = vrot.slane %v622_v30, 4 }
 0xe4f   :  { %v628_v38 = vadd.f32 %v626_v37, %v2451_v63 }
 0xe51   :  { %2249 = vtanh.f32 %v628_v38  ;;  %v2090_v44 = vmul.f32 -1.442695, %v628_v38 }
 0xe54   :  { %v873_v39 = vpop.f32.mrf.mxu0 }
 0xe55   :  { %v877_v40 = vrot.slane %v873_v39, 6 }
 0xe57   :  { %v2250_v41 = vpop.eup %2249  ;;  %v879_v7 = vadd.f32 %v877_v40, %v2516_v42 }
 0xe58   :  { %654 = vrot.lane.b32.xlu2 %v2250_v41, %s2351_s18 }
 0xe59   :  { %2251 = vtanh.f32 %v879_v7  ;;  %v2097_v49 = vmul.f32 -1.442695, %v879_v7 }
 0xe5a   :  { %2253 = vpow2.f32 %v2090_v44 }
 0xe5f   :  { %v2252_v43 = vpop.eup %2251 }
 0xe60   :  { %905 = vrot.lane.b32.xlu0 %v2252_v43, %s2351_s18  ;;  %v2254_v45 = vpop.eup %2253 }
 0xe61   :  { %v632_v46 = vadd.f32 1.0, %v2254_v45 }
 0xe63   :  { %2255 = vrcp.f32 %v632_v46  ;;  %v644_v52 = vand.u32 2147483648, %v632_v46  ;;  %vm638_vm9 = vweird.f32 %v632_v46  ;;  %v642_v53 = vand.u32 2147483647, %v632_v46 }
 0xe64   :  { %2257 = vpow2.f32 %v2097_v49 }
 0xe65   :  { %v645_v56 = vor.u32 1.1754944e-38, %v644_v52  ;;  %vm643_vm11 = vcmp.eq.f32.partialorder %v642_v53, 8.507059e+37 }
 0xe69   :  { %v2256_v10 = vpop.eup %2255 }
 0xe6a   :  { %v634_v47 = vmul.f32 %v2256_v10, %v632_v46  ;;  %vm639_vm8 = vweird.f32 %v2256_v10  ;;  %v2258_v54 = vpop.eup %2257 }
 0xe6b   :  { %vm640_vm10 = vmor %vm638_vm9, %vm639_vm8  ;;  %v883_v57 = vadd.f32 1.0, %v2258_v54 }
 0xe6c   :  { %v635_v48 = vsub.f32 1.0, %v634_v47 }
 0xe6d   :  { %2259 = vrcp.f32 %v883_v57  ;;  %v895_v3 = vand.u32 2147483648, %v883_v57  ;;  %vm889_vm13 = vweird.f32 %v883_v57  ;;  %v893_v4 = vand.u32 2147483647, %v883_v57 }
 0xe6e   :  { %v636_v50 = vmul.f32 %v2256_v10, %v635_v48 }
 0xe6f   :  { %v896_v6 = vor.u32 1.1754944e-38, %v895_v3  ;;  %vm894_vm2 = vcmp.eq.f32.partialorder %v893_v4, 8.507059e+37 }
 0xe70   :  { %v637_v51 = vadd.f32 %v2256_v10, %v636_v50 }
 0xe72   :  { %v641_v55 = vsel %vm640_vm10, %v2256_v10, %v637_v51 }
 0xe73   :  { %v646_v59 = vsel %vm643_vm11, %v645_v56, %v641_v55  ;;  %v2260_v61 = vpop.eup %2259 }
 0xe74   :  { %v885_v62 = vmul.f32 %v2260_v61, %v883_v57  ;;  %vm890_vm12 = vweird.f32 %v2260_v61  ;;  %v652_v8 = vmul.f32 %v650_v13, %v646_v59 }
 0xe75   :  { %vm891_vm1 = vmor %vm889_vm13, %vm890_vm12 }
 0xe76   :  { %v886_v0 = vsub.f32 1.0, %v885_v62 }
 0xe78   :  { %v887_v1 = vmul.f32 %v2260_v61, %v886_v0 }
 0xe7a   :  { %v888_v2 = vadd.f32 %v2260_v61, %v887_v1 }
 0xe7c   :  { %v892_v5 = vsel %vm891_vm1, %v2260_v61, %v888_v2 }
 0xe7d   :  { %v897_v11 = vsel %vm894_vm2, %v896_v6, %v892_v5 }
 0xe7e   :  { %v903_v18 = vmul.f32 %v901_v16, %v897_v11 }
 0xeb2   :  { %v655_v58 = vpop.permute.xlu2 %654 }
 0xeb3   :  { %v657_v60 = vmul.f32 %v655_v58, %v646_v59 }
 0xeb5   :  { %659 = vrot.lane.b32.xlu1 %v657_v60, %s2352_s19 }
 0xed2   :  { %v906_v9 = vpop.permute.xlu0 %905 }
 0xed3   :  { %v908_v12 = vmul.f32 %v906_v9, %v897_v11 }
 0xed5   :  { %910 = vrot.lane.b32.xlu2 %v908_v12, %s2352_s19 }
 0xf27   :  { %v660_v14 = vpop.permute.xlu1 %659 }
 0xf28   :  { %v2550_v15 = vadd.f32 %v660_v14, %v652_v8 }
 0xf2a   :  { %2261 = vtanh.f32 %v2550_v15 }
 0xf2f   :  { %v911_v19 = vpop.permute.xlu2 %910 }
 0xf30   :  { %v2262_v20 = vpop.eup %2261  ;;  %v913_v22 = vadd.f32 %v911_v19, %v903_v18 }
 0xf31   :  { %665 = vrot.lane.b32.xlu0 %v2262_v20, %s2351_s18 }
 0xf32   :  { %2263 = vtanh.f32 %v913_v22  ;;  %v971_v55 = vrot.slane %v913_v22, 6 }
 0xf38   :  { %v2264_v23 = vpop.eup %2263 }
 0xf39   :  { %916 = vrot.lane.b32.xlu1 %v2264_v23, %s2351_s18  ;;  %v720_v23 = vrot.slane %v2550_v15, 6 }
 0xfa3   :  { %v666_v25 = vpop.permute.xlu0 %665 }
 0xfa4   :  { %v668_v17 = vmul.f32 %v666_v25, %v646_v59 }
 0xfa6   :  { %v670_v27 = vrot.slane %v668_v17, 4  ;;  %v2560_v28 = vsel %vm741_vm15, %v745_v26, %v668_v17 }
 0xfa8   :  { %671 = vrot.lane.b32.xlu2 %v670_v27, %s2352_s19 }
 0xfab   :  { %v917_v21 = vpop.permute.xlu1 %916 }
 0xfac   :  { %v919_v29 = vmul.f32 %v917_v21, %v897_v11 }
 0xfae   :  { %v921_v30 = vrot.slane %v919_v29, 2 }
 0xfb0   :  { %922 = vrot.lane.b32.xlu0 %v921_v30, %s2352_s19 }
0x1002   :  { %v672_v37 = vpop.permute.xlu2 %671 }
0x1003   :  { %2091 = vmatmul.msk.f32.vlgmr.msra.gmra.mxu1 %vm192_vm5, %v672_v37 }
0x1004   :  { %1144 = vmatpush.msra.mxu1 %v2477_v32 }
0x1006   :  { %1145 = vmatpush.msra.mxu1 %v2479_v33 }
0x1008   :  { %1146 = vmatpush.msra.mxu1 %v2483_v35 }
0x100a   :  { %1147 = vmatpush.msra.mxu1 %v2489_v36 }
0x1022   :  { %v923_v31 = vpop.permute.xlu0 %922 }
0x1023   :  { %2098 = vmatmul.msk.f32.vlgmr.msrb.gmra.mxu1 %vm192_vm5, %v923_v31 }
0x1080   :  { %v692_v24 = vpop.f32.mrf.mxu1 }
0x1081   :  { %v696_v47 = vrot.slane %v692_v24, 2 }
0x1083   :  { %v698_v50 = vadd.f32 %v696_v47, %v2451_v63 }
0x1085   :  { %v2092_v63 = vmul.f32 -1.442695, %v698_v50 }
0x10a0   :  { %v943_v38 = vpop.f32.mrf.mxu1 }
0x10a1   :  { %v947_v39 = vrot.slane %v943_v38, 4 }
0x10a3   :  { %v949_v40 = vadd.f32 %v947_v39, %v2516_v42 }
0x10a5   :  { %2265 = vtanh.f32 %v949_v40  ;;  %v2099_v7 = vmul.f32 -1.442695, %v949_v40 }
0x10a7   :  { %2267 = vpow2.f32 %v2099_v7 }
0x10ab   :  { %v2266_v41 = vpop.eup %2265 }
0x10ac   :  { %975 = vrot.lane.b32.xlu1 %v2266_v41, %s2351_s18 }
0x10ad   :  { %v2268_v32 = vpop.eup %2267 }
0x10ae   :  { %v953_v33 = vadd.f32 1.0, %v2268_v32 }
0x10b0   :  { %2269 = vrcp.f32 %v953_v33  ;;  %v965_v46 = vand.u32 2147483648, %v953_v33  ;;  %vm959_vm15 = vweird.f32 %v953_v33  ;;  %v963_v10 = vand.u32 2147483647, %v953_v33 }
0x10b1   :  { %2271 = vtanh.f32 %v698_v50 }
0x10b2   :  { %v966_v49 = vor.u32 1.1754944e-38, %v965_v46  ;;  %vm964_vm4 = vcmp.eq.f32.partialorder %v963_v10, 8.507059e+37 }
0x10b6   :  { %v2270_v35 = vpop.eup %2269 }
0x10b7   :  { %v955_v43 = vmul.f32 %v2270_v35, %v953_v33  ;;  %vm960_vm14 = vweird.f32 %v2270_v35  ;;  %v2272_v54 = vpop.eup %2271 }
0x10b8   :  { %vm961_vm3 = vmor %vm959_vm15, %vm960_vm14 }
0x10b9   :  { %v956_v36 = vsub.f32 1.0, %v955_v43 }
0x10bb   :  { %v957_v44 = vmul.f32 %v2270_v35, %v956_v36 }
0x10bd   :  { %v958_v45 = vadd.f32 %v2270_v35, %v957_v44 }
0x10bf   :  { %v962_v48 = vsel %vm961_vm3, %v2270_v35, %v958_v45 }
0x10c0   :  { %v967_v52 = vsel %vm964_vm4, %v966_v49, %v962_v48 }
0x10c1   :  { %v973_v56 = vmul.f32 %v971_v55, %v967_v52 }
0x111e   :  { %v976_v51 = vpop.permute.xlu1 %975 }
0x111f   :  { %v978_v53 = vmul.f32 %v976_v51, %v967_v52 }
0x1121   :  { %980 = vrot.lane.b32.xlu2 %v978_v53, %s2352_s19 }
0x1129   :  { %724 = vrot.lane.b32.xlu2 %v2272_v54, %s2351_s18 }
0x117b   :  { %v981_v57 = vpop.permute.xlu2 %980 }
0x117c   :  { %v2575_v58 = vadd.f32 %v981_v57, %v973_v56 }
0x117e   :  { %2273 = vtanh.f32 %v2575_v58  ;;  %v1041_v45 = vrot.slane %v2575_v58, 6 }
0x117f   :  { %2275 = vpow2.f32 %v2092_v63 }
0x1183   :  { %v725_v8 = vpop.permute.xlu2 %724 }
0x1184   :  { %v2274_v59 = vpop.eup %2273 }
0x1185   :  { %986 = vrot.lane.b32.xlu0 %v2274_v59, %s2351_s18  ;;  %v2276_v60 = vpop.eup %2275 }
0x1186   :  { %v702_v61 = vadd.f32 1.0, %v2276_v60 }
0x1188   :  { %2277 = vrcp.f32 %v702_v61  ;;  %v714_v9 = vand.u32 2147483648, %v702_v61  ;;  %vm708_vm8 = vweird.f32 %v702_v61  ;;  %v712_v11 = vand.u32 2147483647, %v702_v61 }
0x118a   :  { %v715_v13 = vor.u32 1.1754944e-38, %v714_v9  ;;  %vm713_vm10 = vcmp.eq.f32.partialorder %v712_v11, 8.507059e+37 }
0x118e   :  { %v2278_v62 = vpop.eup %2277 }
0x118f   :  { %v704_v0 = vmul.f32 %v2278_v62, %v702_v61  ;;  %vm709_vm7 = vweird.f32 %v2278_v62 }
0x1190   :  { %vm710_vm9 = vmor %vm708_vm8, %vm709_vm7 }
0x1191   :  { %v705_v1 = vsub.f32 1.0, %v704_v0 }
0x1193   :  { %v706_v2 = vmul.f32 %v2278_v62, %v705_v1 }
0x1195   :  { %v707_v5 = vadd.f32 %v2278_v62, %v706_v2 }
0x1197   :  { %v711_v12 = vsel %vm710_vm9, %v2278_v62, %v707_v5 }
0x1198   :  { %v716_v14 = vsel %vm713_vm10, %v715_v13, %v711_v12 }
0x1199   :  { %v727_v16 = vmul.f32 %v725_v8, %v716_v14  ;;  %v722_v17 = vmul.f32 %v720_v23, %v716_v14 }
0x11f7   :  { %v987_v3 = vpop.permute.xlu0 %986 }
0x11f8   :  { %v989_v4 = vmul.f32 %v987_v3, %v967_v52 }
0x11fa   :  { %v991_v6 = vrot.slane %v989_v4, 4 }
0x11fc   :  { %992 = vrot.lane.b32.xlu1 %v991_v6, %s2352_s19 }
0x1204   :  { %729 = vrot.lane.b32.xlu1 %v727_v16, %s2352_s19 }
0x126e   :  { %v993_v18 = vpop.permute.xlu1 %992 }
0x126f   :  { %2100 = vmatmul.msk.f32.vlgmr.msrb.gmra.mxu3 %vm192_vm5, %v993_v18 }
0x1276   :  { %v730_v25 = vpop.permute.xlu1 %729 }
0x1277   :  { %v732_v26 = vadd.f32 %v730_v25, %v722_v17 }
0x12f2   :  { %v1013_v19 = vpop.f32.mrf.mxu3 }
0x12f3   :  { %v1017_v20 = vrot.slane %v1013_v19, 2 }
0x12f5   :  { %v1019_v22 = vadd.f32 %v1017_v20, %v2516_v42 }
0x12f7   :  { %2279 = vtanh.f32 %v1019_v22  ;;  %v2101_v29 = vmul.f32 -1.442695, %v1019_v22 }
0x12f8   :  { %2281 = vtanh.f32 %v732_v26 }
0x12f9   :  { %2283 = vpow2.f32 %v2101_v29 }
0x12fd   :  { %v2280_v27 = vpop.eup %2279 }
0x12fe   :  { %1045 = vrot.lane.b32.xlu0 %v2280_v27, %s2351_s18  ;;  %v2282_v21 = vpop.eup %2281 }
0x12ff   :  { %v2284_v30 = vpop.eup %2283 }
0x1300   :  { %v1023_v37 = vadd.f32 1.0, %v2284_v30 }
0x1302   :  { %2285 = vrcp.f32 %v1023_v37  ;;  %v1035_v39 = vand.u32 2147483648, %v1023_v37  ;;  %vm1029_vm12 = vweird.f32 %v1023_v37  ;;  %v1033_v40 = vand.u32 2147483647, %v1023_v37 }
0x1304   :  { %v1036_v7 = vor.u32 1.1754944e-38, %v1035_v39  ;;  %vm1034_vm1 = vcmp.eq.f32.partialorder %v1033_v40, 8.507059e+37 }
0x1306   :  { %735 = vrot.lane.b32.xlu0 %v2282_v21, %s2351_s18 }
0x1308   :  { %v2286_v31 = vpop.eup %2285 }
0x1309   :  { %v1025_v42 = vmul.f32 %v2286_v31, %v1023_v37  ;;  %vm1030_vm11 = vweird.f32 %v2286_v31 }
0x130a   :  { %vm1031_vm13 = vmor %vm1029_vm12, %vm1030_vm11 }
0x130b   :  { %v1026_v24 = vsub.f32 1.0, %v1025_v42 }
0x130d   :  { %v1027_v15 = vmul.f32 %v2286_v31, %v1026_v24 }
0x130f   :  { %v1028_v38 = vadd.f32 %v2286_v31, %v1027_v15 }
0x1311   :  { %v1032_v41 = vsel %vm1031_vm13, %v2286_v31, %v1028_v38 }
0x1312   :  { %v1037_v33 = vsel %vm1034_vm1, %v1036_v7, %v1032_v41 }
0x1313   :  { %v1043_v46 = vmul.f32 %v1041_v45, %v1037_v33 }
0x1370   :  { %v1046_v32 = vpop.permute.xlu0 %1045 }
0x1371   :  { %v1048_v35 = vmul.f32 %v1046_v32, %v1037_v33 }
0x1373   :  { %1050 = vrot.lane.b32.xlu2 %v1048_v35, %s2352_s19 }
0x1378   :  { %v736_v43 = vpop.permute.xlu0 %735 }
0x1379   :  { %v738_v36 = vmul.f32 %v736_v43, %v716_v14 }
0x137b   :  { %v747_v44 = vsel %vm743_vm6, %v2560_v28, %v738_v36  ;;  %v1399_v36 = vld [vmem:[%s2041_s5] sm:$0xff] }
0x137c   :  { %760 = vrot.lane.b32.xlu2 %v747_v44, %s2352_s19  ;;  %v1400_v44 = vld [vmem:[%s2041_s5 + $0x8] sm:$0xff]  ;;  %v1401_v45 = vsel %vm192_vm5, %v1399_v36, 0.0 }
0x13cd   :  { %v1051_v10 = vpop.permute.xlu2 %1050 }
0x13ce   :  { %v1053_v47 = vadd.f32 %v1051_v10, %v1043_v46  ;;  %v1404_v46 = vsel %vm192_vm5, %v1400_v44, 0.0 }
0x13d0   :  { %2287 = vtanh.f32 %v1053_v47  ;;  %v1108_v11 = vrot.slane %v1053_v47, 6 }
0x13d6   :  { %v2288_v48 = vpop.eup %2287  ;;  %v761_v49 = vpop.permute.xlu2 %760 }
0x13d7   :  { %1056 = vrot.lane.b32.xlu1 %v2288_v48, %s2351_s18  ;;  %2094 = vmatmul.msk.f32.gmra.mxu2 %vm192_vm5, %v761_v49  ;;  %v2357_v49 = vmov 32.0  }
0x1449   :  { %v1057_v50 = vpop.permute.xlu1 %1056 }
0x144a   :  { %v1059_v51 = vmul.f32 %v1057_v50, %v1037_v33 }
0x144c   :  { %v1061_v52 = vrot.slane %v1059_v51, 6 }
0x144e   :  { %1062 = vrot.lane.b32.xlu0 %v1061_v52, %s2352_s19 }
0x145a   :  { %v786_v53 = vpop.f32.mrf.mxu2 }
0x145b   :  { %v2596_v54 = vadd.f32 %v2512_v34, %v786_v53 }
0x14c0   :  { %v1063_v28 = vpop.permute.xlu0 %1062 }
0x14c1   :  { %2102 = vmatmul.msk.f32.vlgmr.msrb.gmra.mxu0 %vm192_vm5, %v1063_v28 }
0x153e   :  { %v1083_v55 = vpop.f32.mrf.mxu0 }
0x153f   :  { %v1086_v56 = vadd.f32 %v1083_v55, %v2596_v54 }
0x1541   :  { %2289 = vtanh.f32 %v1086_v56  ;;  %v2103_v58 = vmul.f32 -1.442695, %v1086_v56 }
0x1543   :  { %2291 = vpow2.f32 %v2103_v58 }
0x1547   :  { %v2290_v57 = vpop.eup %2289 }
0x1548   :  { %1112 = vrot.lane.b32.xlu1 %v2290_v57, %s2351_s18 }
0x1549   :  { %v2292_v59 = vpop.eup %2291 }
0x154a   :  { %v1090_v63 = vadd.f32 1.0, %v2292_v59 }
0x154c   :  { %2293 = vrcp.f32 %v1090_v63  ;;  %v1102_v34 = vand.u32 2147483648, %v1090_v63  ;;  %vm1096_vm2 = vweird.f32 %v1090_v63  ;;  %v1100_v2 = vand.u32 2147483647, %v1090_v63 }
0x154e   :  { %v1103_v4 = vor.u32 1.1754944e-38, %v1102_v34  ;;  %vm1101_vm15 = vcmp.eq.f32.partialorder %v1100_v2, 8.507059e+37  ;;  %v1467_v2 = vld [vmem:[%s2055_s17 + $0x18] sm:$0xff] }
0x154f   :  { %1490 = vmatpush.msra.mxu2 %v1467_v2 }
0x1552   :  { %v2294_v60 = vpop.eup %2293 }
0x1553   :  { %v1092_v61 = vmul.f32 %v2294_v60, %v1090_v63  ;;  %vm1097_vm6 = vweird.f32 %v2294_v60 }
0x1554   :  { %vm1098_vm14 = vmor %vm1096_vm2, %vm1097_vm6 }
0x1555   :  { %v1093_v62 = vsub.f32 1.0, %v1092_v61 }
0x1557   :  { %v1094_v0 = vmul.f32 %v2294_v60, %v1093_v62 }
0x1559   :  { %v1095_v1 = vadd.f32 %v2294_v60, %v1094_v0 }
0x155b   :  { %v1099_v3 = vsel %vm1098_vm14, %v2294_v60, %v1095_v1 }
0x155c   :  { %v1104_v6 = vsel %vm1101_vm15, %v1103_v4, %v1099_v3  ;;  %v1466_v3 = vld [vmem:[%s2055_s17 + $0x10] sm:$0xff] }
0x155d   :  { %v1110_v12 = vmul.f32 %v1108_v11, %v1104_v6  ;;  %1491 = vmatpush.msra.mxu2 %v1466_v3 }
0x15ba   :  { %v1113_v5 = vpop.permute.xlu1 %1112 }
0x15bb   :  { %v1115_v9 = vmul.f32 %v1113_v5, %v1104_v6  ;;  %v1465_v5 = vld [vmem:[%s2055_s17 + $0x8] sm:$0xff] }
0x15bc   :  { %1492 = vmatpush.msra.mxu2 %v1465_v5 }
0x15bd   :  { %1117 = vrot.lane.b32.xlu2 %v1115_v9, %s2352_s19  ;;  %v1464_v9 = vld [vmem:[%s2055_s17] sm:$0xff]  ;;  %s2071_s17 = sld [smem:[%s2843_s0 + %s2352_s19]]  }
0x15be   :  { %1493 = vmatpush.msra.mxu2 %v1464_v9 }
0x1617   :  { %v1118_v13 = vpop.permute.xlu2 %1117 }
0x1618   :  { %v1120_v8 = vadd.f32 %v1118_v13, %v1110_v12 }
0x161a   :  { %2295 = vtanh.f32 %v1120_v8  ;;  %v1177_v7 = vrot.slane %v1120_v8, 6 }
0x1620   :  { %v2296_v14 = vpop.eup %2295 }
0x1621   :  { %1123 = vrot.lane.b32.xlu0 %v2296_v14, %s2351_s18 }
0x1693   :  { %v1124_v16 = vpop.permute.xlu0 %1123 }
0x1694   :  { %v1126_v18 = vmul.f32 %v1124_v16, %v1104_v6 }
0x1696   :  { %1128 = vrot.lane.b32.xlu1 %v1126_v18, %s2352_s19 }
0x1708   :  { %v1129_v19 = vpop.permute.xlu1 %1128 }
0x1709   :  { %2104 = vmatmul.msk.f32.vlgmr.msra.gmra.mxu1 %vm192_vm5, %v1129_v19 }
0x1786   :  { %v1149_v20 = vpop.f32.mrf.mxu1 }
0x1787   :  { %v1153_v22 = vrot.slane %v1149_v20, 6 }
0x1789   :  { %v1155_v23 = vadd.f32 %v1153_v22, %v2596_v54 }
0x178b   :  { %2297 = vtanh.f32 %v1155_v23  ;;  %v2105_v17 = vmul.f32 -1.442695, %v1155_v23 }
0x178d   :  { %2299 = vpow2.f32 %v2105_v17 }
0x1791   :  { %v2298_v25 = vpop.eup %2297 }
0x1792   :  { %1181 = vrot.lane.b32.xlu2 %v2298_v25, %s2351_s18 }
0x1793   :  { %v2300_v26 = vpop.eup %2299 }
0x1794   :  { %v1159_v27 = vadd.f32 1.0, %v2300_v26 }
0x1796   :  { %2301 = vrcp.f32 %v1159_v27  ;;  %v1171_v42 = vand.u32 2147483648, %v1159_v27  ;;  %vm1165_vm4 = vweird.f32 %v1159_v27  ;;  %v1169_v24 = vand.u32 2147483647, %v1159_v27 }
0x1798   :  { %v1172_v38 = vor.u32 1.1754944e-38, %v1171_v42  ;;  %vm1170_vm8 = vcmp.eq.f32.partialorder %v1169_v24, 8.507059e+37 }
0x179c   :  { %v2302_v21 = vpop.eup %2301 }
0x179d   :  { %v1161_v29 = vmul.f32 %v2302_v21, %v1159_v27  ;;  %vm1166_vm3 = vweird.f32 %v2302_v21 }
0x179e   :  { %vm1167_vm7 = vmor %vm1165_vm4, %vm1166_vm3 }
0x179f   :  { %v1162_v30 = vsub.f32 1.0, %v1161_v29 }
0x17a1   :  { %v1163_v37 = vmul.f32 %v2302_v21, %v1162_v30 }
0x17a3   :  { %v1164_v31 = vadd.f32 %v2302_v21, %v1163_v37 }
0x17a5   :  { %v1168_v15 = vsel %vm1167_vm7, %v2302_v21, %v1164_v31  ;;  %v2178_v21 = vld [vmem:[%s2631_s9] ss:$0 sm:$0xff] }
0x17a6   :  { %v1173_v40 = vsel %vm1170_vm8, %v1172_v38, %v1168_v15  ;;  %v2179_v31 = vld [vmem:[%s2636_s13] ss:$0 sm:$0xff] }
0x17a7   :  { %v1179_v32 = vmul.f32 %v1177_v7, %v1173_v40 }
0x17ec   :  { %v1182_v39 = vpop.permute.xlu2 %1181 }
0x17ed   :  { %v1184_v41 = vmul.f32 %v1182_v39, %v1173_v40 }
0x17ef   :  { %1186 = vrot.lane.b32.xlu0 %v1184_v41, %s2352_s19 }
0x1819   :  { %1402 = vadd.xlane.f32.xlu0 %v1401_v45 }
0x1861   :  { %v1187_v33 = vpop.permute.xlu0 %1186 }
0x1862   :  { %v2607_v35 = vadd.f32 %v1187_v33, %v1179_v32 }
0x1864   :  { %2303 = vtanh.f32 %v2607_v35 }
0x1865   :  { %2305 = vrcp.f32 %v2357_v49 }
0x186a   :  { %v2304_v43 = vpop.eup %2303 }
0x186b   :  { %1192 = vrot.lane.b32.xlu1 %v2304_v43, %s2351_s18  ;;  %v2306_v50 = vpop.eup %2305 }
0x186c   :  { %v1408_v51 = vmul.f32 32.0, %v2306_v50  ;;  %vm1412_vm9 = vweird.f32 %v2306_v50 }
0x186e   :  { %v1409_v52 = vsub.f32 1.0, %v1408_v51 }
0x1870   :  { %v1410_v28 = vmul.f32 %v2306_v50, %v1409_v52 }
0x1872   :  { %v1411_v53 = vadd.f32 %v2306_v50, %v1410_v28 }
0x1874   :  { %v2617_v55 = vsel %vm1412_vm9, %v2306_v50, %v1411_v53 }
0x188c   :  { %v1403_v56 = vpop.xlane.xlu0 %1402 }
0x188d   :  { %v1414_v58 = vmul.f32 %v2617_v55, %v1403_v56 }
0x188f   :  { %v1416_v63 = vsub.f32 %v1399_v36, %v1414_v58 }
0x1891   :  { %v1418_v61 = vmul.f32 %v1416_v63, %v1416_v63 }
0x1893   :  { %v1420_v0 = vsel %vm192_vm5, %v1418_v61, 0.0  ;;  %v1247_v61 = vrot.slane %v2607_v35, 6 }
0x1895   :  { %1405 = vadd.xlane.f32.xlu1 %v1404_v46 }
0x18dd   :  { %v1193_v10 = vpop.permute.xlu1 %1192 }
0x18de   :  { %v1195_v47 = vmul.f32 %v1193_v10, %v1173_v40 }
0x18e0   :  { %v1197_v48 = vrot.slane %v1195_v47, 2 }
0x18e2   :  { %1198 = vrot.lane.b32.xlu2 %v1197_v48, %s2352_s19 }
0x1908   :  { %v1406_v57 = vpop.xlane.xlu1 %1405 }
0x1909   :  { %v1415_v59 = vmul.f32 %v2617_v55, %v1406_v57  ;;  %v2180_v57 = vld [vmem:[%s2646_s23] ss:$0 sm:$0xff] }
0x190b   :  { %v2621_v62 = vsub.f32 %v1400_v44, %v1415_v59  ;;  %1421 = vadd.xlane.f32.xlu2 %v1420_v0 }
0x190d   :  { %v1419_v1 = vmul.f32 %v2621_v62, %v2621_v62 }
0x190f   :  { %v1423_v34 = vsel %vm192_vm5, %v1419_v1, 0.0 }
0x1913   :  { %1424 = vadd.xlane.f32.xlu2 %v1423_v34 }
0x193c   :  { %v1199_v60 = vpop.permute.xlu2 %1198 }
0x193d   :  { %2106 = vmatmul.msk.f32.vlgmr.msrb.gmra.mxu2 %vm192_vm5, %v1199_v60 }
0x197e   :  { %v1422_v4 = vpop.xlane.xlu2 %1421 }
0x197f   :  { %v1426_v6 = vmul.f32 %v1422_v4, %v2617_v55 }
0x1981   :  { %v1428_v11 = vadd.f32 1e-05, %v1426_v6 }
0x1983   :  { %2307 = vrsqrt.f32 %v1428_v11  ;;  %vm1436_vm10 = vweird.f32 %v1428_v11 }
0x1986   :  { %v1425_v12 = vpop.xlane.xlu2 %1424 }
0x1987   :  { %v1427_v13 = vmul.f32 %v1425_v12, %v2617_v55  ;;  %v1540_v12 = vld [vmem:[%s2042_s28] sm:$0xff] }
0x1989   :  { %v2308_v8 = vpop.eup %2307  ;;  %v1429_v14 = vadd.f32 1e-05, %v1427_v13 }
0x198a   :  { %v1431_v16 = vmul.f32 %v2308_v8, %v1428_v11  ;;  %vm1437_vm11 = vweird.f32 %v2308_v8 }
0x198b   :  { %2309 = vrsqrt.f32 %v1429_v14  ;;  %vm1438_vm12 = vmor %vm1436_vm10, %vm1437_vm11  ;;  %vm1446_vm13 = vweird.f32 %v1429_v14 }
0x198c   :  { %v1432_v19 = vmul.f32 %v2308_v8, %v1431_v16 }
0x198e   :  { %v1433_v22 = vmul.f32 0.5, %v1432_v19 }
0x1990   :  { %v1434_v25 = vsub.f32 1.5, %v1433_v22 }
0x1991   :  { %v2310_v17 = vpop.eup %2309 }
0x1992   :  { %v1435_v26 = vmul.f32 %v2308_v8, %v1434_v25  ;;  %v1441_v27 = vmul.f32 %v2310_v17, %v1429_v14  ;;  %vm1447_vm1 = vweird.f32 %v2310_v17  ;;  %v1338_v25 = vld [vmem:[%s2049_s2 + $0x8] sm:$0xff] }
0x1993   :  { %vm1448_vm6 = vmor %vm1446_vm13, %vm1447_vm1  ;;  %1360 = vmatpush.msra.mxu0 %v1338_v25  ;;  %v2182_v25 = vld [vmem:[%s2707_s20] ss:$0 sm:$0xff]  ;;  %s2061_s20 = sld [smem:[%s2843_s0 + %s2375_s15]]  }
0x1994   :  { %v1439_v29 = vsel %vm1438_vm12, %v2308_v8, %v1435_v26  ;;  %v1442_v30 = vmul.f32 %v2310_v17, %v1441_v27  ;;  %v1337_v27 = vld [vmem:[%s2049_s2] sm:$0xff]  ;;  %s2070_s2 = sld [smem:[%s2843_s0 + %s2371_s29]]   ;;  %s2378_s29 = smov 26  }
0x1995   :  { %v1450_v37 = vmul.f32 %v1439_v29, %v1416_v63  ;;  %1361 = vmatpush.msra.mxu0 %v1337_v27 }
0x1996   :  { %v1443_v42 = vmul.f32 0.5, %v1442_v30 }
0x1997   :  { %v1456_v15 = vmul.f32 %v2178_v21, %v1450_v37 }
0x1998   :  { %v1444_v38 = vsub.f32 1.5, %v1443_v42 }
0x1999   :  { %v2652_v39 = vadd.f32 %v2179_v31, %v1456_v15 }
0x199a   :  { %v1445_v40 = vmul.f32 %v2310_v17, %v1444_v38 }
0x199b   :  { %2112 = vmatmul.msk.f32.vlgmr.msra.gmra.mxu2 %vm192_vm5, %v2652_v39 }
0x199c   :  { %v1449_v41 = vsel %vm1448_vm6, %v2310_v17, %v1445_v40 }
0x199d   :  { %v1451_v7 = vmul.f32 %v1449_v41, %v2621_v62 }
0x199f   :  { %v1457_v32 = vmul.f32 %v2178_v21, %v1451_v7  ;;  %v1336_v7 = vld [vmem:[%s2040_s10] sm:$0x3]  ;;  %s2743_s10 = sld [smem:[%s2843_s0 + %s2373_s7]]   ;;  %s2380_s7 = smov 28  }
0x19a0   :  { %2110 = vmatmul.msk.f32.vlgmr.msra.gmra.mxu0 %vm158_vm0, %v1336_v7 }
0x19a1   :  { %v2657_v33 = vadd.f32 %v2179_v31, %v1457_v32  ;;  %v1370_v32 = vld [vmem:[%s2699_s14 + $0x18] sm:$0xff] }
0x19a2   :  { %1390 = vmatpush.msrb.mxu1 %v1370_v32 }
0x19a3   :  { %2113 = vmatmul.msk.f32.gmra.mxu2 %vm192_vm5, %v2657_v33 }
0x19c0   :  { %v1219_v18 = vpop.f32.mrf.mxu2 }
0x19c1   :  { %v1223_v20 = vrot.slane %v1219_v18, 4  ;;  %v1541_v18 = vld [vmem:[%s2042_s28 + $0x8] sm:$0xff]  ;;  %s2058_s28 = sld [smem:[%s2843_s0 + %s2370_s25]]   ;;  %s2377_s25 = smov 24  }
0x19c3   :  { %v1225_v23 = vadd.f32 %v1223_v20, %v2596_v54 }
0x19c5   :  { %2311 = vtanh.f32 %v1225_v23  ;;  %v2107_v43 = vmul.f32 -1.442695, %v1225_v23 }
0x19c7   :  { %2313 = vpow2.f32 %v2107_v43 }
0x19cb   :  { %v2312_v24 = vpop.eup %2311 }
0x19cc   :  { %1251 = vrot.lane.b32.xlu0 %v2312_v24, %s2351_s18 }
0x19cd   :  { %v2314_v36 = vpop.eup %2313 }
0x19ce   :  { %v1229_v44 = vadd.f32 1.0, %v2314_v36 }
0x19d0   :  { %2315 = vrcp.f32 %v1229_v44  ;;  %v1241_v49 = vand.u32 2147483648, %v1229_v44  ;;  %vm1235_vm14 = vweird.f32 %v1229_v44  ;;  %v1239_v50 = vand.u32 2147483647, %v1229_v44 }
0x19d2   :  { %v1242_v52 = vor.u32 1.1754944e-38, %v1241_v49  ;;  %vm1240_vm3 = vcmp.eq.f32.partialorder %v1239_v50, 8.507059e+37 }
0x19d6   :  { %v2316_v45 = vpop.eup %2315 }
0x19d7   :  { %v1231_v46 = vmul.f32 %v2316_v45, %v1229_v44  ;;  %vm1236_vm2 = vweird.f32 %v2316_v45 }
0x19d8   :  { %vm1237_vm15 = vmor %vm1235_vm14, %vm1236_vm2 }
0x19d9   :  { %v1232_v10 = vsub.f32 1.0, %v1231_v46 }
0x19db   :  { %v1233_v47 = vmul.f32 %v2316_v45, %v1232_v10 }
0x19dd   :  { %v1234_v48 = vadd.f32 %v2316_v45, %v1233_v47 }
0x19df   :  { %v1238_v51 = vsel %vm1237_vm15, %v2316_v45, %v1234_v48 }
0x19e0   :  { %v1243_v53 = vsel %vm1240_vm3, %v1242_v52, %v1238_v51  ;;  %vm1789_vm3 = vcmask 523264  }
0x19e1   :  { %v1249_v62 = vmul.f32 %v1247_v61, %v1243_v53 }
0x1a1e   :  { %v1495_v58 = vpop.f32.mrf.mxu2 }
0x1a1f   :  { %v1496_v59 = vadd.f32 %v2180_v57, %v1495_v58 }
0x1a26   :  { %v1498_v63 = vpop.f32.mrf.mxu2 }
0x1a27   :  { %v1499_v60 = vadd.f32 %v2180_v57, %v1498_v63 }
0x1a29   :  { %v2171_v23 = vpack.i.bf16 %v1496_v59, %v1499_v60 }
0x1a3e   :  { %v1252_v28 = vpop.permute.xlu0 %1251 }
0x1a3f   :  { %v1254_v56 = vmul.f32 %v1252_v28, %v1243_v53 }
0x1a41   :  { %1256 = vrot.lane.b32.xlu1 %v1254_v56, %s2352_s19 }
0x1a49   :  { %1505 = vrot.lane.b32.xlu1 %v1499_v60, %s2362_s24 }
0x1ab3   :  { %v1257_v0 = vpop.permute.xlu1 %1256 }
0x1ab4   :  { %v2664_v1 = vadd.f32 %v1257_v0, %v1249_v62 }
0x1ab6   :  { %2317 = vtanh.f32 %v2664_v1 }
0x1abb   :  { %v1506_v2 = vpop.permute.xlu1 %1505 }
0x1abc   :  { %v2318_v34 = vpop.eup %2317  ;;  %2114 = vmatpush.xpose.msk.msrb.mxu3 %vm192_vm5, %v1506_v2  ;;  %v1369_v2 = vld [vmem:[%s2699_s14 + $0x10] sm:$0xff] }
0x1abd   :  { %1262 = vrot.lane.b32.xlu2 %v2318_v34, %s2351_s18  ;;  %1391 = vmatpush.msrb.mxu1 %v1369_v2 }
0x1b17   :  { %v1263_v3 = vpop.permute.xlu2 %1262 }
0x1b18   :  { %v1265_v4 = vmul.f32 %v1263_v3, %v1243_v53  ;;  %v1368_v3 = vld [vmem:[%s2699_s14 + $0x8] sm:$0xff] }
0x1b19   :  { %1392 = vmatpush.msrb.mxu1 %v1368_v3 }
0x1b1a   :  { %v1267_v5 = vrot.slane %v1265_v4, 4  ;;  %v1367_v4 = vld [vmem:[%s2699_s14] sm:$0xff]  ;;  %s2748_s14 = sld [smem:[%s2843_s0 + %s2374_s11]]   ;;  %s2381_s11 = smov 29  }
0x1b1b   :  { %1393 = vmatpush.msrb.mxu1 %v1367_v4  ;;  %v2185_v4 = vld [vmem:[%s2743_s10] ss:$0 sm:$0xff]  ;;  %s2067_s10 = sld [smem:[%s2843_s0 + %s2380_s7]]  }
0x1b1c   :  { %1268 = vrot.lane.b32.xlu0 %v1267_v5, %s2352_s19  ;;  %s2075_s7 = sld [smem:[%s2843_s0 + %s2386_s4]]  }
0x1b24   :  { %1503 = vrot.lane.b32.xlu0 %v1496_v59, %s2362_s24  ;;  %s2057_s24 = sld [smem:[%s2843_s0 + %s2369_s21]]   ;;  %s2376_s21 = smov 25  }
0x1b2a   :  { %v1630_v5 = vld [vmem:[%s2057_s24 + $0x18] sm:$0xff] }
0x1b2b   :  { %1653 = vmatpush.msra.mxu1 %v1630_v5 }
0x1b8e   :  { %v1269_v6 = vpop.permute.xlu0 %1268 }
0x1b8f   :  { %2108 = vmatmul.msk.f32.vlgmr.msra.gmra.mxu3 %vm192_vm5, %v1269_v6  ;;  %v1629_v6 = vld [vmem:[%s2057_s24 + $0x10] sm:$0xff] }
0x1b90   :  { %1654 = vmatpush.msra.mxu1 %v1629_v6 }
0x1b96   :  { %v1504_v35 = vpop.permute.xlu0 %1503 }
0x1b97   :  { %2115 = vmatpush.xpose.msk.msrb.mxu3 %vm192_vm5, %v1504_v35  ;;  %v1628_v35 = vld [vmem:[%s2057_s24 + $0x8] sm:$0xff] }
0x1b98   :  { %1655 = vmatpush.msra.mxu1 %v1628_v35 }
0x1b9a   :  { %2116 = vmatmul.msk.f32.vlgmr.msrb.gmra.mxu3 %vm192_vm5, %v1496_v59 }
0x1ba2   :  { %2117 = vmatmul.msk.f32.gmra.mxu3 %vm192_vm5, %v1499_v60 }
0x1c12   :  { %v2674_v9 = vpop.f32.mrf.mxu3 }
0x1c1d   :  { %v1532_v11 = vpop.f32.mrf.mxu3 }
0x1c1e   :  { %v1538_v13 = vmul.f32 0.17677669, %v1532_v11  ;;  %v2181_v11 = vld [vmem:[%s2690_s6] ss:$0 sm:$0xff]  ;;  %s2732_s6 = sld [smem:[%s2843_s0 + %s2372_s3]]   ;;  %s2379_s3 = smov 27  }
0x1c20   :  { %v1542_v8 = vadd.f32 %v1540_v12, %v1538_v13  ;;  %v1363_v12 = vpop.f32.mrf.mxu0 }
0x1c21   :  { %v1364_v13 = vadd.f32 %v2181_v11, %v1363_v12 }
0x1c22   :  { %v1544_v14 = vsel %vm158_vm0, %v1542_v8, -inf }
0x1c23   :  { %1545 = vmax.xlane.f32.xlu2 %v1544_v14  ;;  %v1627_v14 = vld [vmem:[%s2057_s24] sm:$0xff]  ;;  %s2762_s24 = sld [smem:[%s2843_s0 + %s2376_s21]]  }
0x1c24   :  { %1656 = vmatpush.msra.mxu1 %v1627_v14 }
0x1c25   :  { %v1535_v16 = vpop.f32.mrf.mxu3 }
0x1c26   :  { %v1539_v19 = vmul.f32 0.17677669, %v1535_v16  ;;  %v1920_v16 = vld [vmem:[%s2070_s2 + $0x18] sm:$0xff] }
0x1c28   :  { %v1543_v20 = vadd.f32 %v1541_v18, %v1539_v19 }
0x1c2a   :  { %v1547_v22 = vsel %vm158_vm0, %v1543_v20, -inf }
0x1c2b   :  { %1548 = vmax.xlane.f32.xlu1 %v1547_v22  ;;  %v1918_v22 = vld [vmem:[%s2070_s2 + $0x8] sm:$0xff] }
0x1c44   :  { %2172 = vrot.lane.b32.xlu1 %v2171_v23, %s2351_s18  ;;  %v1917_v23 = vld [vmem:[%s2070_s2] sm:$0xff] }
0x1c96   :  { %v1546_v17 = vpop.xlane.xlu2 %1545 }
0x1c97   :  { %v1550_v26 = vsub.f32 %v1542_v8, %v1546_v17  ;;  %v1366_v8 = vmax.f32 %v1364_v13, 0.0 }
0x1c99   :  { %v1552_v21 = vmul.f32 1.442695, %v1550_v26  ;;  %2111 = vmatmul.msk.f32.vlgmr.msrb.gmra.mxu1 %vm192_vm5, %v1366_v8 }
0x1c9a   :  { %1936 = vmatpush.msrb.mxu1 %v1920_v16 }
0x1c9b   :  { %2319 = vpow2.f32 %v1552_v21  ;;  %v2183_v21 = vld [vmem:[%s2058_s28] ss:$0 sm:$0xff]  ;;  %s2063_s28 = sld [smem:[%s2843_s0 + %s2377_s25]]  }
0x1c9e   :  { %v1549_v29 = vpop.xlane.xlu1 %1548 }
0x1c9f   :  { %v1551_v30 = vsub.f32 %v1543_v20, %v1549_v29  ;;  %v1919_v20 = vld [vmem:[%s2070_s2 + $0x10] sm:$0xff]  ;;  %s2776_s2 = sld [smem:[%s2843_s0 + %s2378_s29]]  }
0x1ca0   :  { %1937 = vmatpush.msrb.mxu1 %v1919_v20  ;;  %s2074_s29 = sld [smem:[%s2843_s0 + %s2384_s26]]  }
0x1ca1   :  { %v2320_v37 = vpop.eup %2319  ;;  %v1554_v31 = vmul.f32 1.442695, %v1551_v30  ;;  %v1782_v20 = vld [vmem:[%s2063_s28 + $0x28] sm:$0xff] }
0x1ca2   :  { %v1556_v42 = vsel %vm158_vm0, %v2320_v37, 0.0  ;;  %1938 = vmatpush.msrb.mxu1 %v1918_v22  ;;  %v1781_v22 = vld [vmem:[%s2063_s28 + $0x20] sm:$0xff] }
0x1ca3   :  { %2321 = vpow2.f32 %v1554_v31  ;;  %1557 = vadd.xlane.f32.xlu0 %v1556_v42 }
0x1ca4   :  { %1939 = vmatpush.msrb.mxu1 %v1917_v23  ;;  %v1780_v23 = vld [vmem:[%s2063_s28 + $0x18] sm:$0xff] }
0x1ca9   :  { %v2322_v24 = vpop.eup %2321 }
0x1caa   :  { %v1559_v15 = vsel %vm158_vm0, %v2322_v24, 0.0 }
0x1cab   :  { %1560 = vadd.xlane.f32.xlu2 %v1559_v15 }
0x1cb6   :  { %v2173_v38 = vpop.permute.xlu1 %2172 }
0x1cb7   :  { %v2174_v40 = vunpack.i.l.bf16 %v2173_v38  ;;  %v2175_v41 = vunpack.i.h.bf16 %v2173_v38 }
0x1cb9   :  { %1618 = vmatpush.msrb.mxu0 %v2174_v40 }
0x1cbb   :  { %1619 = vmatpush.msrb.mxu0 %v2175_v41 }
0x1d16   :  { %v1558_v43 = vpop.xlane.xlu0 %1557  ;;  %v1395_v17 = vpop.f32.mrf.mxu1 }
0x1d17   :  { %2323 = vrcp.f32 %v1558_v43  ;;  %v1573_v10 = vand.u32 2147483648, %v1558_v43  ;;  %v1571_v48 = vand.u32 2147483647, %v1558_v43  ;;  %vm1567_vm7 = vweird.f32 %v1558_v43 }
0x1d18   :  { %v1396_v26 = vadd.f32 %v2182_v25, %v1395_v17  ;;  %v1779_v25 = vld [vmem:[%s2063_s28 + $0x10] sm:$0xff]  ;;  %v1778_v17 = vld [vmem:[%s2063_s28 + $0x8] sm:$0xff] }
0x1d19   :  { %v1574_v51 = vor.u32 1.1754944e-38, %v1573_v10  ;;  %vm1572_vm9 = vcmp.eq.f32.partialorder %v1571_v48, 8.507059e+37  ;;  %v1724_v10 = vld [vmem:[%s2061_s20 + $0x10] sm:$0xff]  ;;  %v1722_v48 = vld [vmem:[%s2061_s20] sm:$0xff] }
0x1d1a   :  { %v1398_v27 = vmax.f32 %v1396_v26, 0.0  ;;  %v1777_v26 = vld [vmem:[%s2063_s28] sm:$0xff] }
0x1d1d   :  { %v2324_v36 = vpop.eup %2323 }
0x1d1e   :  { %v1563_v44 = vmul.f32 %v2324_v36, %v1558_v43  ;;  %v1561_v45 = vpop.xlane.xlu2 %1560  ;;  %vm1568_vm4 = vweird.f32 %v2324_v36 }
0x1d1f   :  { %2325 = vrcp.f32 %v1561_v45  ;;  %vm1569_vm8 = vmor %vm1567_vm7, %vm1568_vm4  ;;  %v1588_v58 = vand.u32 2147483648, %v1561_v45  ;;  %v1586_v63 = vand.u32 2147483647, %v1561_v45  ;;  %vm1582_vm11 = vweird.f32 %v1561_v45 }
0x1d20   :  { %v1564_v46 = vsub.f32 1.0, %v1563_v44 }
0x1d21   :  { %v1589_v61 = vor.u32 1.1754944e-38, %v1588_v58  ;;  %vm1587_vm13 = vcmp.eq.f32.partialorder %v1586_v63, 8.507059e+37 }
0x1d22   :  { %v1565_v47 = vmul.f32 %v2324_v36, %v1564_v46 }
0x1d24   :  { %v1566_v49 = vadd.f32 %v2324_v36, %v1565_v47  ;;  %v1723_v47 = vld [vmem:[%s2061_s20 + $0x8] sm:$0xff] }
0x1d25   :  { %v2326_v50 = vpop.eup %2325 }
0x1d26   :  { %v1570_v52 = vsel %vm1569_vm8, %v2324_v36, %v1566_v49  ;;  %v1578_v28 = vmul.f32 %v2326_v50, %v1561_v45  ;;  %vm1583_vm10 = vweird.f32 %v2326_v50 }
0x1d27   :  { %v1575_v53 = vsel %vm1572_vm9, %v1574_v51, %v1570_v52  ;;  %vm1584_vm12 = vmor %vm1582_vm11, %vm1583_vm10 }
0x1d28   :  { %v1579_v56 = vsub.f32 1.0, %v1578_v28  ;;  %v1576_v57 = vmul.f32 %v2320_v37, %v1575_v53 }
0x1d2a   :  { %v1580_v59 = vmul.f32 %v2326_v50, %v1579_v56  ;;  %2118 = vmatmul.msk.f32.vlgmr.msrb.gmra.mxu0 %vm158_vm0, %v1576_v57 }
0x1d2c   :  { %v1581_v60 = vadd.f32 %v2326_v50, %v1580_v59 }
0x1d2e   :  { %v1585_v62 = vsel %vm1584_vm12, %v2326_v50, %v1581_v60 }
0x1d2f   :  { %v1590_v0 = vsel %vm1587_vm13, %v1589_v61, %v1585_v62 }
0x1d30   :  { %v1591_v34 = vmul.f32 %v2322_v24, %v1590_v0  ;;  %v2184_v0 = vld [vmem:[%s2732_s6] ss:$0 sm:$0xff]  ;;  %s2794_s6 = sld [smem:[%s2843_s0 + %s2379_s3]]  }
0x1d31   :  { %s2073_s3 = sld [smem:[%s2843_s0 + %s2385_s30]]  }
0x1d32   :  { %2119 = vmatmul.msk.f32.gmra.mxu0 %vm158_vm0, %v1591_v34 }
0x1da7   :  { %v1621_v18 = vpop.f32.mrf.mxu0 }
0x1da8   :  { %2120 = vmatmul.msk.f32.vlgmr.msra.gmra.mxu1 %vm192_vm5, %v1621_v18  ;;  %v1784_v18 = vld [vmem:[%s2063_s28 + $0x38] sm:$0xff] }
0x1da9   :  { %1804 = vmatpush.msra.mxu3 %v1784_v18 }
0x1daf   :  { %v1624_v19 = vpop.f32.mrf.mxu0 }
0x1db0   :  { %2121 = vmatmul.msk.f32.gmra.mxu1 %vm192_vm5, %v1624_v19  ;;  %v1783_v19 = vld [vmem:[%s2063_s28 + $0x30] sm:$0xff] }
0x1db1   :  { %1805 = vmatpush.msra.mxu3 %v1783_v19 }
0x1db3   :  { %1806 = vmatpush.msra.mxu3 %v1782_v20 }
0x1db5   :  { %1807 = vmatpush.msra.mxu3 %v1781_v22 }
0x1db7   :  { %1808 = vmatpush.msra.mxu3 %v1780_v23 }
0x1db8   :  { %2127 = vmatmul.msk.f32.vlgmr.msrb.gmra.mxu1 %vm192_vm5, %v1398_v27  ;;  %v2186_v27 = vld [vmem:[%s2748_s14] ss:$0 sm:$0xff]  ;;  %s2806_s14 = sld [smem:[%s2843_s0 + %s2381_s11]]  }
0x1db9   :  { %1809 = vmatpush.msra.mxu3 %v1779_v25 }
0x1dbb   :  { %1810 = vmatpush.msra.mxu3 %v1778_v17 }
0x1dbd   :  { %1811 = vmatpush.msra.mxu3 %v1777_v26 }
0x1e25   :  { %v1658_v29 = vpop.f32.mrf.mxu1 }
0x1e26   :  { %v1659_v30 = vadd.f32 %v2183_v21, %v1658_v29 }
0x1e28   :  { %v1664_v37 = vadd.f32 %v1659_v30, %v2652_v39 }
0x1e2a   :  { %v1666_v31 = vsel %vm192_vm5, %v1664_v37, 0.0 }
0x1e2b   :  { %1667 = vadd.xlane.f32.xlu0 %v1666_v31 }
0x1e2d   :  { %v1661_v42 = vpop.f32.mrf.mxu1 }
0x1e2e   :  { %v1662_v24 = vadd.f32 %v2183_v21, %v1661_v42 }
0x1e30   :  { %v1665_v15 = vadd.f32 %v1662_v24, %v2657_v33  ;;  %v1725_v33 = vld [vmem:[%s2061_s20 + $0x18] sm:$0xff] }
0x1e31   :  { %1748 = vmatpush.msrb.mxu2 %v1725_v33 }
0x1e32   :  { %v1669_v38 = vsel %vm192_vm5, %v1665_v15, 0.0 }
0x1e33   :  { %1670 = vadd.xlane.f32.xlu2 %v1669_v38  ;;  %1749 = vmatpush.msrb.mxu2 %v1724_v10 }
0x1e35   :  { %1750 = vmatpush.msrb.mxu2 %v1723_v47 }
0x1e37   :  { %1751 = vmatpush.msrb.mxu2 %v1722_v48  ;;  %v2187_v48 = vld [vmem:[%s2762_s24] ss:$0 sm:$0xff] }
0x1e9e   :  { %v1668_v40 = vpop.xlane.xlu0 %1667 }
0x1e9f   :  { %v1672_v41 = vmul.f32 %v1668_v40, %v2617_v55 }
0x1ea1   :  { %v1674_v39 = vsub.f32 %v1664_v37, %v1672_v41 }
0x1ea3   :  { %v1676_v7 = vmul.f32 %v1674_v39, %v1674_v39 }
0x1ea5   :  { %v1678_v32 = vsel %vm192_vm5, %v1676_v7, 0.0 }
0x1ea6   :  { %1679 = vadd.xlane.f32.xlu0 %v1678_v32  ;;  %v1671_v43 = vpop.xlane.xlu2 %1670 }
0x1ea7   :  { %v1673_v36 = vmul.f32 %v1671_v43, %v2617_v55 }
0x1ea9   :  { %v1675_v44 = vsub.f32 %v1665_v15, %v1673_v36 }
0x1eab   :  { %v1677_v45 = vmul.f32 %v1675_v44, %v1675_v44 }
0x1ead   :  { %v1681_v46 = vsel %vm192_vm5, %v1677_v45, 0.0 }
0x1eae   :  { %1682 = vadd.xlane.f32.xlu2 %v1681_v46 }
0x1f19   :  { %v1680_v49 = vpop.xlane.xlu0 %1679 }
0x1f1a   :  { %v1684_v50 = vmul.f32 %v1680_v49, %v2617_v55 }
0x1f1c   :  { %v1686_v51 = vadd.f32 1e-05, %v1684_v50 }
0x1f1e   :  { %2327 = vrsqrt.f32 %v1686_v51  ;;  %vm1694_vm1 = vweird.f32 %v1686_v51 }
0x1f21   :  { %v1683_v52 = vpop.xlane.xlu2 %1682 }
0x1f22   :  { %v1685_v28 = vmul.f32 %v1683_v52, %v2617_v55 }
0x1f24   :  { %v2328_v53 = vpop.eup %2327  ;;  %v1687_v56 = vadd.f32 1e-05, %v1685_v28 }
0x1f25   :  { %v1689_v57 = vmul.f32 %v2328_v53, %v1686_v51  ;;  %vm1695_vm0 = vweird.f32 %v2328_v53 }
0x1f26   :  { %2329 = vrsqrt.f32 %v1687_v56  ;;  %vm1696_vm6 = vmor %vm1694_vm1, %vm1695_vm0  ;;  %vm1704_vm14 = vweird.f32 %v1687_v56 }
0x1f27   :  { %v1690_v58 = vmul.f32 %v2328_v53, %v1689_v57 }
0x1f29   :  { %v1691_v59 = vmul.f32 0.5, %v1690_v58  ;;  %v1293_v58 = vrot.slane %v2674_v9, 2 }
0x1f2b   :  { %v1692_v63 = vsub.f32 1.5, %v1691_v59  ;;  %v1295_v59 = vadd.f32 %v1293_v58, %v2596_v54 }
0x1f2c   :  { %v2330_v60 = vpop.eup %2329 }
0x1f2d   :  { %v1693_v61 = vmul.f32 %v2328_v53, %v1692_v63  ;;  %v1699_v62 = vmul.f32 %v2330_v60, %v1687_v56  ;;  %vm1705_vm2 = vweird.f32 %v2330_v60 }
0x1f2e   :  { %vm1706_vm15 = vmor %vm1704_vm14, %vm1705_vm2 }
0x1f2f   :  { %v1697_v34 = vsel %vm1696_vm6, %v2328_v53, %v1693_v61  ;;  %v1700_v2 = vmul.f32 %v2330_v60, %v1699_v62  ;;  %vm1880_vm6 = vcmask 1040384  }
0x1f30   :  { %v1708_v3 = vmul.f32 %v1697_v34, %v1674_v39 }
0x1f31   :  { %v1701_v5 = vmul.f32 0.5, %v1700_v2 }
0x1f32   :  { %v1714_v6 = vmul.f32 %v2184_v0, %v1708_v3 }
0x1f33   :  { %v1702_v35 = vsub.f32 1.5, %v1701_v5 }
0x1f34   :  { %v1720_v11 = vadd.f32 %v2185_v4, %v1714_v6 }
0x1f35   :  { %v1703_v12 = vmul.f32 %v2330_v60, %v1702_v35 }
0x1f36   :  { %2122 = vmatmul.msk.f32.vlgmr.msrb.gmra.mxu2 %vm192_vm5, %v1720_v11 }
0x1f37   :  { %v1707_v13 = vsel %vm1706_vm15, %v2330_v60, %v1703_v12  ;;  %v2109_v60 = vmul.f32 -1.442695, %v1295_v59 }
0x1f38   :  { %v1709_v8 = vmul.f32 %v1707_v13, %v1675_v44 }
0x1f3a   :  { %v1715_v14 = vmul.f32 %v2184_v0, %v1709_v8 }
0x1f3c   :  { %v1721_v16 = vadd.f32 %v2185_v4, %v1715_v14 }
0x1f3e   :  { %2123 = vmatmul.msk.f32.gmra.mxu2 %vm192_vm5, %v1721_v16 }
0x1fb9   :  { %v1753_v21 = vpop.f32.mrf.mxu2 }
0x1fba   :  { %v1754_v29 = vadd.f32 %v2186_v27, %v1753_v21  ;;  %v1884_v21 = vld [vmem:[%s2067_s10 + $0x10] sm:$0xff] }
0x1fbc   :  { %v1759_v30 = vmul.f32 %v1754_v29, %v1754_v29 }
0x1fbe   :  { %v1761_v37 = vmul.f32 %v1759_v30, %v1754_v29  ;;  %v1883_v30 = vld [vmem:[%s2067_s10 + $0x8] sm:$0xff] }
0x1fc0   :  { %v1763_v31 = vmul.f32 0.044715, %v1761_v37  ;;  %v1882_v37 = vld [vmem:[%s2067_s10] sm:$0xff] }
0x1fc1   :  { %v1756_v42 = vpop.f32.mrf.mxu2 }
0x1fc2   :  { %v1765_v24 = vadd.f32 %v1763_v31, %v1754_v29  ;;  %v1757_v15 = vadd.f32 %v2186_v27, %v1756_v42  ;;  %v1885_v27 = vld [vmem:[%s2067_s10 + $0x18] sm:$0xff] }
0x1fc3   :  { %1905 = vmatpush.msra.mxu0 %v1885_v27  ;;  %v2192_v27 = vld [vmem:[%s2074_s29] ss:$0 sm:$0xff] }
0x1fc4   :  { %v1767_v38 = vmul.f32 0.7978846, %v1765_v24  ;;  %v1760_v40 = vmul.f32 %v1757_v15, %v1757_v15 }
0x1fc5   :  { %1906 = vmatpush.msra.mxu0 %v1884_v21 }
0x1fc6   :  { %2331 = vtanh.f32 %v1767_v38  ;;  %v1762_v41 = vmul.f32 %v1760_v40, %v1757_v15 }
0x1fc7   :  { %1907 = vmatpush.msra.mxu0 %v1883_v30 }
0x1fc8   :  { %v1764_v39 = vmul.f32 0.044715, %v1762_v41  ;;  %v1317_v41 = vrot.slane %v2664_v1, 6 }
0x1fc9   :  { %1908 = vmatpush.msra.mxu0 %v1882_v37 }
0x1fca   :  { %v1766_v7 = vadd.f32 %v1764_v39, %v1757_v15 }
0x1fcc   :  { %v2332_v32 = vpop.eup %2331  ;;  %v1768_v43 = vmul.f32 0.7978846, %v1766_v7 }
0x1fcd   :  { %v1771_v36 = vadd.f32 1.0, %v2332_v32 }
0x1fce   :  { %2333 = vtanh.f32 %v1768_v43 }
0x1fcf   :  { %v1773_v44 = vmul.f32 0.5, %v1771_v36  ;;  %2335 = vtanh.f32 %v1295_v59 }
0x1fd0   :  { %2337 = vpow2.f32 %v2109_v60  ;;  %v1973_v60 = vld [vmem:[%s2071_s17 + $0x18] sm:$0xff] }
0x1fd1   :  { %v1775_v45 = vmul.f32 %v1773_v44, %v1754_v29  ;;  %1989 = vmatpush.msra.mxu1 %v1973_v60 }
0x1fd3   :  { %2124 = vmatmul.msk.f32.vlgmr.msra.gmra.mxu3 %vm1789_vm3, %v1775_v45 }
0x1fd4   :  { %v2334_v46 = vpop.eup %2333 }
0x1fd5   :  { %v1772_v33 = vadd.f32 1.0, %v2334_v46  ;;  %v2336_v63 = vpop.eup %2335 }
0x1fd6   :  { %v2338_v61 = vpop.eup %2337 }
0x1fd7   :  { %v1774_v10 = vmul.f32 0.5, %v1772_v33  ;;  %v1299_v62 = vadd.f32 1.0, %v2338_v61  ;;  %v1972_v61 = vld [vmem:[%s2071_s17 + $0x10] sm:$0xff] }
0x1fd8   :  { %1990 = vmatpush.msra.mxu1 %v1972_v61 }
0x1fd9   :  { %v1776_v47 = vmul.f32 %v1774_v10, %v1757_v15  ;;  %2339 = vrcp.f32 %v1299_v62  ;;  %vm1305_vm7 = vweird.f32 %v1299_v62  ;;  %v1309_v18 = vand.u32 2147483647, %v1299_v62 }
0x1fdb   :  { %2125 = vmatmul.msk.f32.gmra.mxu3 %vm1789_vm3, %v1776_v47  ;;  %vm1310_vm9 = vcmp.eq.f32.partialorder %v1309_v18, 8.507059e+37  ;;  %v1941_v18 = vpop.f32.mrf.mxu1 }
0x1fdf   :  { %v2340_v34 = vpop.eup %2339 }
0x1fe0   :  { %v1301_v3 = vmul.f32 %v2340_v34, %v1299_v62  ;;  %vm1306_vm4 = vweird.f32 %v2340_v34 }
0x1fe1   :  { %vm1307_vm8 = vmor %vm1305_vm7, %vm1306_vm4 }
0x1fe2   :  { %v1302_v35 = vsub.f32 1.0, %v1301_v3 }
0x1fe4   :  { %v1303_v13 = vmul.f32 %v2340_v34, %v1302_v35 }
0x1fe6   :  { %v1304_v14 = vadd.f32 %v2340_v34, %v1303_v13  ;;  %v2007_v13 = vld [vmem:[%s2073_s3 + $0x18] sm:$0xff] }
0x1fe7   :  { %2027 = vmatpush.msra.mxu2 %v2007_v13 }
0x1fe8   :  { %v1308_v19 = vsel %vm1307_vm8, %v2340_v34, %v1304_v14  ;;  %v1971_v34 = vld [vmem:[%s2071_s17 + $0x8] sm:$0xff] }
0x1fe9   :  { %1991 = vmatpush.msra.mxu1 %v1971_v34  ;;  %v2005_v14 = vld [vmem:[%s2073_s3 + $0x8] sm:$0xff] }
0x2056   :  { %v1813_v49 = vpop.f32.mrf.mxu3 }
0x2057   :  { %v1814_v50 = vadd.f32 %v2187_v48, %v1813_v49  ;;  %v2188_v49 = vld [vmem:[%s2776_s2] ss:$0 sm:$0xff] }
0x2059   :  { %v1819_v51 = vadd.f32 %v1814_v50, %v1720_v11 }
0x205b   :  { %v1821_v52 = vsel %vm192_vm5, %v1819_v51, 0.0 }
0x205c   :  { %1822 = vadd.xlane.f32.xlu2 %v1821_v52 }
0x205e   :  { %v1816_v28 = vpop.f32.mrf.mxu3 }
0x205f   :  { %v1817_v53 = vadd.f32 %v2187_v48, %v1816_v28 }
0x2061   :  { %v1820_v56 = vadd.f32 %v1817_v53, %v1721_v16  ;;  %v1311_v16 = vand.u32 2147483648, %v1299_v62 }
0x2063   :  { %v1824_v57 = vsel %vm192_vm5, %v1820_v56, 0.0  ;;  %v1312_v20 = vor.u32 1.1754944e-38, %v1311_v16  ;;  %v2004_v16 = vld [vmem:[%s2073_s3] sm:$0xff] }
0x2064   :  { %1825 = vadd.xlane.f32.xlu0 %v1824_v57 }
0x2065   :  { %v2796_v23 = vsel %vm1310_vm9, %v1312_v20, %v1308_v19 }
0x2066   :  { %v1319_v32 = vmul.f32 %v1317_v41, %v2796_v23 }
0x2074   :  { %1321 = vrot.lane.b32.xlu2 %v2336_v63, %s2351_s18 }
0x20cf   :  { %v1823_v0 = vpop.xlane.xlu2 %1822 }
0x20d0   :  { %v1827_v9 = vmul.f32 %v1823_v0, %v2617_v55 }
0x20d2   :  { %v2780_v54 = vsub.f32 %v1819_v51, %v1827_v9 }
0x20d4   :  { %v1831_v2 = vmul.f32 %v2780_v54, %v2780_v54 }
0x20d6   :  { %v1833_v4 = vsel %vm192_vm5, %v1831_v2, 0.0 }
0x20d7   :  { %v1826_v5 = vpop.xlane.xlu0 %1825  ;;  %1834 = vadd.xlane.f32.xlu0 %v1833_v4  ;;  %v1322_v22 = vpop.permute.xlu2 %1321 }
0x20d8   :  { %v1828_v6 = vmul.f32 %v1826_v5, %v2617_v55  ;;  %v1324_v25 = vmul.f32 %v1322_v22, %v2796_v23 }
0x20da   :  { %v2786_v11 = vsub.f32 %v1820_v56, %v1828_v6  ;;  %v2189_v56 = vld [vmem:[%s2794_s6] ss:$0 sm:$0xff] }
0x20db   :  { %v2190_v6 = vld [vmem:[%s2806_s14] ss:$0 sm:$0xff] }
0x20dc   :  { %v1832_v12 = vmul.f32 %v2786_v11, %v2786_v11 }
0x20de   :  { %v1836_v8 = vsel %vm192_vm5, %v1832_v12, 0.0 }
0x20df   :  { %1837 = vadd.xlane.f32.xlu1 %v1836_v8  ;;  %v2006_v8 = vld [vmem:[%s2073_s3 + $0x10] sm:$0xff] }
0x20e0   :  { %2028 = vmatpush.msra.mxu2 %v2006_v8 }
0x20e2   :  { %2029 = vmatpush.msra.mxu2 %v2005_v14 }
0x20e4   :  { %2030 = vmatpush.msra.mxu2 %v2004_v16 }
0x20eb   :  { %1326 = vrot.lane.b32.xlu0 %v1324_v25, %s2352_s19 }
0x214a   :  { %v1835_v17 = vpop.xlane.xlu0 %1834 }
0x214b   :  { %v1839_v26 = vmul.f32 %v1835_v17, %v2617_v55 }
0x214d   :  { %v1841_v29 = vadd.f32 1e-05, %v1839_v26 }
0x214f   :  { %2341 = vrsqrt.f32 %v1841_v29  ;;  %vm1849_vm11 = vweird.f32 %v1841_v29 }
0x2152   :  { %v1838_v31 = vpop.xlane.xlu1 %1837 }
0x2153   :  { %v1840_v42 = vmul.f32 %v1838_v31, %v2617_v55 }
0x2155   :  { %v2342_v24 = vpop.eup %2341  ;;  %v1842_v15 = vadd.f32 1e-05, %v1840_v42 }
0x2156   :  { %v1844_v38 = vmul.f32 %v2342_v24, %v1841_v29  ;;  %vm1850_vm10 = vweird.f32 %v2342_v24 }
0x2157   :  { %2343 = vrsqrt.f32 %v1842_v15  ;;  %vm1851_vm12 = vmor %vm1849_vm11, %vm1850_vm10  ;;  %vm1859_vm0 = vweird.f32 %v1842_v15 }
0x2158   :  { %v1845_v40 = vmul.f32 %v2342_v24, %v1844_v38 }
0x215a   :  { %v1846_v39 = vmul.f32 0.5, %v1845_v40 }
0x215c   :  { %v1847_v7 = vsub.f32 1.5, %v1846_v39 }
0x215d   :  { %v2344_v43 = vpop.eup %2343  ;;  %v1327_v36 = vpop.permute.xlu0 %1326 }
0x215e   :  { %v1854_v44 = vmul.f32 %v2344_v43, %v1842_v15  ;;  %v1329_v45 = vadd.f32 %v1327_v36, %v1319_v32  ;;  %v1848_v46 = vmul.f32 %v2342_v24, %v1847_v7  ;;  %vm1860_vm13 = vweird.f32 %v2344_v43 }
0x215f   :  { %vm1861_vm1 = vmor %vm1859_vm0, %vm1860_vm13 }
0x2160   :  { %v1855_v33 = vmul.f32 %v2344_v43, %v1854_v44  ;;  %2345 = vtanh.f32 %v1329_v45  ;;  %v1852_v10 = vsel %vm1851_vm12, %v2342_v24, %v1848_v46 }
0x2161   :  { %v1863_v50 = vmul.f32 %v1852_v10, %v2780_v54  ;;  %v1970_v54 = vld [vmem:[%s2071_s17] sm:$0xff] }
0x2162   :  { %v1856_v55 = vmul.f32 0.5, %v1855_v33  ;;  %1992 = vmatpush.msra.mxu1 %v1970_v54 }
0x2163   :  { %v1869_v28 = vmul.f32 %v2188_v49, %v1863_v50 }
0x2164   :  { %v1857_v47 = vsub.f32 1.5, %v1856_v55 }
0x2165   :  { %v1875_v58 = vadd.f32 %v2189_v56, %v1869_v28 }
0x2166   :  { %v2346_v1 = vpop.eup %2345  ;;  %v1858_v48 = vmul.f32 %v2344_v43, %v1857_v47 }
0x2167   :  { %1332 = vrot.lane.b32.xlu2 %v2346_v1, %s2351_s18  ;;  %s2382_s18 = smov 30  }
0x2168   :  { %v1862_v51 = vsel %vm1861_vm1, %v2344_v43, %v1858_v48  ;;  %s2069_s22 = sld [smem:[%s2843_s0 + %s2382_s18]]  }
0x2169   :  { %v1864_v52 = vmul.f32 %v1862_v51, %v2786_v11 }
0x216b   :  { %v1870_v53 = vmul.f32 %v2188_v49, %v1864_v52 }
0x216d   :  { %v1876_v57 = vadd.f32 %v2189_v56, %v1870_v53 }
0x216e   :  { %v1916_v2 = vld [vmem:[%s2069_s22 + $0x18] sm:$0xff]  ;;  %v1915_v3 = vld [vmem:[%s2069_s22 + $0x10] sm:$0xff]  ;;  %v1914_v4 = vld [vmem:[%s2069_s22 + $0x8] sm:$0xff] }
0x216f   :  { %v1878_v59 = vrot.slane %v1876_v57, 7  ;;  %1962 = vmatpush.msrb.mxu0 %v1916_v2  ;;  %v1913_v5 = vld [vmem:[%s2069_s22] sm:$0xff] }
0x2171   :  { %v1881_v63 = vsel %vm1880_vm6, %v1875_v58, %v1878_v59  ;;  %1963 = vmatpush.msrb.mxu0 %v1915_v3 }
0x2172   :  { %2126 = vmatmul.msk.f32.vlgmr.msra.gmra.mxu0 %vm192_vm5, %v1881_v63 }
0x2173   :  { %1964 = vmatpush.msrb.mxu0 %v1914_v4 }
0x2175   :  { %1965 = vmatpush.msrb.mxu0 %v1913_v5 }
0x21c1   :  { %v1333_v62 = vpop.permute.xlu2 %1332 }
0x21c2   :  { %v1335_v0 = vmul.f32 %v1333_v62, %v2796_v23 }
0x21c4   :  { %v1945_v9 = vrot.slane %v1335_v0, 6 }
0x21c6   :  { %1946 = vrot.lane.b32.xlu0 %v1945_v9, %s2352_s19  ;;  %s2383_s19 = smov 33  }
0x21c7   :  { %s2072_s25 = sld [smem:[%s2843_s0 + %s2383_s19]]  }
0x21cd   :  { %v2191_v22 = vld [vmem:[%s2072_s25] ss:$0 sm:$0xff] }
0x21ef   :  { %v1910_v35 = vpop.f32.mrf.mxu0 }
0x21f0   :  { %v1911_v11 = vadd.f32 %v2190_v6, %v1910_v35 }
0x21f2   :  { %2129 = vmatmul.msk.f32.vlgmr.msra.gmra.mxu1 %vm192_vm5, %v1911_v11 }
0x2238   :  { %v1947_v12 = vpop.permute.xlu0 %1946 }
0x2239   :  { %2128 = vmatmul.msk.f32.vlgmr.msrb.gmra.mxu0 %vm192_vm5, %v1947_v12 }
0x226f   :  { %v1994_v23 = vpop.f32.mrf.mxu1 }
0x22b6   :  { %v1967_v19 = vpop.f32.mrf.mxu0 }
0x22b7   :  { %v1968_v20 = vadd.f32 %v1967_v19, %v1941_v18 }
0x22b9   :  { %v1997_v25 = vadd.f32 %v1994_v23, %v1968_v20 }
0x22bb   :  { %v2002_v17 = vadd.f32 %v2191_v22, %v1997_v25 }
0x22bd   :  { %v2003_v26 = vmax.f32 %v2002_v17, 0.0 }
0x22bf   :  { %2130 = vmatmul.msk.f32.vlgmr.msra.gmra.mxu2 %vm192_vm5, %v2003_v26 }
0x2342   :  { %v2032_v21 = vpop.f32.mrf.mxu2 }
0x2343   :  { %v2033_v29 = vadd.f32 %v2192_v27, %v2032_v21 }
0x2345   :  { %2035 = vst [vmem:[%s2075_s7] sm:$0x3] %v2033_v29 }

</bundles_post_ra>
